<compile_context>
chip_gen: v7x
topology: tpu7x:2x2x1
jax: 0.10.0
libtpu: 0.0.40
codegen_flags: <defaults>
</compile_context>

<pallas_src>
import functools

import jax
import jax.numpy as jnp
from jax import lax
from jax.experimental import pallas as pl
from jax.experimental.pallas import tpu as pltpu

EPS = 1e-5          # PyTorch GroupNorm default eps
NUM_GROUPS = 32     # GroupNorm(32, C)


def _sigmoid(x):
    return 1.0 / (1.0 + jnp.exp(-x))


# ---------------------------------------------------------------------------
# In-kernel helpers
# ---------------------------------------------------------------------------
def _gn_swish(x, gamma, beta, cpg, m_ref, mT_ref):
    """GroupNorm(32) + Swish on x:(HW, C) f32 with two-pass (shifted) variance.

    For channels-per-group > 1 the group combine/expand uses tiny resident
    one-hot matrices m_ref:(C, G) / mT_ref:(G, C) (no per-step iota builds).
    """
    inv_n = 1.0 / float(x.shape[0] * cpg)
    mean_c = jnp.sum(x, axis=0, keepdims=True) * inv_n            # (1, C)
    if cpg > 1:
        m = m_ref[...]
        mT = mT_ref[...]
        mean_c = jnp.dot(jnp.dot(mean_c, m, preferred_element_type=jnp.float32),
                         mT, preferred_element_type=jnp.float32)
    d = x - mean_c
    var_c = jnp.sum(d * d, axis=0, keepdims=True) * inv_n         # (1, C)
    if cpg > 1:
        var_c = jnp.dot(jnp.dot(var_c, m, preferred_element_type=jnp.float32),
                        mT, preferred_element_type=jnp.float32)
    h = d * lax.rsqrt(var_c + EPS) * gamma + beta
    return h * _sigmoid(h)                                        # Swish


def _conv3x3(h, w_ref, tap_ref, H, W, tap_mode, compute_dtype):
    """3x3 'same' conv on h:(HW, C) f32 with weights w_ref:(9, C, Cout).

    tap_mode == "roll":   taps are pltpu.roll's of the flat activation (XLU)
        times resident (9, HW, 1) boundary masks -- no padded scratch, no
        sublane-offset slice+reshape copies.
    tap_mode == "matmul": fallback; taps via resident (9, HW, HW) 0/1
        shift+boundary matrices (pure MXU, guaranteed lowering; toy sizes only).
    """
    HW = H * W
    cd = compute_dtype
    hb = h.astype(cd)
    parts = []
    k = 0
    for oy in (-1, 0, 1):
        for ox in (-1, 0, 1):               # k == (oy+1)*3 + (ox+1), HWIO order
            if tap_mode == "roll":
                shift = oy * W + ox
                if shift == 0:
                    patch = hb
                else:
                    patch = (pltpu.roll(h, (-shift) % HW, axis=0)
                             * tap_ref[k]).astype(cd)
            else:
                patch = jnp.dot(tap_ref[k], hb,
                                preferred_element_type=jnp.float32).astype(cd)
            parts.append(jnp.dot(patch, w_ref[k],
                                 preferred_element_type=jnp.float32))
            k += 1
    # Pairwise tree-sum: the 9 MXU dots stay independent (no serial acc chain).
    while len(parts) > 1:
        nxt = [parts[i] + parts[i + 1] for i in range(0, len(parts) - 1, 2)]
        if len(parts) % 2:
            nxt.append(parts[-1])
        parts = nxt
    return parts[0]


# ---------------------------------------------------------------------------
# Fused ResBlock kernel: one grid step == one batch element.
# ---------------------------------------------------------------------------
def resblock_kernel(x_ref, temb_ref, tap_ref,
                    g1_ref, b1_ref, w1_ref, cb1_ref,
                    tw_ref, tb_ref,
                    g2_ref, b2_ref, w2_ref, cb2_ref,
                    sw_ref, sb_ref,
                    m1_ref, m1T_ref, m2_ref, m2T_ref,
                    o_ref,
                    *, H, W, cpg1, cpg2, has_shortcut, tap_mode, compute_dtype):
    cd = compute_dtype
    x = x_ref[...].astype(jnp.float32)                            # (HW, Cin)

    # ---- block1: GroupNorm(32) + Swish -> 3x3 conv (bias fused below) ----
    h = _gn_swish(x, g1_ref[...], b1_ref[...], cpg1, m1_ref, m1T_ref)
    acc1 = _conv3x3(h, w1_ref, tap_ref, H, W, tap_mode, cd)       # (HW, Cout) f32

    # ---- temb projection: Swish(temb) @ W + b, fused with conv1 bias ----
    t = temb_ref[...].astype(jnp.float32)                         # (1, tdim)
    t = t * _sigmoid(t)
    trow = jnp.dot(t.astype(cd), tw_ref[...], preferred_element_type=jnp.float32)
    # h stays in f32 on-chip; no HBM round trip between the two halves.
    hmid = acc1 + (trow + tb_ref[...] + cb1_ref[...])

    # ---- block2: GN(32)+Swish (+Dropout == identity in eval) -> 3x3 conv ----
    g = _gn_swish(hmid, g2_ref[...], b2_ref[...], cpg2, m2_ref, m2T_ref)
    acc2 = _conv3x3(g, w2_ref, tap_ref, H, W, tap_mode, cd)

    # ---- shortcut: 1x1 conv (bf16 operands) if Cin != Cout, else plain add ----
    if has_shortcut:
        sc = jnp.dot(x.astype(cd), sw_ref[...],
                     preferred_element_type=jnp.float32) + sb_ref[...]
    else:
        sc = x
    # attn=False -> nn.Identity()
    o_ref[...] = (acc2 + cb2_ref[...] + sc).astype(o_ref.dtype)


# ---------------------------------------------------------------------------
# Host-side constant builders (resident inputs; computed once per trace)
# ---------------------------------------------------------------------------
def _const_index_map(ndim):
    return lambda b: (0,) * ndim


def _group_masks(C, groups):
    gid = jnp.arange(C) // (C // groups)
    m = (gid[:, None] == jnp.arange(groups)[None, :]).astype(jnp.float32)  # (C, G)
    return m, m.T                                                          # +(G, C)


def _boundary_masks(H, W):
    """(9, HW, 1) f32 validity masks for the 9 conv taps (zero-pad boundaries)."""
    yy, xx = jnp.meshgrid(jnp.arange(H), jnp.arange(W), indexing="ij")
    yy = yy.reshape(-1)
    xx = xx.reshape(-1)
    cols = []
    for oy in (-1, 0, 1):
        for ox in (-1, 0, 1):
            cols.append(((yy + oy >= 0) & (yy + oy < H) &
                         (xx + ox >= 0) & (xx + ox < W)).astype(jnp.float32))
    return jnp.stack(cols, axis=0).reshape(9, H * W, 1)


def _tap_matrices(H, W, dtype):
    """(9, HW, HW) 0/1 shift+boundary matrices (fallback tap mode only)."""
    HW = H * W
    yy, xx = jnp.meshgrid(jnp.arange(H), jnp.arange(W), indexing="ij")
    yy = yy.reshape(-1)
    xx = xx.reshape(-1)
    i = jnp.arange(HW)
    mats = []
    for oy in (-1, 0, 1):
        for ox in (-1, 0, 1):
            valid = ((yy + oy >= 0) & (yy + oy < H) &
                     (xx + ox >= 0) & (xx + ox < W))
            src = i + oy * W + ox
            mats.append(((i[None, :] == src[:, None]) & valid[:, None]).astype(dtype))
    return jnp.stack(mats, axis=0)


# ---------------------------------------------------------------------------
# ResBlock forward (eval mode, attn=False)
# ---------------------------------------------------------------------------
def res_block_forward(x, temb, p, *, compute_dtype=jnp.bfloat16, tap_mode="roll"):
    B, H, W, Cin = x.shape
    Cout = p["conv1_w"].shape[-1]
    HW = H * W
    tdim = temb.shape[-1]
    cd = compute_dtype

    x_flat = x.reshape(B, HW, Cin)          # channels on the lane dimension
    temb3 = temb.reshape(B, 1, tdim)

    w1 = p["conv1_w"].reshape(9, Cin, Cout).astype(cd)   # HWIO -> (9, Cin, Cout)
    w2 = p["conv2_w"].reshape(9, Cout, Cout).astype(cd)
    tw = p["temb_w"].astype(cd)

    has_shortcut = p.get("short_w", None) is not None
    if has_shortcut:
        sw = p["short_w"].astype(cd)
        sb = p["short_b"].reshape(1, Cout).astype(jnp.float32)
    else:   # in_ch == out_ch -> nn.Identity: plain residual add, no eye matmul
        sw = jnp.zeros((1, 1), cd)
        sb = jnp.zeros((1, 1), jnp.float32)

    cpg1 = Cin // NUM_GROUPS
    cpg2 = Cout // NUM_GROUPS
    dummy = jnp.zeros((1, 1), jnp.float32)
    m1, m1T = _group_masks(Cin, NUM_GROUPS) if cpg1 > 1 else (dummy, dummy)
    m2, m2T = _group_masks(Cout, NUM_GROUPS) if cpg2 > 1 else (dummy, dummy)

    tap = _boundary_masks(H, W) if tap_mode == "roll" else _tap_matrices(H, W, cd)

    resident = [tap,
                p["gn1_gamma"].reshape(1, Cin), p["gn1_beta"].reshape(1, Cin),
                w1, p["conv1_b"].reshape(1, Cout),
                tw, p["temb_b"].reshape(1, Cout),
                p["gn2_gamma"].reshape(1, Cout), p["gn2_beta"].reshape(1, Cout),
                w2, p["conv2_b"].reshape(1, Cout),
                sw, sb, m1, m1T, m2, m2T]

    kern = functools.partial(resblock_kernel, H=H, W=W, cpg1=cpg1, cpg2=cpg2,
                             has_shortcut=has_shortcut, tap_mode=tap_mode,
                             compute_dtype=cd)

    out = pl.pallas_call(
        kern,
        out_shape=jax.ShapeDtypeStruct((B, HW, Cout), jnp.float32),
        grid=(B,),
        in_specs=[
            pl.BlockSpec((None, HW, Cin), lambda b: (b, 0, 0)),     # x
            pl.BlockSpec((None, 1, tdim), lambda b: (b, 0, 0)),     # temb row
        ] + [pl.BlockSpec(a.shape, _const_index_map(a.ndim)) for a in resident],
        out_specs=pl.BlockSpec((None, HW, Cout), lambda b: (b, 0, 0)),
        compiler_params=pltpu.CompilerParams(
            dimension_semantics=("parallel",),
            vmem_limit_bytes=32 * 1024 * 1024),
    )(x_flat, temb3, *resident)

    return out.reshape(B, H, W, Cout)


# ---------------------------------------------------------------------------
# Deterministic parameter init (mirrors ResBlock.initialize(): xavier_uniform
# weights, zero biases, block2 conv gain=1e-5, GroupNorm gamma=1 / beta=0).
# ---------------------------------------------------------------------------
def xavier_uniform(key, shape, fan_in, fan_out, gain=1.0):
    limit = gain * (6.0 / (fan_in + fan_out)) ** 0.5
    return jax.random.uniform(key, shape, jnp.float32, minval=-limit, maxval=limit)


def init_params(key, in_ch, out_ch, tdim):
    ks = jax.random.split(key, 4)
    p = {
        "gn1_gamma": jnp.ones((in_ch,), jnp.float32),
        "gn1_beta": jnp.zeros((in_ch,), jnp.float32),
        "conv1_w": xavier_uniform(ks[0], (3, 3, in_ch, out_ch), in_ch * 9, out_ch * 9),
        "conv1_b": jnp.zeros((out_ch,), jnp.float32),
        "temb_w": xavier_uniform(ks[1], (tdim, out_ch), tdim, out_ch),
        "temb_b": jnp.zeros((out_ch,), jnp.float32),
        "gn2_gamma": jnp.ones((out_ch,), jnp.float32),
        "gn2_beta": jnp.zeros((out_ch,), jnp.float32),
        "conv2_w": xavier_uniform(ks[2], (3, 3, out_ch, out_ch), out_ch * 9,
                                  out_ch * 9, gain=1e-5),
        "conv2_b": jnp.zeros((out_ch,), jnp.float32),
    }
    if in_ch != out_ch:
        p["short_w"] = xavier_uniform(ks[3], (in_ch, out_ch), in_ch, out_ch)
        p["short_b"] = jnp.zeros((out_ch,), jnp.float32)
    return p


# ---------------------------------------------------------------------------
# Pure-JAX reference (same NHWC semantics) for a correctness check.
# ---------------------------------------------------------------------------
def _gn_ref(x, gamma, beta, groups=NUM_GROUPS):
    B, H, W, C = x.shape
    xg = x.reshape(B, H, W, groups, C // groups)
    mean = xg.mean(axis=(1, 2, 4), keepdims=True)
    var = xg.var(axis=(1, 2, 4), keepdims=True)
    xn = ((xg - mean) / jnp.sqrt(var + EPS)).reshape(B, H, W, C)
    return xn * gamma + beta


def _swish_ref(x):
    return x * jax.nn.sigmoid(x)


def _conv_ref(x, w, b):
    y = lax.conv_general_dilated(x, w, (1, 1), "SAME",
                                 dimension_numbers=("NHWC", "HWIO", "NHWC"),
                                 precision=lax.Precision.HIGHEST)
    return y + b


def res_block_ref(x, temb, p):
    h = _conv_ref(_swish_ref(_gn_ref(x, p["gn1_gamma"], p["gn1_beta"])),
                  p["conv1_w"], p["conv1_b"])
    t = jnp.dot(_swish_ref(temb), p["temb_w"],
                precision=lax.Precision.HIGHEST) + p["temb_b"]
    h = h + t[:, None, None, :]
    h = _conv_ref(_swish_ref(_gn_ref(h, p["gn2_gamma"], p["gn2_beta"])),
                  p["conv2_w"], p["conv2_b"])
    if p.get("short_w", None) is not None:
        sc = jnp.dot(x, p["short_w"], precision=lax.Precision.HIGHEST) + p["short_b"]
    else:
        sc = x
    return h + sc


if __name__ == "__main__":
    B, H, W = 2, 8, 8
    in_ch, out_ch, tdim = 32, 64, 64        # GroupNorm(32, C) needs C % 32 == 0

    key = jax.random.PRNGKey(0)
    kx, kt, kp, kw = jax.random.split(key, 4)
    x = jax.random.normal(kx, (B, H, W, in_ch), jnp.float32)
    temb = jax.random.normal(kt, (B, tdim), jnp.float32)
    params = init_params(kp, in_ch, out_ch, tdim)

    # Second parameter set with a non-degenerate conv2 (the module's gain=1e-5
    # init makes block2 nearly invisible in the output); exercises the full
    # block2 path numerically.
    params_t = dict(params)
    params_t["conv2_w"] = xavier_uniform(kw, (3, 3, out_ch, out_ch),
                                         out_ch * 9, out_ch * 9)

    def run_checks(tap_mode):
        fwd = jax.jit(functools.partial(res_block_forward, tap_mode=tap_mode))
        out = jax.block_until_ready(fwd(x, temb, params))
        assert out.shape == (B, H, W, out_ch)
        err = float(jnp.max(jnp.abs(out - res_block_ref(x, temb, params))))
        assert err < 2e-2, f"[{tap_mode}] max abs err = {err}"
        out_t = jax.block_until_ready(fwd(x, temb, params_t))
        err_t = float(jnp.max(jnp.abs(out_t - res_block_ref(x, temb, params_t))))
        assert err_t < 5e-2, f"[{tap_mode}] (conv2 gain=1) max abs err = {err_t}"

    try:
        run_checks("roll")      # preferred: XLU-roll taps, no pad scratch
    except Exception:
        run_checks("matmul")    # portability fallback: pure-MXU shift-matrix taps

    print("KERNEL_OK")
</pallas_src>

<mosaic_0001>
module attributes {stable_mosaic.version = 11 : i64} {
  func.func @resblock_kernel(%arg0: i32, %arg1: memref<1x64x32xf32, #tpu.memory_space<vmem>>, %arg2: memref<1x1x64xf32, #tpu.memory_space<vmem>>, %arg3: memref<9x64x1xf32, #tpu.memory_space<vmem>>, %arg4: memref<1x32xf32, #tpu.memory_space<vmem>>, %arg5: memref<1x32xf32, #tpu.memory_space<vmem>>, %arg6: memref<9x32x64xbf16, #tpu.memory_space<vmem>>, %arg7: memref<1x64xf32, #tpu.memory_space<vmem>>, %arg8: memref<64x64xbf16, #tpu.memory_space<vmem>>, %arg9: memref<1x64xf32, #tpu.memory_space<vmem>>, %arg10: memref<1x64xf32, #tpu.memory_space<vmem>>, %arg11: memref<1x64xf32, #tpu.memory_space<vmem>>, %arg12: memref<9x64x64xbf16, #tpu.memory_space<vmem>>, %arg13: memref<1x64xf32, #tpu.memory_space<vmem>>, %arg14: memref<32x64xbf16, #tpu.memory_space<vmem>>, %arg15: memref<1x64xf32, #tpu.memory_space<vmem>>, %arg16: memref<1x1xf32, #tpu.memory_space<vmem>>, %arg17: memref<1x1xf32, #tpu.memory_space<vmem>>, %arg18: memref<64x32xf32, #tpu.memory_space<vmem>>, %arg19: memref<32x64xf32, #tpu.memory_space<vmem>>, %arg20: memref<1x64x64xf32, #tpu.memory_space<vmem>>) attributes {dimension_semantics = [#tpu.dimension_semantics<parallel>], iteration_bounds = array<i64: 2>, scalar_prefetch = 0 : i64, scratch_operands = 0 : i64, tpu.core_type = #tpu.core_type<tc>, window_params = [{transform_indices = @transform_0, window_bounds = array<i64: 1, 64, 32>}, {transform_indices = @transform_1, window_bounds = array<i64: 1, 1, 64>}, {pipeline_mode = #tpu.pipeline_mode<synchronous>, transform_indices = @transform_2, window_bounds = array<i64: 9, 64, 1>}, {pipeline_mode = #tpu.pipeline_mode<synchronous>, transform_indices = @transform_3, window_bounds = array<i64: 1, 32>}, {pipeline_mode = #tpu.pipeline_mode<synchronous>, transform_indices = @transform_4, window_bounds = array<i64: 1, 32>}, {pipeline_mode = #tpu.pipeline_mode<synchronous>, transform_indices = @transform_5, window_bounds = array<i64: 9, 32, 64>}, {pipeline_mode = #tpu.pipeline_mode<synchronous>, transform_indices = @transform_6, window_bounds = array<i64: 1, 64>}, {pipeline_mode = #tpu.pipeline_mode<synchronous>, transform_indices = @transform_7, window_bounds = array<i64: 64, 64>}, {pipeline_mode = #tpu.pipeline_mode<synchronous>, transform_indices = @transform_8, window_bounds = array<i64: 1, 64>}, {pipeline_mode = #tpu.pipeline_mode<synchronous>, transform_indices = @transform_9, window_bounds = array<i64: 1, 64>}, {pipeline_mode = #tpu.pipeline_mode<synchronous>, transform_indices = @transform_10, window_bounds = array<i64: 1, 64>}, {pipeline_mode = #tpu.pipeline_mode<synchronous>, transform_indices = @transform_11, window_bounds = array<i64: 9, 64, 64>}, {pipeline_mode = #tpu.pipeline_mode<synchronous>, transform_indices = @transform_12, window_bounds = array<i64: 1, 64>}, {pipeline_mode = #tpu.pipeline_mode<synchronous>, transform_indices = @transform_13, window_bounds = array<i64: 32, 64>}, {pipeline_mode = #tpu.pipeline_mode<synchronous>, transform_indices = @transform_14, window_bounds = array<i64: 1, 64>}, {pipeline_mode = #tpu.pipeline_mode<synchronous>, transform_indices = @transform_15, window_bounds = array<i64: 1, 1>}, {pipeline_mode = #tpu.pipeline_mode<synchronous>, transform_indices = @transform_16, window_bounds = array<i64: 1, 1>}, {pipeline_mode = #tpu.pipeline_mode<synchronous>, transform_indices = @transform_17, window_bounds = array<i64: 64, 32>}, {pipeline_mode = #tpu.pipeline_mode<synchronous>, transform_indices = @transform_18, window_bounds = array<i64: 32, 64>}, {transform_indices = @transform_19, window_bounds = array<i64: 1, 64, 64>}]} {
    %c0 = arith.constant 0 : index
    %c0_0 = arith.constant 0 : index
    %c0_1 = arith.constant 0 : index
    %0 = vector.load %arg1[%c0, %c0_0, %c0_1] : memref<1x64x32xf32, #tpu.memory_space<vmem>>, vector<1x64x32xf32>
    %1 = vector.shape_cast %0 : vector<1x64x32xf32> to vector<64x32xf32>
    %c0_2 = arith.constant 0 : index
    %c0_3 = arith.constant 0 : index
    %2 = vector.load %arg4[%c0_2, %c0_3] : memref<1x32xf32, #tpu.memory_space<vmem>>, vector<1x32xf32>
    %c0_4 = arith.constant 0 : index
    %c0_5 = arith.constant 0 : index
    %3 = vector.load %arg5[%c0_4, %c0_5] : memref<1x32xf32, #tpu.memory_space<vmem>>, vector<1x32xf32>
    %cst = arith.constant dense<0.000000e+00> : vector<32xf32>
    %4 = vector.multi_reduction <add>, %1, %cst [0] : vector<64x32xf32> to vector<32xf32>
    %5 = vector.shape_cast %4 : vector<32xf32> to vector<1x32xf32>
    %cst_6 = arith.constant 1.562500e-02 : f32
    %6 = vector.broadcast %cst_6 : f32 to vector<1x32xf32>
    %7 = arith.mulf %5, %6 : vector<1x32xf32>
    %8 = vector.broadcast %7 : vector<1x32xf32> to vector<64x32xf32>
    %9 = arith.subf %1, %8 : vector<64x32xf32>
    %10 = arith.mulf %9, %9 : vector<64x32xf32>
    %cst_7 = arith.constant dense<0.000000e+00> : vector<32xf32>
    %11 = vector.multi_reduction <add>, %10, %cst_7 [0] : vector<64x32xf32> to vector<32xf32>
    %12 = vector.shape_cast %11 : vector<32xf32> to vector<1x32xf32>
    %cst_8 = arith.constant 1.562500e-02 : f32
    %13 = vector.broadcast %cst_8 : f32 to vector<1x32xf32>
    %14 = arith.mulf %12, %13 : vector<1x32xf32>
    %cst_9 = arith.constant 9.99999974E-6 : f32
    %15 = vector.broadcast %cst_9 : f32 to vector<1x32xf32>
    %16 = arith.addf %14, %15 : vector<1x32xf32>
    %17 = math.rsqrt %16 : vector<1x32xf32>
    %18 = vector.broadcast %17 : vector<1x32xf32> to vector<64x32xf32>
    %19 = arith.mulf %9, %18 : vector<64x32xf32>
    %20 = vector.broadcast %2 : vector<1x32xf32> to vector<64x32xf32>
    %21 = arith.mulf %19, %20 : vector<64x32xf32>
    %22 = vector.broadcast %3 : vector<1x32xf32> to vector<64x32xf32>
    %23 = arith.addf %21, %22 : vector<64x32xf32>
    %cst_10 = arith.constant 0.000000e+00 : f32
    %24 = vector.broadcast %cst_10 : f32 to vector<64x32xf32>
    %25 = arith.subf %24, %23 : vector<64x32xf32>
    %26 = math.exp %25 : vector<64x32xf32>
    %cst_11 = arith.constant 1.000000e+00 : f32
    %27 = vector.broadcast %cst_11 : f32 to vector<64x32xf32>
    %28 = arith.addf %27, %26 : vector<64x32xf32>
    %cst_12 = arith.constant 1.000000e+00 : f32
    %29 = vector.broadcast %cst_12 : f32 to vector<64x32xf32>
    %30 = arith.divf %29, %28 : vector<64x32xf32>
    %31 = arith.mulf %23, %30 : vector<64x32xf32>
    %32 = arith.truncf %31 : vector<64x32xf32> to vector<64x32xbf16>
    %c9_i32 = arith.constant 9 : i32
    %33 = tpu.dynamic_rotate %31 by %c9_i32 dim 0 : vector<64x32xf32>, i32 -> vector<64x32xf32>
    %c0_13 = arith.constant 0 : index
    %c0_14 = arith.constant 0 : index
    %c0_15 = arith.constant 0 : index
    %34 = vector.load %arg3[%c0_13, %c0_14, %c0_15] : memref<9x64x1xf32, #tpu.memory_space<vmem>>, vector<1x64x1xf32>
    %35 = vector.shape_cast %34 : vector<1x64x1xf32> to vector<64x1xf32>
    %36 = vector.broadcast %35 : vector<64x1xf32> to vector<64x32xf32>
    %37 = arith.mulf %33, %36 : vector<64x32xf32>
    %38 = arith.truncf %37 : vector<64x32xf32> to vector<64x32xbf16>
    %c0_16 = arith.constant 0 : index
    %c0_17 = arith.constant 0 : index
    %c0_18 = arith.constant 0 : index
    %39 = vector.load %arg6[%c0_16, %c0_17, %c0_18] : memref<9x32x64xbf16, #tpu.memory_space<vmem>>, vector<1x32x64xbf16>
    %40 = vector.shape_cast %39 : vector<1x32x64xbf16> to vector<32x64xbf16>
    %cst_19 = arith.constant dense<0.000000e+00> : vector<64x64xf32>
    %41 = tpu.matmul %38, %40, %cst_19 {dimension_numbers = #tpu.dot_dimension_numbers<[1], [0], [0], [1], [0, 0, 1, 1], [], []>} : vector<64x32xbf16>, vector<32x64xbf16>, vector<64x64xf32> -> vector<64x64xf32>
    %c8_i32 = arith.constant 8 : i32
    %42 = tpu.dynamic_rotate %31 by %c8_i32 dim 0 : vector<64x32xf32>, i32 -> vector<64x32xf32>
    %c1 = arith.constant 1 : index
    %c0_20 = arith.constant 0 : index
    %c0_21 = arith.constant 0 : index
    %43 = vector.load %arg3[%c1, %c0_20, %c0_21] : memref<9x64x1xf32, #tpu.memory_space<vmem>>, vector<1x64x1xf32>
    %44 = vector.shape_cast %43 : vector<1x64x1xf32> to vector<64x1xf32>
    %45 = vector.broadcast %44 : vector<64x1xf32> to vector<64x32xf32>
    %46 = arith.mulf %42, %45 : vector<64x32xf32>
    %47 = arith.truncf %46 : vector<64x32xf32> to vector<64x32xbf16>
    %c1_22 = arith.constant 1 : index
    %c0_23 = arith.constant 0 : index
    %c0_24 = arith.constant 0 : index
    %48 = vector.load %arg6[%c1_22, %c0_23, %c0_24] : memref<9x32x64xbf16, #tpu.memory_space<vmem>>, vector<1x32x64xbf16>
    %49 = vector.shape_cast %48 : vector<1x32x64xbf16> to vector<32x64xbf16>
    %cst_25 = arith.constant dense<0.000000e+00> : vector<64x64xf32>
    %50 = tpu.matmul %47, %49, %cst_25 {dimension_numbers = #tpu.dot_dimension_numbers<[1], [0], [0], [1], [0, 0, 1, 1], [], []>} : vector<64x32xbf16>, vector<32x64xbf16>, vector<64x64xf32> -> vector<64x64xf32>
    %c7_i32 = arith.constant 7 : i32
    %51 = tpu.dynamic_rotate %31 by %c7_i32 dim 0 : vector<64x32xf32>, i32 -> vector<64x32xf32>
    %c2 = arith.constant 2 : index
    %c0_26 = arith.constant 0 : index
    %c0_27 = arith.constant 0 : index
    %52 = vector.load %arg3[%c2, %c0_26, %c0_27] : memref<9x64x1xf32, #tpu.memory_space<vmem>>, vector<1x64x1xf32>
    %53 = vector.shape_cast %52 : vector<1x64x1xf32> to vector<64x1xf32>
    %54 = vector.broadcast %53 : vector<64x1xf32> to vector<64x32xf32>
    %55 = arith.mulf %51, %54 : vector<64x32xf32>
    %56 = arith.truncf %55 : vector<64x32xf32> to vector<64x32xbf16>
    %c2_28 = arith.constant 2 : index
    %c0_29 = arith.constant 0 : index
    %c0_30 = arith.constant 0 : index
    %57 = vector.load %arg6[%c2_28, %c0_29, %c0_30] : memref<9x32x64xbf16, #tpu.memory_space<vmem>>, vector<1x32x64xbf16>
    %58 = vector.shape_cast %57 : vector<1x32x64xbf16> to vector<32x64xbf16>
    %cst_31 = arith.constant dense<0.000000e+00> : vector<64x64xf32>
    %59 = tpu.matmul %56, %58, %cst_31 {dimension_numbers = #tpu.dot_dimension_numbers<[1], [0], [0], [1], [0, 0, 1, 1], [], []>} : vector<64x32xbf16>, vector<32x64xbf16>, vector<64x64xf32> -> vector<64x64xf32>
    %c1_i32 = arith.constant 1 : i32
    %60 = tpu.dynamic_rotate %31 by %c1_i32 dim 0 : vector<64x32xf32>, i32 -> vector<64x32xf32>
    %c3 = arith.constant 3 : index
    %c0_32 = arith.constant 0 : index
    %c0_33 = arith.constant 0 : index
    %61 = vector.load %arg3[%c3, %c0_32, %c0_33] : memref<9x64x1xf32, #tpu.memory_space<vmem>>, vector<1x64x1xf32>
    %62 = vector.shape_cast %61 : vector<1x64x1xf32> to vector<64x1xf32>
    %63 = vector.broadcast %62 : vector<64x1xf32> to vector<64x32xf32>
    %64 = arith.mulf %60, %63 : vector<64x32xf32>
    %65 = arith.truncf %64 : vector<64x32xf32> to vector<64x32xbf16>
    %c3_34 = arith.constant 3 : index
    %c0_35 = arith.constant 0 : index
    %c0_36 = arith.constant 0 : index
    %66 = vector.load %arg6[%c3_34, %c0_35, %c0_36] : memref<9x32x64xbf16, #tpu.memory_space<vmem>>, vector<1x32x64xbf16>
    %67 = vector.shape_cast %66 : vector<1x32x64xbf16> to vector<32x64xbf16>
    %cst_37 = arith.constant dense<0.000000e+00> : vector<64x64xf32>
    %68 = tpu.matmul %65, %67, %cst_37 {dimension_numbers = #tpu.dot_dimension_numbers<[1], [0], [0], [1], [0, 0, 1, 1], [], []>} : vector<64x32xbf16>, vector<32x64xbf16>, vector<64x64xf32> -> vector<64x64xf32>
    %c4 = arith.constant 4 : index
    %c0_38 = arith.constant 0 : index
    %c0_39 = arith.constant 0 : index
    %69 = vector.load %arg6[%c4, %c0_38, %c0_39] : memref<9x32x64xbf16, #tpu.memory_space<vmem>>, vector<1x32x64xbf16>
    %70 = vector.shape_cast %69 : vector<1x32x64xbf16> to vector<32x64xbf16>
    %cst_40 = arith.constant dense<0.000000e+00> : vector<64x64xf32>
    %71 = tpu.matmul %32, %70, %cst_40 {dimension_numbers = #tpu.dot_dimension_numbers<[1], [0], [0], [1], [0, 0, 1, 1], [], []>} : vector<64x32xbf16>, vector<32x64xbf16>, vector<64x64xf32> -> vector<64x64xf32>
    %c63_i32 = arith.constant 63 : i32
    %72 = tpu.dynamic_rotate %31 by %c63_i32 dim 0 : vector<64x32xf32>, i32 -> vector<64x32xf32>
    %c5 = arith.constant 5 : index
    %c0_41 = arith.constant 0 : index
    %c0_42 = arith.constant 0 : index
    %73 = vector.load %arg3[%c5, %c0_41, %c0_42] : memref<9x64x1xf32, #tpu.memory_space<vmem>>, vector<1x64x1xf32>
    %74 = vector.shape_cast %73 : vector<1x64x1xf32> to vector<64x1xf32>
    %75 = vector.broadcast %74 : vector<64x1xf32> to vector<64x32xf32>
    %76 = arith.mulf %72, %75 : vector<64x32xf32>
    %77 = arith.truncf %76 : vector<64x32xf32> to vector<64x32xbf16>
    %c5_43 = arith.constant 5 : index
    %c0_44 = arith.constant 0 : index
    %c0_45 = arith.constant 0 : index
    %78 = vector.load %arg6[%c5_43, %c0_44, %c0_45] : memref<9x32x64xbf16, #tpu.memory_space<vmem>>, vector<1x32x64xbf16>
    %79 = vector.shape_cast %78 : vector<1x32x64xbf16> to vector<32x64xbf16>
    %cst_46 = arith.constant dense<0.000000e+00> : vector<64x64xf32>
    %80 = tpu.matmul %77, %79, %cst_46 {dimension_numbers = #tpu.dot_dimension_numbers<[1], [0], [0], [1], [0, 0, 1, 1], [], []>} : vector<64x32xbf16>, vector<32x64xbf16>, vector<64x64xf32> -> vector<64x64xf32>
    %c57_i32 = arith.constant 57 : i32
    %81 = tpu.dynamic_rotate %31 by %c57_i32 dim 0 : vector<64x32xf32>, i32 -> vector<64x32xf32>
    %c6 = arith.constant 6 : index
    %c0_47 = arith.constant 0 : index
    %c0_48 = arith.constant 0 : index
    %82 = vector.load %arg3[%c6, %c0_47, %c0_48] : memref<9x64x1xf32, #tpu.memory_space<vmem>>, vector<1x64x1xf32>
    %83 = vector.shape_cast %82 : vector<1x64x1xf32> to vector<64x1xf32>
    %84 = vector.broadcast %83 : vector<64x1xf32> to vector<64x32xf32>
    %85 = arith.mulf %81, %84 : vector<64x32xf32>
    %86 = arith.truncf %85 : vector<64x32xf32> to vector<64x32xbf16>
    %c6_49 = arith.constant 6 : index
    %c0_50 = arith.constant 0 : index
    %c0_51 = arith.constant 0 : index
    %87 = vector.load %arg6[%c6_49, %c0_50, %c0_51] : memref<9x32x64xbf16, #tpu.memory_space<vmem>>, vector<1x32x64xbf16>
    %88 = vector.shape_cast %87 : vector<1x32x64xbf16> to vector<32x64xbf16>
    %cst_52 = arith.constant dense<0.000000e+00> : vector<64x64xf32>
    %89 = tpu.matmul %86, %88, %cst_52 {dimension_numbers = #tpu.dot_dimension_numbers<[1], [0], [0], [1], [0, 0, 1, 1], [], []>} : vector<64x32xbf16>, vector<32x64xbf16>, vector<64x64xf32> -> vector<64x64xf32>
    %c56_i32 = arith.constant 56 : i32
    %90 = tpu.dynamic_rotate %31 by %c56_i32 dim 0 : vector<64x32xf32>, i32 -> vector<64x32xf32>
    %c7 = arith.constant 7 : index
    %c0_53 = arith.constant 0 : index
    %c0_54 = arith.constant 0 : index
    %91 = vector.load %arg3[%c7, %c0_53, %c0_54] : memref<9x64x1xf32, #tpu.memory_space<vmem>>, vector<1x64x1xf32>
    %92 = vector.shape_cast %91 : vector<1x64x1xf32> to vector<64x1xf32>
    %93 = vector.broadcast %92 : vector<64x1xf32> to vector<64x32xf32>
    %94 = arith.mulf %90, %93 : vector<64x32xf32>
    %95 = arith.truncf %94 : vector<64x32xf32> to vector<64x32xbf16>
    %c7_55 = arith.constant 7 : index
    %c0_56 = arith.constant 0 : index
    %c0_57 = arith.constant 0 : index
    %96 = vector.load %arg6[%c7_55, %c0_56, %c0_57] : memref<9x32x64xbf16, #tpu.memory_space<vmem>>, vector<1x32x64xbf16>
    %97 = vector.shape_cast %96 : vector<1x32x64xbf16> to vector<32x64xbf16>
    %cst_58 = arith.constant dense<0.000000e+00> : vector<64x64xf32>
    %98 = tpu.matmul %95, %97, %cst_58 {dimension_numbers = #tpu.dot_dimension_numbers<[1], [0], [0], [1], [0, 0, 1, 1], [], []>} : vector<64x32xbf16>, vector<32x64xbf16>, vector<64x64xf32> -> vector<64x64xf32>
    %c55_i32 = arith.constant 55 : i32
    %99 = tpu.dynamic_rotate %31 by %c55_i32 dim 0 : vector<64x32xf32>, i32 -> vector<64x32xf32>
    %c8 = arith.constant 8 : index
    %c0_59 = arith.constant 0 : index
    %c0_60 = arith.constant 0 : index
    %100 = vector.load %arg3[%c8, %c0_59, %c0_60] : memref<9x64x1xf32, #tpu.memory_space<vmem>>, vector<1x64x1xf32>
    %101 = vector.shape_cast %100 : vector<1x64x1xf32> to vector<64x1xf32>
    %102 = vector.broadcast %101 : vector<64x1xf32> to vector<64x32xf32>
    %103 = arith.mulf %99, %102 : vector<64x32xf32>
    %104 = arith.truncf %103 : vector<64x32xf32> to vector<64x32xbf16>
    %c8_61 = arith.constant 8 : index
    %c0_62 = arith.constant 0 : index
    %c0_63 = arith.constant 0 : index
    %105 = vector.load %arg6[%c8_61, %c0_62, %c0_63] : memref<9x32x64xbf16, #tpu.memory_space<vmem>>, vector<1x32x64xbf16>
    %106 = vector.shape_cast %105 : vector<1x32x64xbf16> to vector<32x64xbf16>
    %cst_64 = arith.constant dense<0.000000e+00> : vector<64x64xf32>
    %107 = tpu.matmul %104, %106, %cst_64 {dimension_numbers = #tpu.dot_dimension_numbers<[1], [0], [0], [1], [0, 0, 1, 1], [], []>} : vector<64x32xbf16>, vector<32x64xbf16>, vector<64x64xf32> -> vector<64x64xf32>
    %108 = arith.addf %41, %50 : vector<64x64xf32>
    %109 = arith.addf %59, %68 : vector<64x64xf32>
    %110 = arith.addf %71, %80 : vector<64x64xf32>
    %111 = arith.addf %89, %98 : vector<64x64xf32>
    %112 = arith.addf %108, %109 : vector<64x64xf32>
    %113 = arith.addf %110, %111 : vector<64x64xf32>
    %114 = arith.addf %112, %113 : vector<64x64xf32>
    %115 = arith.addf %114, %107 : vector<64x64xf32>
    %c0_65 = arith.constant 0 : index
    %c0_66 = arith.constant 0 : index
    %c0_67 = arith.constant 0 : index
    %116 = vector.load %arg2[%c0_65, %c0_66, %c0_67] : memref<1x1x64xf32, #tpu.memory_space<vmem>>, vector<1x1x64xf32>
    %117 = vector.shape_cast %116 : vector<1x1x64xf32> to vector<1x64xf32>
    %cst_68 = arith.constant 0.000000e+00 : f32
    %118 = vector.broadcast %cst_68 : f32 to vector<1x64xf32>
    %119 = arith.subf %118, %117 : vector<1x64xf32>
    %120 = math.exp %119 : vector<1x64xf32>
    %cst_69 = arith.constant 1.000000e+00 : f32
    %121 = vector.broadcast %cst_69 : f32 to vector<1x64xf32>
    %122 = arith.addf %121, %120 : vector<1x64xf32>
    %cst_70 = arith.constant 1.000000e+00 : f32
    %123 = vector.broadcast %cst_70 : f32 to vector<1x64xf32>
    %124 = arith.divf %123, %122 : vector<1x64xf32>
    %125 = arith.mulf %117, %124 : vector<1x64xf32>
    %126 = arith.truncf %125 : vector<1x64xf32> to vector<1x64xbf16>
    %c0_71 = arith.constant 0 : index
    %c0_72 = arith.constant 0 : index
    %127 = vector.load %arg8[%c0_71, %c0_72] : memref<64x64xbf16, #tpu.memory_space<vmem>>, vector<64x64xbf16>
    %cst_73 = arith.constant dense<0.000000e+00> : vector<1x64xf32>
    %128 = tpu.matmul %126, %127, %cst_73 {dimension_numbers = #tpu.dot_dimension_numbers<[1], [0], [0], [1], [0, 0, 1, 1], [], []>} : vector<1x64xbf16>, vector<64x64xbf16>, vector<1x64xf32> -> vector<1x64xf32>
    %c0_74 = arith.constant 0 : index
    %c0_75 = arith.constant 0 : index
    %129 = vector.load %arg9[%c0_74, %c0_75] : memref<1x64xf32, #tpu.memory_space<vmem>>, vector<1x64xf32>
    %130 = arith.addf %128, %129 : vector<1x64xf32>
    %c0_76 = arith.constant 0 : index
    %c0_77 = arith.constant 0 : index
    %131 = vector.load %arg7[%c0_76, %c0_77] : memref<1x64xf32, #tpu.memory_space<vmem>>, vector<1x64xf32>
    %132 = arith.addf %130, %131 : vector<1x64xf32>
    %133 = vector.broadcast %132 : vector<1x64xf32> to vector<64x64xf32>
    %134 = arith.addf %115, %133 : vector<64x64xf32>
    %c0_78 = arith.constant 0 : index
    %c0_79 = arith.constant 0 : index
    %135 = vector.load %arg10[%c0_78, %c0_79] : memref<1x64xf32, #tpu.memory_space<vmem>>, vector<1x64xf32>
    %c0_80 = arith.constant 0 : index
    %c0_81 = arith.constant 0 : index
    %136 = vector.load %arg11[%c0_80, %c0_81] : memref<1x64xf32, #tpu.memory_space<vmem>>, vector<1x64xf32>
    %cst_82 = arith.constant dense<0.000000e+00> : vector<64xf32>
    %137 = vector.multi_reduction <add>, %134, %cst_82 [0] : vector<64x64xf32> to vector<64xf32>
    %138 = vector.shape_cast %137 : vector<64xf32> to vector<1x64xf32>
    %cst_83 = arith.constant 7.812500e-03 : f32
    %139 = vector.broadcast %cst_83 : f32 to vector<1x64xf32>
    %140 = arith.mulf %138, %139 : vector<1x64xf32>
    %c0_84 = arith.constant 0 : index
    %c0_85 = arith.constant 0 : index
    %141 = vector.load %arg18[%c0_84, %c0_85] : memref<64x32xf32, #tpu.memory_space<vmem>>, vector<64x32xf32>
    %c0_86 = arith.constant 0 : index
    %c0_87 = arith.constant 0 : index
    %142 = vector.load %arg19[%c0_86, %c0_87] : memref<32x64xf32, #tpu.memory_space<vmem>>, vector<32x64xf32>
    %cst_88 = arith.constant dense<0.000000e+00> : vector<1x32xf32>
    %143 = tpu.matmul %140, %141, %cst_88 {dimension_numbers = #tpu.dot_dimension_numbers<[1], [0], [0], [1], [0, 0, 1, 1], [], []>} : vector<1x64xf32>, vector<64x32xf32>, vector<1x32xf32> -> vector<1x32xf32>
    %cst_89 = arith.constant dense<0.000000e+00> : vector<1x64xf32>
    %144 = tpu.matmul %143, %142, %cst_89 {dimension_numbers = #tpu.dot_dimension_numbers<[1], [0], [0], [1], [0, 0, 1, 1], [], []>} : vector<1x32xf32>, vector<32x64xf32>, vector<1x64xf32> -> vector<1x64xf32>
    %145 = vector.broadcast %144 : vector<1x64xf32> to vector<64x64xf32>
    %146 = arith.subf %134, %145 : vector<64x64xf32>
    %147 = arith.mulf %146, %146 : vector<64x64xf32>
    %cst_90 = arith.constant dense<0.000000e+00> : vector<64xf32>
    %148 = vector.multi_reduction <add>, %147, %cst_90 [0] : vector<64x64xf32> to vector<64xf32>
    %149 = vector.shape_cast %148 : vector<64xf32> to vector<1x64xf32>
    %cst_91 = arith.constant 7.812500e-03 : f32
    %150 = vector.broadcast %cst_91 : f32 to vector<1x64xf32>
    %151 = arith.mulf %149, %150 : vector<1x64xf32>
    %cst_92 = arith.constant dense<0.000000e+00> : vector<1x32xf32>
    %152 = tpu.matmul %151, %141, %cst_92 {dimension_numbers = #tpu.dot_dimension_numbers<[1], [0], [0], [1], [0, 0, 1, 1], [], []>} : vector<1x64xf32>, vector<64x32xf32>, vector<1x32xf32> -> vector<1x32xf32>
    %cst_93 = arith.constant dense<0.000000e+00> : vector<1x64xf32>
    %153 = tpu.matmul %152, %142, %cst_93 {dimension_numbers = #tpu.dot_dimension_numbers<[1], [0], [0], [1], [0, 0, 1, 1], [], []>} : vector<1x32xf32>, vector<32x64xf32>, vector<1x64xf32> -> vector<1x64xf32>
    %cst_94 = arith.constant 9.99999974E-6 : f32
    %154 = vector.broadcast %cst_94 : f32 to vector<1x64xf32>
    %155 = arith.addf %153, %154 : vector<1x64xf32>
    %156 = math.rsqrt %155 : vector<1x64xf32>
    %157 = vector.broadcast %156 : vector<1x64xf32> to vector<64x64xf32>
    %158 = arith.mulf %146, %157 : vector<64x64xf32>
    %159 = vector.broadcast %135 : vector<1x64xf32> to vector<64x64xf32>
    %160 = arith.mulf %158, %159 : vector<64x64xf32>
    %161 = vector.broadcast %136 : vector<1x64xf32> to vector<64x64xf32>
    %162 = arith.addf %160, %161 : vector<64x64xf32>
    %cst_95 = arith.constant 0.000000e+00 : f32
    %163 = vector.broadcast %cst_95 : f32 to vector<64x64xf32>
    %164 = arith.subf %163, %162 : vector<64x64xf32>
    %165 = math.exp %164 : vector<64x64xf32>
    %cst_96 = arith.constant 1.000000e+00 : f32
    %166 = vector.broadcast %cst_96 : f32 to vector<64x64xf32>
    %167 = arith.addf %166, %165 : vector<64x64xf32>
    %cst_97 = arith.constant 1.000000e+00 : f32
    %168 = vector.broadcast %cst_97 : f32 to vector<64x64xf32>
    %169 = arith.divf %168, %167 : vector<64x64xf32>
    %170 = arith.mulf %162, %169 : vector<64x64xf32>
    %171 = arith.truncf %170 : vector<64x64xf32> to vector<64x64xbf16>
    %c9_i32_98 = arith.constant 9 : i32
    %172 = tpu.dynamic_rotate %170 by %c9_i32_98 dim 0 : vector<64x64xf32>, i32 -> vector<64x64xf32>
    %c0_99 = arith.constant 0 : index
    %c0_100 = arith.constant 0 : index
    %c0_101 = arith.constant 0 : index
    %173 = vector.load %arg3[%c0_99, %c0_100, %c0_101] : memref<9x64x1xf32, #tpu.memory_space<vmem>>, vector<1x64x1xf32>
    %174 = vector.shape_cast %173 : vector<1x64x1xf32> to vector<64x1xf32>
    %175 = vector.broadcast %174 : vector<64x1xf32> to vector<64x64xf32>
    %176 = arith.mulf %172, %175 : vector<64x64xf32>
    %177 = arith.truncf %176 : vector<64x64xf32> to vector<64x64xbf16>
    %c0_102 = arith.constant 0 : index
    %c0_103 = arith.constant 0 : index
    %c0_104 = arith.constant 0 : index
    %178 = vector.load %arg12[%c0_102, %c0_103, %c0_104] : memref<9x64x64xbf16, #tpu.memory_space<vmem>>, vector<1x64x64xbf16>
    %179 = vector.shape_cast %178 : vector<1x64x64xbf16> to vector<64x64xbf16>
    %cst_105 = arith.constant dense<0.000000e+00> : vector<64x64xf32>
    %180 = tpu.matmul %177, %179, %cst_105 {dimension_numbers = #tpu.dot_dimension_numbers<[1], [0], [0], [1], [0, 0, 1, 1], [], []>} : vector<64x64xbf16>, vector<64x64xbf16>, vector<64x64xf32> -> vector<64x64xf32>
    %c8_i32_106 = arith.constant 8 : i32
    %181 = tpu.dynamic_rotate %170 by %c8_i32_106 dim 0 : vector<64x64xf32>, i32 -> vector<64x64xf32>
    %c1_107 = arith.constant 1 : index
    %c0_108 = arith.constant 0 : index
    %c0_109 = arith.constant 0 : index
    %182 = vector.load %arg3[%c1_107, %c0_108, %c0_109] : memref<9x64x1xf32, #tpu.memory_space<vmem>>, vector<1x64x1xf32>
    %183 = vector.shape_cast %182 : vector<1x64x1xf32> to vector<64x1xf32>
    %184 = vector.broadcast %183 : vector<64x1xf32> to vector<64x64xf32>
    %185 = arith.mulf %181, %184 : vector<64x64xf32>
    %186 = arith.truncf %185 : vector<64x64xf32> to vector<64x64xbf16>
    %c1_110 = arith.constant 1 : index
    %c0_111 = arith.constant 0 : index
    %c0_112 = arith.constant 0 : index
    %187 = vector.load %arg12[%c1_110, %c0_111, %c0_112] : memref<9x64x64xbf16, #tpu.memory_space<vmem>>, vector<1x64x64xbf16>
    %188 = vector.shape_cast %187 : vector<1x64x64xbf16> to vector<64x64xbf16>
    %cst_113 = arith.constant dense<0.000000e+00> : vector<64x64xf32>
    %189 = tpu.matmul %186, %188, %cst_113 {dimension_numbers = #tpu.dot_dimension_numbers<[1], [0], [0], [1], [0, 0, 1, 1], [], []>} : vector<64x64xbf16>, vector<64x64xbf16>, vector<64x64xf32> -> vector<64x64xf32>
    %c7_i32_114 = arith.constant 7 : i32
    %190 = tpu.dynamic_rotate %170 by %c7_i32_114 dim 0 : vector<64x64xf32>, i32 -> vector<64x64xf32>
    %c2_115 = arith.constant 2 : index
    %c0_116 = arith.constant 0 : index
    %c0_117 = arith.constant 0 : index
    %191 = vector.load %arg3[%c2_115, %c0_116, %c0_117] : memref<9x64x1xf32, #tpu.memory_space<vmem>>, vector<1x64x1xf32>
    %192 = vector.shape_cast %191 : vector<1x64x1xf32> to vector<64x1xf32>
    %193 = vector.broadcast %192 : vector<64x1xf32> to vector<64x64xf32>
    %194 = arith.mulf %190, %193 : vector<64x64xf32>
    %195 = arith.truncf %194 : vector<64x64xf32> to vector<64x64xbf16>
    %c2_118 = arith.constant 2 : index
    %c0_119 = arith.constant 0 : index
    %c0_120 = arith.constant 0 : index
    %196 = vector.load %arg12[%c2_118, %c0_119, %c0_120] : memref<9x64x64xbf16, #tpu.memory_space<vmem>>, vector<1x64x64xbf16>
    %197 = vector.shape_cast %196 : vector<1x64x64xbf16> to vector<64x64xbf16>
    %cst_121 = arith.constant dense<0.000000e+00> : vector<64x64xf32>
    %198 = tpu.matmul %195, %197, %cst_121 {dimension_numbers = #tpu.dot_dimension_numbers<[1], [0], [0], [1], [0, 0, 1, 1], [], []>} : vector<64x64xbf16>, vector<64x64xbf16>, vector<64x64xf32> -> vector<64x64xf32>
    %c1_i32_122 = arith.constant 1 : i32
    %199 = tpu.dynamic_rotate %170 by %c1_i32_122 dim 0 : vector<64x64xf32>, i32 -> vector<64x64xf32>
    %c3_123 = arith.constant 3 : index
    %c0_124 = arith.constant 0 : index
    %c0_125 = arith.constant 0 : index
    %200 = vector.load %arg3[%c3_123, %c0_124, %c0_125] : memref<9x64x1xf32, #tpu.memory_space<vmem>>, vector<1x64x1xf32>
    %201 = vector.shape_cast %200 : vector<1x64x1xf32> to vector<64x1xf32>
    %202 = vector.broadcast %201 : vector<64x1xf32> to vector<64x64xf32>
    %203 = arith.mulf %199, %202 : vector<64x64xf32>
    %204 = arith.truncf %203 : vector<64x64xf32> to vector<64x64xbf16>
    %c3_126 = arith.constant 3 : index
    %c0_127 = arith.constant 0 : index
    %c0_128 = arith.constant 0 : index
    %205 = vector.load %arg12[%c3_126, %c0_127, %c0_128] : memref<9x64x64xbf16, #tpu.memory_space<vmem>>, vector<1x64x64xbf16>
    %206 = vector.shape_cast %205 : vector<1x64x64xbf16> to vector<64x64xbf16>
    %cst_129 = arith.constant dense<0.000000e+00> : vector<64x64xf32>
    %207 = tpu.matmul %204, %206, %cst_129 {dimension_numbers = #tpu.dot_dimension_numbers<[1], [0], [0], [1], [0, 0, 1, 1], [], []>} : vector<64x64xbf16>, vector<64x64xbf16>, vector<64x64xf32> -> vector<64x64xf32>
    %c4_130 = arith.constant 4 : index
    %c0_131 = arith.constant 0 : index
    %c0_132 = arith.constant 0 : index
    %208 = vector.load %arg12[%c4_130, %c0_131, %c0_132] : memref<9x64x64xbf16, #tpu.memory_space<vmem>>, vector<1x64x64xbf16>
    %209 = vector.shape_cast %208 : vector<1x64x64xbf16> to vector<64x64xbf16>
    %cst_133 = arith.constant dense<0.000000e+00> : vector<64x64xf32>
    %210 = tpu.matmul %171, %209, %cst_133 {dimension_numbers = #tpu.dot_dimension_numbers<[1], [0], [0], [1], [0, 0, 1, 1], [], []>} : vector<64x64xbf16>, vector<64x64xbf16>, vector<64x64xf32> -> vector<64x64xf32>
    %c63_i32_134 = arith.constant 63 : i32
    %211 = tpu.dynamic_rotate %170 by %c63_i32_134 dim 0 : vector<64x64xf32>, i32 -> vector<64x64xf32>
    %c5_135 = arith.constant 5 : index
    %c0_136 = arith.constant 0 : index
    %c0_137 = arith.constant 0 : index
    %212 = vector.load %arg3[%c5_135, %c0_136, %c0_137] : memref<9x64x1xf32, #tpu.memory_space<vmem>>, vector<1x64x1xf32>
    %213 = vector.shape_cast %212 : vector<1x64x1xf32> to vector<64x1xf32>
    %214 = vector.broadcast %213 : vector<64x1xf32> to vector<64x64xf32>
    %215 = arith.mulf %211, %214 : vector<64x64xf32>
    %216 = arith.truncf %215 : vector<64x64xf32> to vector<64x64xbf16>
    %c5_138 = arith.constant 5 : index
    %c0_139 = arith.constant 0 : index
    %c0_140 = arith.constant 0 : index
    %217 = vector.load %arg12[%c5_138, %c0_139, %c0_140] : memref<9x64x64xbf16, #tpu.memory_space<vmem>>, vector<1x64x64xbf16>
    %218 = vector.shape_cast %217 : vector<1x64x64xbf16> to vector<64x64xbf16>
    %cst_141 = arith.constant dense<0.000000e+00> : vector<64x64xf32>
    %219 = tpu.matmul %216, %218, %cst_141 {dimension_numbers = #tpu.dot_dimension_numbers<[1], [0], [0], [1], [0, 0, 1, 1], [], []>} : vector<64x64xbf16>, vector<64x64xbf16>, vector<64x64xf32> -> vector<64x64xf32>
    %c57_i32_142 = arith.constant 57 : i32
    %220 = tpu.dynamic_rotate %170 by %c57_i32_142 dim 0 : vector<64x64xf32>, i32 -> vector<64x64xf32>
    %c6_143 = arith.constant 6 : index
    %c0_144 = arith.constant 0 : index
    %c0_145 = arith.constant 0 : index
    %221 = vector.load %arg3[%c6_143, %c0_144, %c0_145] : memref<9x64x1xf32, #tpu.memory_space<vmem>>, vector<1x64x1xf32>
    %222 = vector.shape_cast %221 : vector<1x64x1xf32> to vector<64x1xf32>
    %223 = vector.broadcast %222 : vector<64x1xf32> to vector<64x64xf32>
    %224 = arith.mulf %220, %223 : vector<64x64xf32>
    %225 = arith.truncf %224 : vector<64x64xf32> to vector<64x64xbf16>
    %c6_146 = arith.constant 6 : index
    %c0_147 = arith.constant 0 : index
    %c0_148 = arith.constant 0 : index
    %226 = vector.load %arg12[%c6_146, %c0_147, %c0_148] : memref<9x64x64xbf16, #tpu.memory_space<vmem>>, vector<1x64x64xbf16>
    %227 = vector.shape_cast %226 : vector<1x64x64xbf16> to vector<64x64xbf16>
    %cst_149 = arith.constant dense<0.000000e+00> : vector<64x64xf32>
    %228 = tpu.matmul %225, %227, %cst_149 {dimension_numbers = #tpu.dot_dimension_numbers<[1], [0], [0], [1], [0, 0, 1, 1], [], []>} : vector<64x64xbf16>, vector<64x64xbf16>, vector<64x64xf32> -> vector<64x64xf32>
    %c56_i32_150 = arith.constant 56 : i32
    %229 = tpu.dynamic_rotate %170 by %c56_i32_150 dim 0 : vector<64x64xf32>, i32 -> vector<64x64xf32>
    %c7_151 = arith.constant 7 : index
    %c0_152 = arith.constant 0 : index
    %c0_153 = arith.constant 0 : index
    %230 = vector.load %arg3[%c7_151, %c0_152, %c0_153] : memref<9x64x1xf32, #tpu.memory_space<vmem>>, vector<1x64x1xf32>
    %231 = vector.shape_cast %230 : vector<1x64x1xf32> to vector<64x1xf32>
    %232 = vector.broadcast %231 : vector<64x1xf32> to vector<64x64xf32>
    %233 = arith.mulf %229, %232 : vector<64x64xf32>
    %234 = arith.truncf %233 : vector<64x64xf32> to vector<64x64xbf16>
    %c7_154 = arith.constant 7 : index
    %c0_155 = arith.constant 0 : index
    %c0_156 = arith.constant 0 : index
    %235 = vector.load %arg12[%c7_154, %c0_155, %c0_156] : memref<9x64x64xbf16, #tpu.memory_space<vmem>>, vector<1x64x64xbf16>
    %236 = vector.shape_cast %235 : vector<1x64x64xbf16> to vector<64x64xbf16>
    %cst_157 = arith.constant dense<0.000000e+00> : vector<64x64xf32>
    %237 = tpu.matmul %234, %236, %cst_157 {dimension_numbers = #tpu.dot_dimension_numbers<[1], [0], [0], [1], [0, 0, 1, 1], [], []>} : vector<64x64xbf16>, vector<64x64xbf16>, vector<64x64xf32> -> vector<64x64xf32>
    %c55_i32_158 = arith.constant 55 : i32
    %238 = tpu.dynamic_rotate %170 by %c55_i32_158 dim 0 : vector<64x64xf32>, i32 -> vector<64x64xf32>
    %c8_159 = arith.constant 8 : index
    %c0_160 = arith.constant 0 : index
    %c0_161 = arith.constant 0 : index
    %239 = vector.load %arg3[%c8_159, %c0_160, %c0_161] : memref<9x64x1xf32, #tpu.memory_space<vmem>>, vector<1x64x1xf32>
    %240 = vector.shape_cast %239 : vector<1x64x1xf32> to vector<64x1xf32>
    %241 = vector.broadcast %240 : vector<64x1xf32> to vector<64x64xf32>
    %242 = arith.mulf %238, %241 : vector<64x64xf32>
    %243 = arith.truncf %242 : vector<64x64xf32> to vector<64x64xbf16>
    %c8_162 = arith.constant 8 : index
    %c0_163 = arith.constant 0 : index
    %c0_164 = arith.constant 0 : index
    %244 = vector.load %arg12[%c8_162, %c0_163, %c0_164] : memref<9x64x64xbf16, #tpu.memory_space<vmem>>, vector<1x64x64xbf16>
    %245 = vector.shape_cast %244 : vector<1x64x64xbf16> to vector<64x64xbf16>
    %cst_165 = arith.constant dense<0.000000e+00> : vector<64x64xf32>
    %246 = tpu.matmul %243, %245, %cst_165 {dimension_numbers = #tpu.dot_dimension_numbers<[1], [0], [0], [1], [0, 0, 1, 1], [], []>} : vector<64x64xbf16>, vector<64x64xbf16>, vector<64x64xf32> -> vector<64x64xf32>
    %247 = arith.addf %180, %189 : vector<64x64xf32>
    %248 = arith.addf %198, %207 : vector<64x64xf32>
    %249 = arith.addf %210, %219 : vector<64x64xf32>
    %250 = arith.addf %228, %237 : vector<64x64xf32>
    %251 = arith.addf %247, %248 : vector<64x64xf32>
    %252 = arith.addf %249, %250 : vector<64x64xf32>
    %253 = arith.addf %251, %252 : vector<64x64xf32>
    %254 = arith.addf %253, %246 : vector<64x64xf32>
    %255 = arith.truncf %1 : vector<64x32xf32> to vector<64x32xbf16>
    %c0_166 = arith.constant 0 : index
    %c0_167 = arith.constant 0 : index
    %256 = vector.load %arg14[%c0_166, %c0_167] : memref<32x64xbf16, #tpu.memory_space<vmem>>, vector<32x64xbf16>
    %cst_168 = arith.constant dense<0.000000e+00> : vector<64x64xf32>
    %257 = tpu.matmul %255, %256, %cst_168 {dimension_numbers = #tpu.dot_dimension_numbers<[1], [0], [0], [1], [0, 0, 1, 1], [], []>} : vector<64x32xbf16>, vector<32x64xbf16>, vector<64x64xf32> -> vector<64x64xf32>
    %c0_169 = arith.constant 0 : index
    %c0_170 = arith.constant 0 : index
    %258 = vector.load %arg15[%c0_169, %c0_170] : memref<1x64xf32, #tpu.memory_space<vmem>>, vector<1x64xf32>
    %259 = vector.broadcast %258 : vector<1x64xf32> to vector<64x64xf32>
    %260 = arith.addf %257, %259 : vector<64x64xf32>
    %c0_171 = arith.constant 0 : index
    %c0_172 = arith.constant 0 : index
    %261 = vector.load %arg13[%c0_171, %c0_172] : memref<1x64xf32, #tpu.memory_space<vmem>>, vector<1x64xf32>
    %262 = vector.broadcast %261 : vector<1x64xf32> to vector<64x64xf32>
    %263 = arith.addf %254, %262 : vector<64x64xf32>
    %264 = arith.addf %263, %260 : vector<64x64xf32>
    %c0_173 = arith.constant 0 : index
    %c0_174 = arith.constant 0 : index
    %c0_175 = arith.constant 0 : index
    %265 = vector.load %arg20[%c0_173, %c0_174, %c0_175] : memref<1x64x64xf32, #tpu.memory_space<vmem>>, vector<1x64x64xf32>
    %266 = vector.shape_cast %265 : vector<1x64x64xf32> to vector<64x64xf32>
    %267 = vector.shape_cast %264 : vector<64x64xf32> to vector<1x64x64xf32>
    tpu.vector_store %arg20[%c0_173, %c0_174, %c0_175], %267 {strides = array<i32>} : memref<1x64x64xf32, #tpu.memory_space<vmem>>, vector<1x64x64xf32>,
    return
  }
  func.func @transform_0(%arg0: i32) -> (i32, i32, i32) {
    %c0_i32 = arith.constant 0 : i32
    %c0_i32_0 = arith.constant 0 : i32
    %c0_i32_1 = arith.constant 0 : i32
    return %arg0, %c0_i32, %c0_i32_0 : i32, i32, i32
  }
  func.func @transform_1(%arg0: i32) -> (i32, i32, i32) {
    %c0_i32 = arith.constant 0 : i32
    %c0_i32_0 = arith.constant 0 : i32
    %c0_i32_1 = arith.constant 0 : i32
    return %arg0, %c0_i32, %c0_i32_0 : i32, i32, i32
  }
  func.func @transform_2(%arg0: i32) -> (i32, i32, i32) {
    %c0_i32 = arith.constant 0 : i32
    %c0_i32_0 = arith.constant 0 : i32
    %c0_i32_1 = arith.constant 0 : i32
    %c0_i32_2 = arith.constant 0 : i32
    return %c0_i32, %c0_i32_0, %c0_i32_1 : i32, i32, i32
  }
  func.func @transform_3(%arg0: i32) -> (i32, i32) {
    %c0_i32 = arith.constant 0 : i32
    %c0_i32_0 = arith.constant 0 : i32
    %c0_i32_1 = arith.constant 0 : i32
    return %c0_i32, %c0_i32_0 : i32, i32
  }
  func.func @transform_4(%arg0: i32) -> (i32, i32) {
    %c0_i32 = arith.constant 0 : i32
    %c0_i32_0 = arith.constant 0 : i32
    %c0_i32_1 = arith.constant 0 : i32
    return %c0_i32, %c0_i32_0 : i32, i32
  }
  func.func @transform_5(%arg0: i32) -> (i32, i32, i32) {
    %c0_i32 = arith.constant 0 : i32
    %c0_i32_0 = arith.constant 0 : i32
    %c0_i32_1 = arith.constant 0 : i32
    %c0_i32_2 = arith.constant 0 : i32
    return %c0_i32, %c0_i32_0, %c0_i32_1 : i32, i32, i32
  }
  func.func @transform_6(%arg0: i32) -> (i32, i32) {
    %c0_i32 = arith.constant 0 : i32
    %c0_i32_0 = arith.constant 0 : i32
    %c0_i32_1 = arith.constant 0 : i32
    return %c0_i32, %c0_i32_0 : i32, i32
  }
  func.func @transform_7(%arg0: i32) -> (i32, i32) {
    %c0_i32 = arith.constant 0 : i32
    %c0_i32_0 = arith.constant 0 : i32
    %c0_i32_1 = arith.constant 0 : i32
    return %c0_i32, %c0_i32_0 : i32, i32
  }
  func.func @transform_8(%arg0: i32) -> (i32, i32) {
    %c0_i32 = arith.constant 0 : i32
    %c0_i32_0 = arith.constant 0 : i32
    %c0_i32_1 = arith.constant 0 : i32
    return %c0_i32, %c0_i32_0 : i32, i32
  }
  func.func @transform_9(%arg0: i32) -> (i32, i32) {
    %c0_i32 = arith.constant 0 : i32
    %c0_i32_0 = arith.constant 0 : i32
    %c0_i32_1 = arith.constant 0 : i32
    return %c0_i32, %c0_i32_0 : i32, i32
  }
  func.func @transform_10(%arg0: i32) -> (i32, i32) {
    %c0_i32 = arith.constant 0 : i32
    %c0_i32_0 = arith.constant 0 : i32
    %c0_i32_1 = arith.constant 0 : i32
    return %c0_i32, %c0_i32_0 : i32, i32
  }
  func.func @transform_11(%arg0: i32) -> (i32, i32, i32) {
    %c0_i32 = arith.constant 0 : i32
    %c0_i32_0 = arith.constant 0 : i32
    %c0_i32_1 = arith.constant 0 : i32
    %c0_i32_2 = arith.constant 0 : i32
    return %c0_i32, %c0_i32_0, %c0_i32_1 : i32, i32, i32
  }
  func.func @transform_12(%arg0: i32) -> (i32, i32) {
    %c0_i32 = arith.constant 0 : i32
    %c0_i32_0 = arith.constant 0 : i32
    %c0_i32_1 = arith.constant 0 : i32
    return %c0_i32, %c0_i32_0 : i32, i32
  }
  func.func @transform_13(%arg0: i32) -> (i32, i32) {
    %c0_i32 = arith.constant 0 : i32
    %c0_i32_0 = arith.constant 0 : i32
    %c0_i32_1 = arith.constant 0 : i32
    return %c0_i32, %c0_i32_0 : i32, i32
  }
  func.func @transform_14(%arg0: i32) -> (i32, i32) {
    %c0_i32 = arith.constant 0 : i32
    %c0_i32_0 = arith.constant 0 : i32
    %c0_i32_1 = arith.constant 0 : i32
    return %c0_i32, %c0_i32_0 : i32, i32
  }
  func.func @transform_15(%arg0: i32) -> (i32, i32) {
    %c0_i32 = arith.constant 0 : i32
    %c0_i32_0 = arith.constant 0 : i32
    %c0_i32_1 = arith.constant 0 : i32
    return %c0_i32, %c0_i32_0 : i32, i32
  }
  func.func @transform_16(%arg0: i32) -> (i32, i32) {
    %c0_i32 = arith.constant 0 : i32
    %c0_i32_0 = arith.constant 0 : i32
    %c0_i32_1 = arith.constant 0 : i32
    return %c0_i32, %c0_i32_0 : i32, i32
  }
  func.func @transform_17(%arg0: i32) -> (i32, i32) {
    %c0_i32 = arith.constant 0 : i32
    %c0_i32_0 = arith.constant 0 : i32
    %c0_i32_1 = arith.constant 0 : i32
    return %c0_i32, %c0_i32_0 : i32, i32
  }
  func.func @transform_18(%arg0: i32) -> (i32, i32) {
    %c0_i32 = arith.constant 0 : i32
    %c0_i32_0 = arith.constant 0 : i32
    %c0_i32_1 = arith.constant 0 : i32
    return %c0_i32, %c0_i32_0 : i32, i32
  }
  func.func @transform_19(%arg0: i32) -> (i32, i32, i32) {
    %c0_i32 = arith.constant 0 : i32
    %c0_i32_0 = arith.constant 0 : i32
    %c0_i32_1 = arith.constant 0 : i32
    return %arg0, %c0_i32, %c0_i32_0 : i32, i32, i32
  }
}

module attributes {stable_mosaic.version = 11 : i64} {
  func.func @resblock_kernel(%arg0: i32, %arg1: memref<1x64x32xf32, #tpu.memory_space<vmem>>, %arg2: memref<1x1x64xf32, #tpu.memory_space<vmem>>, %arg3: memref<9x64x64xbf16, #tpu.memory_space<vmem>>, %arg4: memref<1x32xf32, #tpu.memory_space<vmem>>, %arg5: memref<1x32xf32, #tpu.memory_space<vmem>>, %arg6: memref<9x32x64xbf16, #tpu.memory_space<vmem>>, %arg7: memref<1x64xf32, #tpu.memory_space<vmem>>, %arg8: memref<64x64xbf16, #tpu.memory_space<vmem>>, %arg9: memref<1x64xf32, #tpu.memory_space<vmem>>, %arg10: memref<1x64xf32, #tpu.memory_space<vmem>>, %arg11: memref<1x64xf32, #tpu.memory_space<vmem>>, %arg12: memref<9x64x64xbf16, #tpu.memory_space<vmem>>, %arg13: memref<1x64xf32, #tpu.memory_space<vmem>>, %arg14: memref<32x64xbf16, #tpu.memory_space<vmem>>, %arg15: memref<1x64xf32, #tpu.memory_space<vmem>>, %arg16: memref<1x1xf32, #tpu.memory_space<vmem>>, %arg17: memref<1x1xf32, #tpu.memory_space<vmem>>, %arg18: memref<64x32xf32, #tpu.memory_space<vmem>>, %arg19: memref<32x64xf32, #tpu.memory_space<vmem>>, %arg20: memref<1x64x64xf32, #tpu.memory_space<vmem>>) attributes {dimension_semantics = [#tpu.dimension_semantics<parallel>], iteration_bounds = array<i64: 2>, scalar_prefetch = 0 : i64, scratch_operands = 0 : i64, tpu.core_type = #tpu.core_type<tc>, window_params = [{transform_indices = @transform_0, window_bounds = array<i64: 1, 64, 32>}, {transform_indices = @transform_1, window_bounds = array<i64: 1, 1, 64>}, {pipeline_mode = #tpu.pipeline_mode<synchronous>, transform_indices = @transform_2, window_bounds = array<i64: 9, 64, 64>}, {pipeline_mode = #tpu.pipeline_mode<synchronous>, transform_indices = @transform_3, window_bounds = array<i64: 1, 32>}, {pipeline_mode = #tpu.pipeline_mode<synchronous>, transform_indices = @transform_4, window_bounds = array<i64: 1, 32>}, {pipeline_mode = #tpu.pipeline_mode<synchronous>, transform_indices = @transform_5, window_bounds = array<i64: 9, 32, 64>}, {pipeline_mode = #tpu.pipeline_mode<synchronous>, transform_indices = @transform_6, window_bounds = array<i64: 1, 64>}, {pipeline_mode = #tpu.pipeline_mode<synchronous>, transform_indices = @transform_7, window_bounds = array<i64: 64, 64>}, {pipeline_mode = #tpu.pipeline_mode<synchronous>, transform_indices = @transform_8, window_bounds = array<i64: 1, 64>}, {pipeline_mode = #tpu.pipeline_mode<synchronous>, transform_indices = @transform_9, window_bounds = array<i64: 1, 64>}, {pipeline_mode = #tpu.pipeline_mode<synchronous>, transform_indices = @transform_10, window_bounds = array<i64: 1, 64>}, {pipeline_mode = #tpu.pipeline_mode<synchronous>, transform_indices = @transform_11, window_bounds = array<i64: 9, 64, 64>}, {pipeline_mode = #tpu.pipeline_mode<synchronous>, transform_indices = @transform_12, window_bounds = array<i64: 1, 64>}, {pipeline_mode = #tpu.pipeline_mode<synchronous>, transform_indices = @transform_13, window_bounds = array<i64: 32, 64>}, {pipeline_mode = #tpu.pipeline_mode<synchronous>, transform_indices = @transform_14, window_bounds = array<i64: 1, 64>}, {pipeline_mode = #tpu.pipeline_mode<synchronous>, transform_indices = @transform_15, window_bounds = array<i64: 1, 1>}, {pipeline_mode = #tpu.pipeline_mode<synchronous>, transform_indices = @transform_16, window_bounds = array<i64: 1, 1>}, {pipeline_mode = #tpu.pipeline_mode<synchronous>, transform_indices = @transform_17, window_bounds = array<i64: 64, 32>}, {pipeline_mode = #tpu.pipeline_mode<synchronous>, transform_indices = @transform_18, window_bounds = array<i64: 32, 64>}, {transform_indices = @transform_19, window_bounds = array<i64: 1, 64, 64>}]} {
    %c0 = arith.constant 0 : index
    %c0_0 = arith.constant 0 : index
    %c0_1 = arith.constant 0 : index
    %0 = vector.load %arg1[%c0, %c0_0, %c0_1] : memref<1x64x32xf32, #tpu.memory_space<vmem>>, vector<1x64x32xf32>
    %1 = vector.shape_cast %0 : vector<1x64x32xf32> to vector<64x32xf32>
    %c0_2 = arith.constant 0 : index
    %c0_3 = arith.constant 0 : index
    %2 = vector.load %arg4[%c0_2, %c0_3] : memref<1x32xf32, #tpu.memory_space<vmem>>, vector<1x32xf32>
    %c0_4 = arith.constant 0 : index
    %c0_5 = arith.constant 0 : index
    %3 = vector.load %arg5[%c0_4, %c0_5] : memref<1x32xf32, #tpu.memory_space<vmem>>, vector<1x32xf32>
    %cst = arith.constant dense<0.000000e+00> : vector<32xf32>
    %4 = vector.multi_reduction <add>, %1, %cst [0] : vector<64x32xf32> to vector<32xf32>
    %5 = vector.shape_cast %4 : vector<32xf32> to vector<1x32xf32>
    %cst_6 = arith.constant 1.562500e-02 : f32
    %6 = vector.broadcast %cst_6 : f32 to vector<1x32xf32>
    %7 = arith.mulf %5, %6 : vector<1x32xf32>
    %8 = vector.broadcast %7 : vector<1x32xf32> to vector<64x32xf32>
    %9 = arith.subf %1, %8 : vector<64x32xf32>
    %10 = arith.mulf %9, %9 : vector<64x32xf32>
    %cst_7 = arith.constant dense<0.000000e+00> : vector<32xf32>
    %11 = vector.multi_reduction <add>, %10, %cst_7 [0] : vector<64x32xf32> to vector<32xf32>
    %12 = vector.shape_cast %11 : vector<32xf32> to vector<1x32xf32>
    %cst_8 = arith.constant 1.562500e-02 : f32
    %13 = vector.broadcast %cst_8 : f32 to vector<1x32xf32>
    %14 = arith.mulf %12, %13 : vector<1x32xf32>
    %cst_9 = arith.constant 9.99999974E-6 : f32
    %15 = vector.broadcast %cst_9 : f32 to vector<1x32xf32>
    %16 = arith.addf %14, %15 : vector<1x32xf32>
    %17 = math.rsqrt %16 : vector<1x32xf32>
    %18 = vector.broadcast %17 : vector<1x32xf32> to vector<64x32xf32>
    %19 = arith.mulf %9, %18 : vector<64x32xf32>
    %20 = vector.broadcast %2 : vector<1x32xf32> to vector<64x32xf32>
    %21 = arith.mulf %19, %20 : vector<64x32xf32>
    %22 = vector.broadcast %3 : vector<1x32xf32> to vector<64x32xf32>
    %23 = arith.addf %21, %22 : vector<64x32xf32>
    %cst_10 = arith.constant 0.000000e+00 : f32
    %24 = vector.broadcast %cst_10 : f32 to vector<64x32xf32>
    %25 = arith.subf %24, %23 : vector<64x32xf32>
    %26 = math.exp %25 : vector<64x32xf32>
    %cst_11 = arith.constant 1.000000e+00 : f32
    %27 = vector.broadcast %cst_11 : f32 to vector<64x32xf32>
    %28 = arith.addf %27, %26 : vector<64x32xf32>
    %cst_12 = arith.constant 1.000000e+00 : f32
    %29 = vector.broadcast %cst_12 : f32 to vector<64x32xf32>
    %30 = arith.divf %29, %28 : vector<64x32xf32>
    %31 = arith.mulf %23, %30 : vector<64x32xf32>
    %32 = arith.truncf %31 : vector<64x32xf32> to vector<64x32xbf16>
    %c0_13 = arith.constant 0 : index
    %c0_14 = arith.constant 0 : index
    %c0_15 = arith.constant 0 : index
    %33 = vector.load %arg3[%c0_13, %c0_14, %c0_15] : memref<9x64x64xbf16, #tpu.memory_space<vmem>>, vector<1x64x64xbf16>
    %34 = vector.shape_cast %33 : vector<1x64x64xbf16> to vector<64x64xbf16>
    %cst_16 = arith.constant dense<0.000000e+00> : vector<64x32xf32>
    %35 = tpu.matmul %34, %32, %cst_16 {dimension_numbers = #tpu.dot_dimension_numbers<[1], [0], [0], [1], [0, 0, 1, 1], [], []>} : vector<64x64xbf16>, vector<64x32xbf16>, vector<64x32xf32> -> vector<64x32xf32>
    %36 = arith.truncf %35 : vector<64x32xf32> to vector<64x32xbf16>
    %c0_17 = arith.constant 0 : index
    %c0_18 = arith.constant 0 : index
    %c0_19 = arith.constant 0 : index
    %37 = vector.load %arg6[%c0_17, %c0_18, %c0_19] : memref<9x32x64xbf16, #tpu.memory_space<vmem>>, vector<1x32x64xbf16>
    %38 = vector.shape_cast %37 : vector<1x32x64xbf16> to vector<32x64xbf16>
    %cst_20 = arith.constant dense<0.000000e+00> : vector<64x64xf32>
    %39 = tpu.matmul %36, %38, %cst_20 {dimension_numbers = #tpu.dot_dimension_numbers<[1], [0], [0], [1], [0, 0, 1, 1], [], []>} : vector<64x32xbf16>, vector<32x64xbf16>, vector<64x64xf32> -> vector<64x64xf32>
    %c1 = arith.constant 1 : index
    %c0_21 = arith.constant 0 : index
    %c0_22 = arith.constant 0 : index
    %40 = vector.load %arg3[%c1, %c0_21, %c0_22] : memref<9x64x64xbf16, #tpu.memory_space<vmem>>, vector<1x64x64xbf16>
    %41 = vector.shape_cast %40 : vector<1x64x64xbf16> to vector<64x64xbf16>
    %cst_23 = arith.constant dense<0.000000e+00> : vector<64x32xf32>
    %42 = tpu.matmul %41, %32, %cst_23 {dimension_numbers = #tpu.dot_dimension_numbers<[1], [0], [0], [1], [0, 0, 1, 1], [], []>} : vector<64x64xbf16>, vector<64x32xbf16>, vector<64x32xf32> -> vector<64x32xf32>
    %43 = arith.truncf %42 : vector<64x32xf32> to vector<64x32xbf16>
    %c1_24 = arith.constant 1 : index
    %c0_25 = arith.constant 0 : index
    %c0_26 = arith.constant 0 : index
    %44 = vector.load %arg6[%c1_24, %c0_25, %c0_26] : memref<9x32x64xbf16, #tpu.memory_space<vmem>>, vector<1x32x64xbf16>
    %45 = vector.shape_cast %44 : vector<1x32x64xbf16> to vector<32x64xbf16>
    %cst_27 = arith.constant dense<0.000000e+00> : vector<64x64xf32>
    %46 = tpu.matmul %43, %45, %cst_27 {dimension_numbers = #tpu.dot_dimension_numbers<[1], [0], [0], [1], [0, 0, 1, 1], [], []>} : vector<64x32xbf16>, vector<32x64xbf16>, vector<64x64xf32> -> vector<64x64xf32>
    %c2 = arith.constant 2 : index
    %c0_28 = arith.constant 0 : index
    %c0_29 = arith.constant 0 : index
    %47 = vector.load %arg3[%c2, %c0_28, %c0_29] : memref<9x64x64xbf16, #tpu.memory_space<vmem>>, vector<1x64x64xbf16>
    %48 = vector.shape_cast %47 : vector<1x64x64xbf16> to vector<64x64xbf16>
    %cst_30 = arith.constant dense<0.000000e+00> : vector<64x32xf32>
    %49 = tpu.matmul %48, %32, %cst_30 {dimension_numbers = #tpu.dot_dimension_numbers<[1], [0], [0], [1], [0, 0, 1, 1], [], []>} : vector<64x64xbf16>, vector<64x32xbf16>, vector<64x32xf32> -> vector<64x32xf32>
    %50 = arith.truncf %49 : vector<64x32xf32> to vector<64x32xbf16>
    %c2_31 = arith.constant 2 : index
    %c0_32 = arith.constant 0 : index
    %c0_33 = arith.constant 0 : index
    %51 = vector.load %arg6[%c2_31, %c0_32, %c0_33] : memref<9x32x64xbf16, #tpu.memory_space<vmem>>, vector<1x32x64xbf16>
    %52 = vector.shape_cast %51 : vector<1x32x64xbf16> to vector<32x64xbf16>
    %cst_34 = arith.constant dense<0.000000e+00> : vector<64x64xf32>
    %53 = tpu.matmul %50, %52, %cst_34 {dimension_numbers = #tpu.dot_dimension_numbers<[1], [0], [0], [1], [0, 0, 1, 1], [], []>} : vector<64x32xbf16>, vector<32x64xbf16>, vector<64x64xf32> -> vector<64x64xf32>
    %c3 = arith.constant 3 : index
    %c0_35 = arith.constant 0 : index
    %c0_36 = arith.constant 0 : index
    %54 = vector.load %arg3[%c3, %c0_35, %c0_36] : memref<9x64x64xbf16, #tpu.memory_space<vmem>>, vector<1x64x64xbf16>
    %55 = vector.shape_cast %54 : vector<1x64x64xbf16> to vector<64x64xbf16>
    %cst_37 = arith.constant dense<0.000000e+00> : vector<64x32xf32>
    %56 = tpu.matmul %55, %32, %cst_37 {dimension_numbers = #tpu.dot_dimension_numbers<[1], [0], [0], [1], [0, 0, 1, 1], [], []>} : vector<64x64xbf16>, vector<64x32xbf16>, vector<64x32xf32> -> vector<64x32xf32>
    %57 = arith.truncf %56 : vector<64x32xf32> to vector<64x32xbf16>
    %c3_38 = arith.constant 3 : index
    %c0_39 = arith.constant 0 : index
    %c0_40 = arith.constant 0 : index
    %58 = vector.load %arg6[%c3_38, %c0_39, %c0_40] : memref<9x32x64xbf16, #tpu.memory_space<vmem>>, vector<1x32x64xbf16>
    %59 = vector.shape_cast %58 : vector<1x32x64xbf16> to vector<32x64xbf16>
    %cst_41 = arith.constant dense<0.000000e+00> : vector<64x64xf32>
    %60 = tpu.matmul %57, %59, %cst_41 {dimension_numbers = #tpu.dot_dimension_numbers<[1], [0], [0], [1], [0, 0, 1, 1], [], []>} : vector<64x32xbf16>, vector<32x64xbf16>, vector<64x64xf32> -> vector<64x64xf32>
    %c4 = arith.constant 4 : index
    %c0_42 = arith.constant 0 : index
    %c0_43 = arith.constant 0 : index
    %61 = vector.load %arg3[%c4, %c0_42, %c0_43] : memref<9x64x64xbf16, #tpu.memory_space<vmem>>, vector<1x64x64xbf16>
    %62 = vector.shape_cast %61 : vector<1x64x64xbf16> to vector<64x64xbf16>
    %cst_44 = arith.constant dense<0.000000e+00> : vector<64x32xf32>
    %63 = tpu.matmul %62, %32, %cst_44 {dimension_numbers = #tpu.dot_dimension_numbers<[1], [0], [0], [1], [0, 0, 1, 1], [], []>} : vector<64x64xbf16>, vector<64x32xbf16>, vector<64x32xf32> -> vector<64x32xf32>
    %64 = arith.truncf %63 : vector<64x32xf32> to vector<64x32xbf16>
    %c4_45 = arith.constant 4 : index
    %c0_46 = arith.constant 0 : index
    %c0_47 = arith.constant 0 : index
    %65 = vector.load %arg6[%c4_45, %c0_46, %c0_47] : memref<9x32x64xbf16, #tpu.memory_space<vmem>>, vector<1x32x64xbf16>
    %66 = vector.shape_cast %65 : vector<1x32x64xbf16> to vector<32x64xbf16>
    %cst_48 = arith.constant dense<0.000000e+00> : vector<64x64xf32>
    %67 = tpu.matmul %64, %66, %cst_48 {dimension_numbers = #tpu.dot_dimension_numbers<[1], [0], [0], [1], [0, 0, 1, 1], [], []>} : vector<64x32xbf16>, vector<32x64xbf16>, vector<64x64xf32> -> vector<64x64xf32>
    %c5 = arith.constant 5 : index
    %c0_49 = arith.constant 0 : index
    %c0_50 = arith.constant 0 : index
    %68 = vector.load %arg3[%c5, %c0_49, %c0_50] : memref<9x64x64xbf16, #tpu.memory_space<vmem>>, vector<1x64x64xbf16>
    %69 = vector.shape_cast %68 : vector<1x64x64xbf16> to vector<64x64xbf16>
    %cst_51 = arith.constant dense<0.000000e+00> : vector<64x32xf32>
    %70 = tpu.matmul %69, %32, %cst_51 {dimension_numbers = #tpu.dot_dimension_numbers<[1], [0], [0], [1], [0, 0, 1, 1], [], []>} : vector<64x64xbf16>, vector<64x32xbf16>, vector<64x32xf32> -> vector<64x32xf32>
    %71 = arith.truncf %70 : vector<64x32xf32> to vector<64x32xbf16>
    %c5_52 = arith.constant 5 : index
    %c0_53 = arith.constant 0 : index
    %c0_54 = arith.constant 0 : index
    %72 = vector.load %arg6[%c5_52, %c0_53, %c0_54] : memref<9x32x64xbf16, #tpu.memory_space<vmem>>, vector<1x32x64xbf16>
    %73 = vector.shape_cast %72 : vector<1x32x64xbf16> to vector<32x64xbf16>
    %cst_55 = arith.constant dense<0.000000e+00> : vector<64x64xf32>
    %74 = tpu.matmul %71, %73, %cst_55 {dimension_numbers = #tpu.dot_dimension_numbers<[1], [0], [0], [1], [0, 0, 1, 1], [], []>} : vector<64x32xbf16>, vector<32x64xbf16>, vector<64x64xf32> -> vector<64x64xf32>
    %c6 = arith.constant 6 : index
    %c0_56 = arith.constant 0 : index
    %c0_57 = arith.constant 0 : index
    %75 = vector.load %arg3[%c6, %c0_56, %c0_57] : memref<9x64x64xbf16, #tpu.memory_space<vmem>>, vector<1x64x64xbf16>
    %76 = vector.shape_cast %75 : vector<1x64x64xbf16> to vector<64x64xbf16>
    %cst_58 = arith.constant dense<0.000000e+00> : vector<64x32xf32>
    %77 = tpu.matmul %76, %32, %cst_58 {dimension_numbers = #tpu.dot_dimension_numbers<[1], [0], [0], [1], [0, 0, 1, 1], [], []>} : vector<64x64xbf16>, vector<64x32xbf16>, vector<64x32xf32> -> vector<64x32xf32>
    %78 = arith.truncf %77 : vector<64x32xf32> to vector<64x32xbf16>
    %c6_59 = arith.constant 6 : index
    %c0_60 = arith.constant 0 : index
    %c0_61 = arith.constant 0 : index
    %79 = vector.load %arg6[%c6_59, %c0_60, %c0_61] : memref<9x32x64xbf16, #tpu.memory_space<vmem>>, vector<1x32x64xbf16>
    %80 = vector.shape_cast %79 : vector<1x32x64xbf16> to vector<32x64xbf16>
    %cst_62 = arith.constant dense<0.000000e+00> : vector<64x64xf32>
    %81 = tpu.matmul %78, %80, %cst_62 {dimension_numbers = #tpu.dot_dimension_numbers<[1], [0], [0], [1], [0, 0, 1, 1], [], []>} : vector<64x32xbf16>, vector<32x64xbf16>, vector<64x64xf32> -> vector<64x64xf32>
    %c7 = arith.constant 7 : index
    %c0_63 = arith.constant 0 : index
    %c0_64 = arith.constant 0 : index
    %82 = vector.load %arg3[%c7, %c0_63, %c0_64] : memref<9x64x64xbf16, #tpu.memory_space<vmem>>, vector<1x64x64xbf16>
    %83 = vector.shape_cast %82 : vector<1x64x64xbf16> to vector<64x64xbf16>
    %cst_65 = arith.constant dense<0.000000e+00> : vector<64x32xf32>
    %84 = tpu.matmul %83, %32, %cst_65 {dimension_numbers = #tpu.dot_dimension_numbers<[1], [0], [0], [1], [0, 0, 1, 1], [], []>} : vector<64x64xbf16>, vector<64x32xbf16>, vector<64x32xf32> -> vector<64x32xf32>
    %85 = arith.truncf %84 : vector<64x32xf32> to vector<64x32xbf16>
    %c7_66 = arith.constant 7 : index
    %c0_67 = arith.constant 0 : index
    %c0_68 = arith.constant 0 : index
    %86 = vector.load %arg6[%c7_66, %c0_67, %c0_68] : memref<9x32x64xbf16, #tpu.memory_space<vmem>>, vector<1x32x64xbf16>
    %87 = vector.shape_cast %86 : vector<1x32x64xbf16> to vector<32x64xbf16>
    %cst_69 = arith.constant dense<0.000000e+00> : vector<64x64xf32>
    %88 = tpu.matmul %85, %87, %cst_69 {dimension_numbers = #tpu.dot_dimension_numbers<[1], [0], [0], [1], [0, 0, 1, 1], [], []>} : vector<64x32xbf16>, vector<32x64xbf16>, vector<64x64xf32> -> vector<64x64xf32>
    %c8 = arith.constant 8 : index
    %c0_70 = arith.constant 0 : index
    %c0_71 = arith.constant 0 : index
    %89 = vector.load %arg3[%c8, %c0_70, %c0_71] : memref<9x64x64xbf16, #tpu.memory_space<vmem>>, vector<1x64x64xbf16>
    %90 = vector.shape_cast %89 : vector<1x64x64xbf16> to vector<64x64xbf16>
    %cst_72 = arith.constant dense<0.000000e+00> : vector<64x32xf32>
    %91 = tpu.matmul %90, %32, %cst_72 {dimension_numbers = #tpu.dot_dimension_numbers<[1], [0], [0], [1], [0, 0, 1, 1], [], []>} : vector<64x64xbf16>, vector<64x32xbf16>, vector<64x32xf32> -> vector<64x32xf32>
    %92 = arith.truncf %91 : vector<64x32xf32> to vector<64x32xbf16>
    %c8_73 = arith.constant 8 : index
    %c0_74 = arith.constant 0 : index
    %c0_75 = arith.constant 0 : index
    %93 = vector.load %arg6[%c8_73, %c0_74, %c0_75] : memref<9x32x64xbf16, #tpu.memory_space<vmem>>, vector<1x32x64xbf16>
    %94 = vector.shape_cast %93 : vector<1x32x64xbf16> to vector<32x64xbf16>
    %cst_76 = arith.constant dense<0.000000e+00> : vector<64x64xf32>
    %95 = tpu.matmul %92, %94, %cst_76 {dimension_numbers = #tpu.dot_dimension_numbers<[1], [0], [0], [1], [0, 0, 1, 1], [], []>} : vector<64x32xbf16>, vector<32x64xbf16>, vector<64x64xf32> -> vector<64x64xf32>
    %96 = arith.addf %39, %46 : vector<64x64xf32>
    %97 = arith.addf %53, %60 : vector<64x64xf32>
    %98 = arith.addf %67, %74 : vector<64x64xf32>
    %99 = arith.addf %81, %88 : vector<64x64xf32>
    %100 = arith.addf %96, %97 : vector<64x64xf32>
    %101 = arith.addf %98, %99 : vector<64x64xf32>
    %102 = arith.addf %100, %101 : vector<64x64xf32>
    %103 = arith.addf %102, %95 : vector<64x64xf32>
    %c0_77 = arith.constant 0 : index
    %c0_78 = arith.constant 0 : index
    %c0_79 = arith.constant 0 : index
    %104 = vector.load %arg2[%c0_77, %c0_78, %c0_79] : memref<1x1x64xf32, #tpu.memory_space<vmem>>, vector<1x1x64xf32>
    %105 = vector.shape_cast %104 : vector<1x1x64xf32> to vector<1x64xf32>
    %cst_80 = arith.constant 0.000000e+00 : f32
    %106 = vector.broadcast %cst_80 : f32 to vector<1x64xf32>
    %107 = arith.subf %106, %105 : vector<1x64xf32>
    %108 = math.exp %107 : vector<1x64xf32>
    %cst_81 = arith.constant 1.000000e+00 : f32
    %109 = vector.broadcast %cst_81 : f32 to vector<1x64xf32>
    %110 = arith.addf %109, %108 : vector<1x64xf32>
    %cst_82 = arith.constant 1.000000e+00 : f32
    %111 = vector.broadcast %cst_82 : f32 to vector<1x64xf32>
    %112 = arith.divf %111, %110 : vector<1x64xf32>
    %113 = arith.mulf %105, %112 : vector<1x64xf32>
    %114 = arith.truncf %113 : vector<1x64xf32> to vector<1x64xbf16>
    %c0_83 = arith.constant 0 : index
    %c0_84 = arith.constant 0 : index
    %115 = vector.load %arg8[%c0_83, %c0_84] : memref<64x64xbf16, #tpu.memory_space<vmem>>, vector<64x64xbf16>
    %cst_85 = arith.constant dense<0.000000e+00> : vector<1x64xf32>
    %116 = tpu.matmul %114, %115, %cst_85 {dimension_numbers = #tpu.dot_dimension_numbers<[1], [0], [0], [1], [0, 0, 1, 1], [], []>} : vector<1x64xbf16>, vector<64x64xbf16>, vector<1x64xf32> -> vector<1x64xf32>
    %c0_86 = arith.constant 0 : index
    %c0_87 = arith.constant 0 : index
    %117 = vector.load %arg9[%c0_86, %c0_87] : memref<1x64xf32, #tpu.memory_space<vmem>>, vector<1x64xf32>
    %118 = arith.addf %116, %117 : vector<1x64xf32>
    %c0_88 = arith.constant 0 : index
    %c0_89 = arith.constant 0 : index
    %119 = vector.load %arg7[%c0_88, %c0_89] : memref<1x64xf32, #tpu.memory_space<vmem>>, vector<1x64xf32>
    %120 = arith.addf %118, %119 : vector<1x64xf32>
    %121 = vector.broadcast %120 : vector<1x64xf32> to vector<64x64xf32>
    %122 = arith.addf %103, %121 : vector<64x64xf32>
    %c0_90 = arith.constant 0 : index
    %c0_91 = arith.constant 0 : index
    %123 = vector.load %arg10[%c0_90, %c0_91] : memref<1x64xf32, #tpu.memory_space<vmem>>, vector<1x64xf32>
    %c0_92 = arith.constant 0 : index
    %c0_93 = arith.constant 0 : index
    %124 = vector.load %arg11[%c0_92, %c0_93] : memref<1x64xf32, #tpu.memory_space<vmem>>, vector<1x64xf32>
    %cst_94 = arith.constant dense<0.000000e+00> : vector<64xf32>
    %125 = vector.multi_reduction <add>, %122, %cst_94 [0] : vector<64x64xf32> to vector<64xf32>
    %126 = vector.shape_cast %125 : vector<64xf32> to vector<1x64xf32>
    %cst_95 = arith.constant 7.812500e-03 : f32
    %127 = vector.broadcast %cst_95 : f32 to vector<1x64xf32>
    %128 = arith.mulf %126, %127 : vector<1x64xf32>
    %c0_96 = arith.constant 0 : index
    %c0_97 = arith.constant 0 : index
    %129 = vector.load %arg18[%c0_96, %c0_97] : memref<64x32xf32, #tpu.memory_space<vmem>>, vector<64x32xf32>
    %c0_98 = arith.constant 0 : index
    %c0_99 = arith.constant 0 : index
    %130 = vector.load %arg19[%c0_98, %c0_99] : memref<32x64xf32, #tpu.memory_space<vmem>>, vector<32x64xf32>
    %cst_100 = arith.constant dense<0.000000e+00> : vector<1x32xf32>
    %131 = tpu.matmul %128, %129, %cst_100 {dimension_numbers = #tpu.dot_dimension_numbers<[1], [0], [0], [1], [0, 0, 1, 1], [], []>} : vector<1x64xf32>, vector<64x32xf32>, vector<1x32xf32> -> vector<1x32xf32>
    %cst_101 = arith.constant dense<0.000000e+00> : vector<1x64xf32>
    %132 = tpu.matmul %131, %130, %cst_101 {dimension_numbers = #tpu.dot_dimension_numbers<[1], [0], [0], [1], [0, 0, 1, 1], [], []>} : vector<1x32xf32>, vector<32x64xf32>, vector<1x64xf32> -> vector<1x64xf32>
    %133 = vector.broadcast %132 : vector<1x64xf32> to vector<64x64xf32>
    %134 = arith.subf %122, %133 : vector<64x64xf32>
    %135 = arith.mulf %134, %134 : vector<64x64xf32>
    %cst_102 = arith.constant dense<0.000000e+00> : vector<64xf32>
    %136 = vector.multi_reduction <add>, %135, %cst_102 [0] : vector<64x64xf32> to vector<64xf32>
    %137 = vector.shape_cast %136 : vector<64xf32> to vector<1x64xf32>
    %cst_103 = arith.constant 7.812500e-03 : f32
    %138 = vector.broadcast %cst_103 : f32 to vector<1x64xf32>
    %139 = arith.mulf %137, %138 : vector<1x64xf32>
    %cst_104 = arith.constant dense<0.000000e+00> : vector<1x32xf32>
    %140 = tpu.matmul %139, %129, %cst_104 {dimension_numbers = #tpu.dot_dimension_numbers<[1], [0], [0], [1], [0, 0, 1, 1], [], []>} : vector<1x64xf32>, vector<64x32xf32>, vector<1x32xf32> -> vector<1x32xf32>
    %cst_105 = arith.constant dense<0.000000e+00> : vector<1x64xf32>
    %141 = tpu.matmul %140, %130, %cst_105 {dimension_numbers = #tpu.dot_dimension_numbers<[1], [0], [0], [1], [0, 0, 1, 1], [], []>} : vector<1x32xf32>, vector<32x64xf32>, vector<1x64xf32> -> vector<1x64xf32>
    %cst_106 = arith.constant 9.99999974E-6 : f32
    %142 = vector.broadcast %cst_106 : f32 to vector<1x64xf32>
    %143 = arith.addf %141, %142 : vector<1x64xf32>
    %144 = math.rsqrt %143 : vector<1x64xf32>
    %145 = vector.broadcast %144 : vector<1x64xf32> to vector<64x64xf32>
    %146 = arith.mulf %134, %145 : vector<64x64xf32>
    %147 = vector.broadcast %123 : vector<1x64xf32> to vector<64x64xf32>
    %148 = arith.mulf %146, %147 : vector<64x64xf32>
    %149 = vector.broadcast %124 : vector<1x64xf32> to vector<64x64xf32>
    %150 = arith.addf %148, %149 : vector<64x64xf32>
    %cst_107 = arith.constant 0.000000e+00 : f32
    %151 = vector.broadcast %cst_107 : f32 to vector<64x64xf32>
    %152 = arith.subf %151, %150 : vector<64x64xf32>
    %153 = math.exp %152 : vector<64x64xf32>
    %cst_108 = arith.constant 1.000000e+00 : f32
    %154 = vector.broadcast %cst_108 : f32 to vector<64x64xf32>
    %155 = arith.addf %154, %153 : vector<64x64xf32>
    %cst_109 = arith.constant 1.000000e+00 : f32
    %156 = vector.broadcast %cst_109 : f32 to vector<64x64xf32>
    %157 = arith.divf %156, %155 : vector<64x64xf32>
    %158 = arith.mulf %150, %157 : vector<64x64xf32>
    %159 = arith.truncf %158 : vector<64x64xf32> to vector<64x64xbf16>
    %c0_110 = arith.constant 0 : index
    %c0_111 = arith.constant 0 : index
    %c0_112 = arith.constant 0 : index
    %160 = vector.load %arg3[%c0_110, %c0_111, %c0_112] : memref<9x64x64xbf16, #tpu.memory_space<vmem>>, vector<1x64x64xbf16>
    %161 = vector.shape_cast %160 : vector<1x64x64xbf16> to vector<64x64xbf16>
    %cst_113 = arith.constant dense<0.000000e+00> : vector<64x64xf32>
    %162 = tpu.matmul %161, %159, %cst_113 {dimension_numbers = #tpu.dot_dimension_numbers<[1], [0], [0], [1], [0, 0, 1, 1], [], []>} : vector<64x64xbf16>, vector<64x64xbf16>, vector<64x64xf32> -> vector<64x64xf32>
    %163 = arith.truncf %162 : vector<64x64xf32> to vector<64x64xbf16>
    %c0_114 = arith.constant 0 : index
    %c0_115 = arith.constant 0 : index
    %c0_116 = arith.constant 0 : index
    %164 = vector.load %arg12[%c0_114, %c0_115, %c0_116] : memref<9x64x64xbf16, #tpu.memory_space<vmem>>, vector<1x64x64xbf16>
    %165 = vector.shape_cast %164 : vector<1x64x64xbf16> to vector<64x64xbf16>
    %cst_117 = arith.constant dense<0.000000e+00> : vector<64x64xf32>
    %166 = tpu.matmul %163, %165, %cst_117 {dimension_numbers = #tpu.dot_dimension_numbers<[1], [0], [0], [1], [0, 0, 1, 1], [], []>} : vector<64x64xbf16>, vector<64x64xbf16>, vector<64x64xf32> -> vector<64x64xf32>
    %c1_118 = arith.constant 1 : index
    %c0_119 = arith.constant 0 : index
    %c0_120 = arith.constant 0 : index
    %167 = vector.load %arg3[%c1_118, %c0_119, %c0_120] : memref<9x64x64xbf16, #tpu.memory_space<vmem>>, vector<1x64x64xbf16>
    %168 = vector.shape_cast %167 : vector<1x64x64xbf16> to vector<64x64xbf16>
    %cst_121 = arith.constant dense<0.000000e+00> : vector<64x64xf32>
    %169 = tpu.matmul %168, %159, %cst_121 {dimension_numbers = #tpu.dot_dimension_numbers<[1], [0], [0], [1], [0, 0, 1, 1], [], []>} : vector<64x64xbf16>, vector<64x64xbf16>, vector<64x64xf32> -> vector<64x64xf32>
    %170 = arith.truncf %169 : vector<64x64xf32> to vector<64x64xbf16>
    %c1_122 = arith.constant 1 : index
    %c0_123 = arith.constant 0 : index
    %c0_124 = arith.constant 0 : index
    %171 = vector.load %arg12[%c1_122, %c0_123, %c0_124] : memref<9x64x64xbf16, #tpu.memory_space<vmem>>, vector<1x64x64xbf16>
    %172 = vector.shape_cast %171 : vector<1x64x64xbf16> to vector<64x64xbf16>
    %cst_125 = arith.constant dense<0.000000e+00> : vector<64x64xf32>
    %173 = tpu.matmul %170, %172, %cst_125 {dimension_numbers = #tpu.dot_dimension_numbers<[1], [0], [0], [1], [0, 0, 1, 1], [], []>} : vector<64x64xbf16>, vector<64x64xbf16>, vector<64x64xf32> -> vector<64x64xf32>
    %c2_126 = arith.constant 2 : index
    %c0_127 = arith.constant 0 : index
    %c0_128 = arith.constant 0 : index
    %174 = vector.load %arg3[%c2_126, %c0_127, %c0_128] : memref<9x64x64xbf16, #tpu.memory_space<vmem>>, vector<1x64x64xbf16>
    %175 = vector.shape_cast %174 : vector<1x64x64xbf16> to vector<64x64xbf16>
    %cst_129 = arith.constant dense<0.000000e+00> : vector<64x64xf32>
    %176 = tpu.matmul %175, %159, %cst_129 {dimension_numbers = #tpu.dot_dimension_numbers<[1], [0], [0], [1], [0, 0, 1, 1], [], []>} : vector<64x64xbf16>, vector<64x64xbf16>, vector<64x64xf32> -> vector<64x64xf32>
    %177 = arith.truncf %176 : vector<64x64xf32> to vector<64x64xbf16>
    %c2_130 = arith.constant 2 : index
    %c0_131 = arith.constant 0 : index
    %c0_132 = arith.constant 0 : index
    %178 = vector.load %arg12[%c2_130, %c0_131, %c0_132] : memref<9x64x64xbf16, #tpu.memory_space<vmem>>, vector<1x64x64xbf16>
    %179 = vector.shape_cast %178 : vector<1x64x64xbf16> to vector<64x64xbf16>
    %cst_133 = arith.constant dense<0.000000e+00> : vector<64x64xf32>
    %180 = tpu.matmul %177, %179, %cst_133 {dimension_numbers = #tpu.dot_dimension_numbers<[1], [0], [0], [1], [0, 0, 1, 1], [], []>} : vector<64x64xbf16>, vector<64x64xbf16>, vector<64x64xf32> -> vector<64x64xf32>
    %c3_134 = arith.constant 3 : index
    %c0_135 = arith.constant 0 : index
    %c0_136 = arith.constant 0 : index
    %181 = vector.load %arg3[%c3_134, %c0_135, %c0_136] : memref<9x64x64xbf16, #tpu.memory_space<vmem>>, vector<1x64x64xbf16>
    %182 = vector.shape_cast %181 : vector<1x64x64xbf16> to vector<64x64xbf16>
    %cst_137 = arith.constant dense<0.000000e+00> : vector<64x64xf32>
    %183 = tpu.matmul %182, %159, %cst_137 {dimension_numbers = #tpu.dot_dimension_numbers<[1], [0], [0], [1], [0, 0, 1, 1], [], []>} : vector<64x64xbf16>, vector<64x64xbf16>, vector<64x64xf32> -> vector<64x64xf32>
    %184 = arith.truncf %183 : vector<64x64xf32> to vector<64x64xbf16>
    %c3_138 = arith.constant 3 : index
    %c0_139 = arith.constant 0 : index
    %c0_140 = arith.constant 0 : index
    %185 = vector.load %arg12[%c3_138, %c0_139, %c0_140] : memref<9x64x64xbf16, #tpu.memory_space<vmem>>, vector<1x64x64xbf16>
    %186 = vector.shape_cast %185 : vector<1x64x64xbf16> to vector<64x64xbf16>
    %cst_141 = arith.constant dense<0.000000e+00> : vector<64x64xf32>
    %187 = tpu.matmul %184, %186, %cst_141 {dimension_numbers = #tpu.dot_dimension_numbers<[1], [0], [0], [1], [0, 0, 1, 1], [], []>} : vector<64x64xbf16>, vector<64x64xbf16>, vector<64x64xf32> -> vector<64x64xf32>
    %c4_142 = arith.constant 4 : index
    %c0_143 = arith.constant 0 : index
    %c0_144 = arith.constant 0 : index
    %188 = vector.load %arg3[%c4_142, %c0_143, %c0_144] : memref<9x64x64xbf16, #tpu.memory_space<vmem>>, vector<1x64x64xbf16>
    %189 = vector.shape_cast %188 : vector<1x64x64xbf16> to vector<64x64xbf16>
    %cst_145 = arith.constant dense<0.000000e+00> : vector<64x64xf32>
    %190 = tpu.matmul %189, %159, %cst_145 {dimension_numbers = #tpu.dot_dimension_numbers<[1], [0], [0], [1], [0, 0, 1, 1], [], []>} : vector<64x64xbf16>, vector<64x64xbf16>, vector<64x64xf32> -> vector<64x64xf32>
    %191 = arith.truncf %190 : vector<64x64xf32> to vector<64x64xbf16>
    %c4_146 = arith.constant 4 : index
    %c0_147 = arith.constant 0 : index
    %c0_148 = arith.constant 0 : index
    %192 = vector.load %arg12[%c4_146, %c0_147, %c0_148] : memref<9x64x64xbf16, #tpu.memory_space<vmem>>, vector<1x64x64xbf16>
    %193 = vector.shape_cast %192 : vector<1x64x64xbf16> to vector<64x64xbf16>
    %cst_149 = arith.constant dense<0.000000e+00> : vector<64x64xf32>
    %194 = tpu.matmul %191, %193, %cst_149 {dimension_numbers = #tpu.dot_dimension_numbers<[1], [0], [0], [1], [0, 0, 1, 1], [], []>} : vector<64x64xbf16>, vector<64x64xbf16>, vector<64x64xf32> -> vector<64x64xf32>
    %c5_150 = arith.constant 5 : index
    %c0_151 = arith.constant 0 : index
    %c0_152 = arith.constant 0 : index
    %195 = vector.load %arg3[%c5_150, %c0_151, %c0_152] : memref<9x64x64xbf16, #tpu.memory_space<vmem>>, vector<1x64x64xbf16>
    %196 = vector.shape_cast %195 : vector<1x64x64xbf16> to vector<64x64xbf16>
    %cst_153 = arith.constant dense<0.000000e+00> : vector<64x64xf32>
    %197 = tpu.matmul %196, %159, %cst_153 {dimension_numbers = #tpu.dot_dimension_numbers<[1], [0], [0], [1], [0, 0, 1, 1], [], []>} : vector<64x64xbf16>, vector<64x64xbf16>, vector<64x64xf32> -> vector<64x64xf32>
    %198 = arith.truncf %197 : vector<64x64xf32> to vector<64x64xbf16>
    %c5_154 = arith.constant 5 : index
    %c0_155 = arith.constant 0 : index
    %c0_156 = arith.constant 0 : index
    %199 = vector.load %arg12[%c5_154, %c0_155, %c0_156] : memref<9x64x64xbf16, #tpu.memory_space<vmem>>, vector<1x64x64xbf16>
    %200 = vector.shape_cast %199 : vector<1x64x64xbf16> to vector<64x64xbf16>
    %cst_157 = arith.constant dense<0.000000e+00> : vector<64x64xf32>
    %201 = tpu.matmul %198, %200, %cst_157 {dimension_numbers = #tpu.dot_dimension_numbers<[1], [0], [0], [1], [0, 0, 1, 1], [], []>} : vector<64x64xbf16>, vector<64x64xbf16>, vector<64x64xf32> -> vector<64x64xf32>
    %c6_158 = arith.constant 6 : index
    %c0_159 = arith.constant 0 : index
    %c0_160 = arith.constant 0 : index
    %202 = vector.load %arg3[%c6_158, %c0_159, %c0_160] : memref<9x64x64xbf16, #tpu.memory_space<vmem>>, vector<1x64x64xbf16>
    %203 = vector.shape_cast %202 : vector<1x64x64xbf16> to vector<64x64xbf16>
    %cst_161 = arith.constant dense<0.000000e+00> : vector<64x64xf32>
    %204 = tpu.matmul %203, %159, %cst_161 {dimension_numbers = #tpu.dot_dimension_numbers<[1], [0], [0], [1], [0, 0, 1, 1], [], []>} : vector<64x64xbf16>, vector<64x64xbf16>, vector<64x64xf32> -> vector<64x64xf32>
    %205 = arith.truncf %204 : vector<64x64xf32> to vector<64x64xbf16>
    %c6_162 = arith.constant 6 : index
    %c0_163 = arith.constant 0 : index
    %c0_164 = arith.constant 0 : index
    %206 = vector.load %arg12[%c6_162, %c0_163, %c0_164] : memref<9x64x64xbf16, #tpu.memory_space<vmem>>, vector<1x64x64xbf16>
    %207 = vector.shape_cast %206 : vector<1x64x64xbf16> to vector<64x64xbf16>
    %cst_165 = arith.constant dense<0.000000e+00> : vector<64x64xf32>
    %208 = tpu.matmul %205, %207, %cst_165 {dimension_numbers = #tpu.dot_dimension_numbers<[1], [0], [0], [1], [0, 0, 1, 1], [], []>} : vector<64x64xbf16>, vector<64x64xbf16>, vector<64x64xf32> -> vector<64x64xf32>
    %c7_166 = arith.constant 7 : index
    %c0_167 = arith.constant 0 : index
    %c0_168 = arith.constant 0 : index
    %209 = vector.load %arg3[%c7_166, %c0_167, %c0_168] : memref<9x64x64xbf16, #tpu.memory_space<vmem>>, vector<1x64x64xbf16>
    %210 = vector.shape_cast %209 : vector<1x64x64xbf16> to vector<64x64xbf16>
    %cst_169 = arith.constant dense<0.000000e+00> : vector<64x64xf32>
    %211 = tpu.matmul %210, %159, %cst_169 {dimension_numbers = #tpu.dot_dimension_numbers<[1], [0], [0], [1], [0, 0, 1, 1], [], []>} : vector<64x64xbf16>, vector<64x64xbf16>, vector<64x64xf32> -> vector<64x64xf32>
    %212 = arith.truncf %211 : vector<64x64xf32> to vector<64x64xbf16>
    %c7_170 = arith.constant 7 : index
    %c0_171 = arith.constant 0 : index
    %c0_172 = arith.constant 0 : index
    %213 = vector.load %arg12[%c7_170, %c0_171, %c0_172] : memref<9x64x64xbf16, #tpu.memory_space<vmem>>, vector<1x64x64xbf16>
    %214 = vector.shape_cast %213 : vector<1x64x64xbf16> to vector<64x64xbf16>
    %cst_173 = arith.constant dense<0.000000e+00> : vector<64x64xf32>
    %215 = tpu.matmul %212, %214, %cst_173 {dimension_numbers = #tpu.dot_dimension_numbers<[1], [0], [0], [1], [0, 0, 1, 1], [], []>} : vector<64x64xbf16>, vector<64x64xbf16>, vector<64x64xf32> -> vector<64x64xf32>
    %c8_174 = arith.constant 8 : index
    %c0_175 = arith.constant 0 : index
    %c0_176 = arith.constant 0 : index
    %216 = vector.load %arg3[%c8_174, %c0_175, %c0_176] : memref<9x64x64xbf16, #tpu.memory_space<vmem>>, vector<1x64x64xbf16>
    %217 = vector.shape_cast %216 : vector<1x64x64xbf16> to vector<64x64xbf16>
    %cst_177 = arith.constant dense<0.000000e+00> : vector<64x64xf32>
    %218 = tpu.matmul %217, %159, %cst_177 {dimension_numbers = #tpu.dot_dimension_numbers<[1], [0], [0], [1], [0, 0, 1, 1], [], []>} : vector<64x64xbf16>, vector<64x64xbf16>, vector<64x64xf32> -> vector<64x64xf32>
    %219 = arith.truncf %218 : vector<64x64xf32> to vector<64x64xbf16>
    %c8_178 = arith.constant 8 : index
    %c0_179 = arith.constant 0 : index
    %c0_180 = arith.constant 0 : index
    %220 = vector.load %arg12[%c8_178, %c0_179, %c0_180] : memref<9x64x64xbf16, #tpu.memory_space<vmem>>, vector<1x64x64xbf16>
    %221 = vector.shape_cast %220 : vector<1x64x64xbf16> to vector<64x64xbf16>
    %cst_181 = arith.constant dense<0.000000e+00> : vector<64x64xf32>
    %222 = tpu.matmul %219, %221, %cst_181 {dimension_numbers = #tpu.dot_dimension_numbers<[1], [0], [0], [1], [0, 0, 1, 1], [], []>} : vector<64x64xbf16>, vector<64x64xbf16>, vector<64x64xf32> -> vector<64x64xf32>
    %223 = arith.addf %166, %173 : vector<64x64xf32>
    %224 = arith.addf %180, %187 : vector<64x64xf32>
    %225 = arith.addf %194, %201 : vector<64x64xf32>
    %226 = arith.addf %208, %215 : vector<64x64xf32>
    %227 = arith.addf %223, %224 : vector<64x64xf32>
    %228 = arith.addf %225, %226 : vector<64x64xf32>
    %229 = arith.addf %227, %228 : vector<64x64xf32>
    %230 = arith.addf %229, %222 : vector<64x64xf32>
    %231 = arith.truncf %1 : vector<64x32xf32> to vector<64x32xbf16>
    %c0_182 = arith.constant 0 : index
    %c0_183 = arith.constant 0 : index
    %232 = vector.load %arg14[%c0_182, %c0_183] : memref<32x64xbf16, #tpu.memory_space<vmem>>, vector<32x64xbf16>
    %cst_184 = arith.constant dense<0.000000e+00> : vector<64x64xf32>
    %233 = tpu.matmul %231, %232, %cst_184 {dimension_numbers = #tpu.dot_dimension_numbers<[1], [0], [0], [1], [0, 0, 1, 1], [], []>} : vector<64x32xbf16>, vector<32x64xbf16>, vector<64x64xf32> -> vector<64x64xf32>
    %c0_185 = arith.constant 0 : index
    %c0_186 = arith.constant 0 : index
    %234 = vector.load %arg15[%c0_185, %c0_186] : memref<1x64xf32, #tpu.memory_space<vmem>>, vector<1x64xf32>
    %235 = vector.broadcast %234 : vector<1x64xf32> to vector<64x64xf32>
    %236 = arith.addf %233, %235 : vector<64x64xf32>
    %c0_187 = arith.constant 0 : index
    %c0_188 = arith.constant 0 : index
    %237 = vector.load %arg13[%c0_187, %c0_188] : memref<1x64xf32, #tpu.memory_space<vmem>>, vector<1x64xf32>
    %238 = vector.broadcast %237 : vector<1x64xf32> to vector<64x64xf32>
    %239 = arith.addf %230, %238 : vector<64x64xf32>
    %240 = arith.addf %239, %236 : vector<64x64xf32>
    %c0_189 = arith.constant 0 : index
    %c0_190 = arith.constant 0 : index
    %c0_191 = arith.constant 0 : index
    %241 = vector.load %arg20[%c0_189, %c0_190, %c0_191] : memref<1x64x64xf32, #tpu.memory_space<vmem>>, vector<1x64x64xf32>
    %242 = vector.shape_cast %241 : vector<1x64x64xf32> to vector<64x64xf32>
    %243 = vector.shape_cast %240 : vector<64x64xf32> to vector<1x64x64xf32>
    tpu.vector_store %arg20[%c0_189, %c0_190, %c0_191], %243 {strides = array<i32>} : memref<1x64x64xf32, #tpu.memory_space<vmem>>, vector<1x64x64xf32>,
    return
  }
  func.func @transform_0(%arg0: i32) -> (i32, i32, i32) {
    %c0_i32 = arith.constant 0 : i32
    %c0_i32_0 = arith.constant 0 : i32
    %c0_i32_1 = arith.constant 0 : i32
    return %arg0, %c0_i32, %c0_i32_0 : i32, i32, i32
  }
  func.func @transform_1(%arg0: i32) -> (i32, i32, i32) {
    %c0_i32 = arith.constant 0 : i32
    %c0_i32_0 = arith.constant 0 : i32
    %c0_i32_1 = arith.constant 0 : i32
    return %arg0, %c0_i32, %c0_i32_0 : i32, i32, i32
  }
  func.func @transform_2(%arg0: i32) -> (i32, i32, i32) {
    %c0_i32 = arith.constant 0 : i32
    %c0_i32_0 = arith.constant 0 : i32
    %c0_i32_1 = arith.constant 0 : i32
    %c0_i32_2 = arith.constant 0 : i32
    return %c0_i32, %c0_i32_0, %c0_i32_1 : i32, i32, i32
  }
  func.func @transform_3(%arg0: i32) -> (i32, i32) {
    %c0_i32 = arith.constant 0 : i32
    %c0_i32_0 = arith.constant 0 : i32
    %c0_i32_1 = arith.constant 0 : i32
    return %c0_i32, %c0_i32_0 : i32, i32
  }
  func.func @transform_4(%arg0: i32) -> (i32, i32) {
    %c0_i32 = arith.constant 0 : i32
    %c0_i32_0 = arith.constant 0 : i32
    %c0_i32_1 = arith.constant 0 : i32
    return %c0_i32, %c0_i32_0 : i32, i32
  }
  func.func @transform_5(%arg0: i32) -> (i32, i32, i32) {
    %c0_i32 = arith.constant 0 : i32
    %c0_i32_0 = arith.constant 0 : i32
    %c0_i32_1 = arith.constant 0 : i32
    %c0_i32_2 = arith.constant 0 : i32
    return %c0_i32, %c0_i32_0, %c0_i32_1 : i32, i32, i32
  }
  func.func @transform_6(%arg0: i32) -> (i32, i32) {
    %c0_i32 = arith.constant 0 : i32
    %c0_i32_0 = arith.constant 0 : i32
    %c0_i32_1 = arith.constant 0 : i32
    return %c0_i32, %c0_i32_0 : i32, i32
  }
  func.func @transform_7(%arg0: i32) -> (i32, i32) {
    %c0_i32 = arith.constant 0 : i32
    %c0_i32_0 = arith.constant 0 : i32
    %c0_i32_1 = arith.constant 0 : i32
    return %c0_i32, %c0_i32_0 : i32, i32
  }
  func.func @transform_8(%arg0: i32) -> (i32, i32) {
    %c0_i32 = arith.constant 0 : i32
    %c0_i32_0 = arith.constant 0 : i32
    %c0_i32_1 = arith.constant 0 : i32
    return %c0_i32, %c0_i32_0 : i32, i32
  }
  func.func @transform_9(%arg0: i32) -> (i32, i32) {
    %c0_i32 = arith.constant 0 : i32
    %c0_i32_0 = arith.constant 0 : i32
    %c0_i32_1 = arith.constant 0 : i32
    return %c0_i32, %c0_i32_0 : i32, i32
  }
  func.func @transform_10(%arg0: i32) -> (i32, i32) {
    %c0_i32 = arith.constant 0 : i32
    %c0_i32_0 = arith.constant 0 : i32
    %c0_i32_1 = arith.constant 0 : i32
    return %c0_i32, %c0_i32_0 : i32, i32
  }
  func.func @transform_11(%arg0: i32) -> (i32, i32, i32) {
    %c0_i32 = arith.constant 0 : i32
    %c0_i32_0 = arith.constant 0 : i32
    %c0_i32_1 = arith.constant 0 : i32
    %c0_i32_2 = arith.constant 0 : i32
    return %c0_i32, %c0_i32_0, %c0_i32_1 : i32, i32, i32
  }
  func.func @transform_12(%arg0: i32) -> (i32, i32) {
    %c0_i32 = arith.constant 0 : i32
    %c0_i32_0 = arith.constant 0 : i32
    %c0_i32_1 = arith.constant 0 : i32
    return %c0_i32, %c0_i32_0 : i32, i32
  }
  func.func @transform_13(%arg0: i32) -> (i32, i32) {
    %c0_i32 = arith.constant 0 : i32
    %c0_i32_0 = arith.constant 0 : i32
    %c0_i32_1 = arith.constant 0 : i32
    return %c0_i32, %c0_i32_0 : i32, i32
  }
  func.func @transform_14(%arg0: i32) -> (i32, i32) {
    %c0_i32 = arith.constant 0 : i32
    %c0_i32_0 = arith.constant 0 : i32
    %c0_i32_1 = arith.constant 0 : i32
    return %c0_i32, %c0_i32_0 : i32, i32
  }
  func.func @transform_15(%arg0: i32) -> (i32, i32) {
    %c0_i32 = arith.constant 0 : i32
    %c0_i32_0 = arith.constant 0 : i32
    %c0_i32_1 = arith.constant 0 : i32
    return %c0_i32, %c0_i32_0 : i32, i32
  }
  func.func @transform_16(%arg0: i32) -> (i32, i32) {
    %c0_i32 = arith.constant 0 : i32
    %c0_i32_0 = arith.constant 0 : i32
    %c0_i32_1 = arith.constant 0 : i32
    return %c0_i32, %c0_i32_0 : i32, i32
  }
  func.func @transform_17(%arg0: i32) -> (i32, i32) {
    %c0_i32 = arith.constant 0 : i32
    %c0_i32_0 = arith.constant 0 : i32
    %c0_i32_1 = arith.constant 0 : i32
    return %c0_i32, %c0_i32_0 : i32, i32
  }
  func.func @transform_18(%arg0: i32) -> (i32, i32) {
    %c0_i32 = arith.constant 0 : i32
    %c0_i32_0 = arith.constant 0 : i32
    %c0_i32_1 = arith.constant 0 : i32
    return %c0_i32, %c0_i32_0 : i32, i32
  }
  func.func @transform_19(%arg0: i32) -> (i32, i32, i32) {
    %c0_i32 = arith.constant 0 : i32
    %c0_i32_0 = arith.constant 0 : i32
    %c0_i32_1 = arith.constant 0 : i32
    return %arg0, %c0_i32, %c0_i32_0 : i32, i32, i32
  }
}

</mosaic_0001>

<bundles_post_ra>
// kernel: res_block_forward.1
= control target key start
LH: loop header
LB: loop body
LE: loop exit
PB: predicated region body
PF: predicated region fallthrough
CT: control target
= control target key end

     0   :  { %s7102_s0 = inlined_call_operand.vmem [shape: f32[2,64,32], index: 0, kind: input, shape index: {}]   ;;  %s7103_s1 = inlined_call_operand.vmem [shape: f32[2,1,64], index: 1, kind: input, shape index: {}]   ;;  %s7104_s2 = inlined_call_operand.vmem [shape: f32[9,64,1], index: 2, kind: input, shape index: {}]   ;;  %s7105_s3 = inlined_call_operand.vmem [shape: f32[1,32], index: 3, kind: input, shape index: {}]   ;;  %s7106_s4 = inlined_call_operand.vmem [shape: f32[1,32], index: 4, kind: input, shape index: {}]   ;;  %s7107_s5 = inlined_call_operand.vmem [shape: bf16[9,32,64], index: 5, kind: input, shape index: {}]   ;;  %s7108_s6 = inlined_call_operand.vmem [shape: f32[1,64], index: 6, kind: input, shape index: {}]   ;;  %s7109_s7 = inlined_call_operand.vmem [shape: bf16[64,64], index: 7, kind: input, shape index: {}]   ;;  %s7110_s8 = inlined_call_operand.vmem [shape: f32[1,64], index: 8, kind: input, shape index: {}]   ;;  %s7111_s9 = inlined_call_operand.vmem [shape: f32[1,64], index: 9, kind: input, shape index: {}]   ;;  %s7112_s10 = inlined_call_operand.vmem [shape: f32[1,64], index: 10, kind: input, shape index: {}]   ;;  %s7113_s11 = inlined_call_operand.vmem [shape: bf16[9,64,64], index: 11, kind: input, shape index: {}]   ;;  %s7114_s12 = inlined_call_operand.vmem [shape: f32[1,64], index: 12, kind: input, shape index: {}]   ;;  %s7115_s13 = inlined_call_operand.vmem [shape: bf16[32,64], index: 13, kind: input, shape index: {}]   ;;  %s7116_s14 = inlined_call_operand.vmem [shape: f32[1,64], index: 14, kind: input, shape index: {}]   ;;  %s7117_s15 = inlined_call_operand.<no memory space> [shape: f32[1,1], index: 15, kind: input, shape index: {}, may-alias: {15,16}]   ;;  %s7118_s17 = inlined_call_operand.vmem [shape: f32[64,32], index: 17, kind: input, shape index: {}]   ;;  %s7119_s18 = inlined_call_operand.vmem [shape: f32[32,64], index: 18, kind: input, shape index: {}]   ;;  %s7120_s19 = inlined_call_operand.hbm [shape: f32[2,64,64], index: 19, kind: output, shape index: {}]   ;;  %s7121_s16 = inlined_call_operand.<no memory space> [shape: f32[1,1], index: 16, kind: input, shape index: {}, may-alias: {15,16}]  }
   0x1   :  { %7168 = sst [smem:[#allocation48_spill]] %s7102_s0 }
   0x2   :  { %7169 = sst [smem:[#allocation49_spill]] %s7103_s1 }
   0x3   :  { %7170 = sst [smem:[#allocation50_spill]] %s7104_s2 }
   0x4   :  { %7171 = sst [smem:[#allocation51_spill]] %s7105_s3 }
   0x5   :  { %28 = vsyncpa [#allocation5], 0 }
   0x6   :  { %30 = vsyncpa [#allocation5 + $0x1], 0  ;;  %s5489_s0 = smov 0   ;;  %s5491_s30 = smov 0  }
   0x7   :  { %s5493_s20 = smov 0   ;;  %s5495_s15 = smov 0  }
   0x8 LB: > { %7172 = sst [smem:[#allocation7_spill]] %s5368_s0  ;;  %s5510_s16 = sadd.s32 4294967295, %s5380_s15   ;;  %s5380_s15 = sphi %s5495_s15, %s7268_s15   ;;  %s5376_s20 = sphi %s5493_s20, %s7270_s20   ;;  %s5372_s30 = sphi %s5491_s30, %s7272_s30   ;;  %s5368_s0 = sphi %s5489_s0, %s7271_s0  }
   0x9   : > { %7173 = sst [smem:[#allocation8_spill]] %s5376_s20  ;;  %s4129_s21 = sadd.s32 4294967294, %s5380_s15  }
   0xa   : > { %7174 = sst [smem:[#allocation9_spill]] %s5380_s15  ;;  %s5514_s1 = sadd.s32 1, %s5380_s15  }
   0xb   : > { %7175 = sst [smem:[#allocation10_spill]] %s5514_s1  ;;  %s452_s22 = sadd.s32 1, %s5376_s20 }
   0xc   : > { %s449_s2 = ssub.s32 %s5380_s15, %s5514_s1  ;;  %p462_p0 = scmp.ne.s32.totalorder %s5376_s20, %s5372_s30 }
   0xd   : > { %p450_p1 = scmp.eq.s32.totalorder %s449_s2, 0  ;;  %p463_p2 = scmp.eq.s32.totalorder %s5510_s16, 1 }
   0xe   : > { %p468_p3 = scmp.ne.s32.totalorder %s5372_s30, %s5368_s0  ;;  %p469_p4 = scmp.eq.s32.totalorder %s4129_s21, 1 }
   0xf   : > { %s5525_s23 = scalar_select %p450_p1, %s5376_s20, %s452_s22  }
  0x10   : > { %p5527_p5 = por %p463_p2, %p462_p0  ;;  %p5531_p6 = por %p469_p4, %p468_p3 }
  0x11   : > { %7176 = sst [smem:[#allocation11_spill]] %s5525_s23  ;;  %p4132_p7 = scmp.ge.s32.totalorder %s5380_s15, 1 }
  0x12   : > { %s7178_s25 = scalar_select %p5531_p6, 1, 0 }
  0x13   : > { %p552_p8 = scmp.lt.s32.totalorder %s5380_s15, 3 }
  0x14   : > { %7179 = sst [smem:[#allocation12_spill]] %s7178_s25 }
  0x15   : > { %p553_p9 = pnand %p4132_p7, %p552_p8 }
  0x17   : > { %556 = sbr.rel (%p553_p9) target bundleno = 1894 (0x766), region = 96 }
  0x1e   : > { %s7180_s27 = sld [smem:[#allocation50_spill]]  ;;  %v5382_v2 = vmov 0   ;;  %p611_p10 = scmp.lt.s32.totalorder %s5510_s16, 1  ;;  %vm630_vm0 = vcmask 261120   ;;  %v5178_v30 = vld [vmem:[%s7107_s5 + $0x10] sm:$0xff]   ;;  %v5179_v32 = vld [vmem:[%s7107_s5 + $0x18] sm:$0xff]  }
  0x1f   : > { %5177 = vset.pattern.permute.xlu1 %v5382_v2  ;;  %5176 = vset.pattern.permute.xlu0 %v5382_v2  ;;  %s7181_s22 = sld [smem:[#allocation48_spill]]  ;;  %v5641_v41 = vld [vmem:[%s7107_s5 + $0x30] sm:$0xff]   ;;  %s7182_s15 = sld [smem:[#allocation51_spill]]  ;;  %vm5383_vm2 = vmmov 0   ;;  %vm2231_vm4 = vcmask 523264  }
  0x20   : > { %s5563_s2 = scalar_select %p611_p10, %s5510_s16, 1  ;;  %4607 = vmatprep.subr.bf16.mxu0 %v5178_v30 }
  0x21   : > { %4608 = vmatpush3.bf16.msra.mxu0 %v5178_v30  ;;  %s7210_s20 = sld [smem:[#allocation49_spill]]  ;;  %s4441_s28 = sshll.u32 %s5510_s16, 10 }
  0x22   : > { %s4440_s1 = sshll.u32 %s5563_s2, 6  ;;  %4609 = vmatprep.subr.bf16.mxu0 %v5179_v32  ;;  %s7052_s21 = scalar_lea.hbm %s7120_s19, %s4441_s28 }
  0x23   : > { %s5386_s3 = smov [#allocation4]  }
  0x24   : > { %v4140_v0 = vld [vmem:[%s7180_s27 + $0x50] sm:$0xff]  ;;  %v4138_v1 = vld [vmem:[%s7180_s27 + $0x40] sm:$0xff]  ;;  %v4141_v3 = vld [vmem:[%s7180_s27 + $0x58] sm:$0xff]  ;;  %s5322_s26 = sshll.u32 %s5386_s3, 4  ;;  %s5323_s26 = int_to_ptr.vmem [resolvable:$false] %s5322_s26 }
  0x25   : > { %893 = vperm.xlu1 %5177, %v4140_v0   ;;  %883 = vperm.xlu0 %5176, %v4138_v1   ;;  %v4139_v4 = vld [vmem:[%s7180_s27 + $0x48] sm:$0xff]  ;;  %v4142_v6 = vld [vmem:[%s7180_s27 + $0x60] sm:$0xff]  ;;  %v4145_v7 = vld [vmem:[%s7180_s27 + $0x78] sm:$0xff]  ;;  %s5575_s23 = scalar_lea.vmem %s7181_s22, %s4440_s1 }
  0x26   : > { %v4143_v5 = vld [vmem:[%s7180_s27 + $0x68] sm:$0xff]  ;;  %v4144_v8 = vld [vmem:[%s7180_s27 + $0x70] sm:$0xff]  ;;  %v4168_v10 = vld [vmem:[%s7180_s27 + $0xc0] sm:$0xff]  ;;  %4610 = vmatpush3.bf16.msra.mxu0 %v5179_v32 }
  0x27   : > { %v4169_v9 = vld [vmem:[%s7180_s27 + $0xc8] sm:$0xff]  ;;  %v4171_v11 = vld [vmem:[%s7180_s27 + $0xd8] sm:$0xff]  ;;  %v4170_v12 = vld [vmem:[%s7180_s27 + $0xd0] sm:$0xff]  ;;  %4619 = vmatprep.subr.bf16.mxu0 %v5641_v41 }
  0x28   : > { %v5584_v13 = vld [vmem:[%s5575_s23] sm:$0xff]  ;;  %v5587_v14 = vld [vmem:[%s5575_s23 + $0x8] sm:$0xff]  ;;  %v5590_v15 = vld [vmem:[%s5575_s23 + $0x10] sm:$0xff] }
  0x29   : > { %898 = vperm.xlu1 %5177, %v4141_v3   ;;  %888 = vperm.xlu0 %5176, %v4139_v4   ;;  %v5593_v16 = vld [vmem:[%s5575_s23 + $0x18] sm:$0xff]  ;;  %v631_v17 = vsel %vm630_vm0, %v5584_v13, 0.0  ;;  %v632_v18 = vsel %vm630_vm0, %v5587_v14, 0.0  ;;  %v4173_v19 = vld [vmem:[%s7180_s27 + $0xe8] sm:$0xff]  ;;  %v4172_v20 = vld [vmem:[%s7180_s27 + $0xe0] sm:$0xff]  ;;  %v634_v23 = vsel %vm630_vm0, %v5590_v15, 0.0 }
  0x2a   : > { %v5606_v21 = vld [vmem:[%s5575_s23 + $0x20] sm:$0xff]  ;;  %v633_v22 = vadd.f32 %v632_v18, %v631_v17  ;;  %v625_v24 = vld [vmem:[%s5575_s23 + $0x28] sm:$0xff]  ;;  %v626_v25 = vld [vmem:[%s5575_s23 + $0x30] sm:$0xff]  ;;  %v636_v27 = vsel %vm630_vm0, %v5593_v16, 0.0 }
  0x2b   : > { %v627_v26 = vld [vmem:[%s5575_s23 + $0x38] sm:$0xff]  ;;  %v638_v31 = vsel %vm630_vm0, %v5606_v21, 0.0  ;;  %v4174_v33 = vld [vmem:[%s7180_s27 + $0xf0] sm:$0xff]  ;;  %v640_v35 = vsel %vm630_vm0, %v625_v24, 0.0  ;;  %v642_v36 = vsel %vm630_vm0, %v626_v25, 0.0  ;;  %v4191_v37 = vld [vmem:[%s7180_s27 + $0x148] sm:$0xff] }
  0x2c   : > { %v4175_v28 = vld [vmem:[%s7180_s27 + $0xf8] sm:$0xff]  ;;  %v635_v29 = vadd.f32 %v634_v23, %v633_v22  ;;  %v4190_v38 = vld [vmem:[%s7180_s27 + $0x140] sm:$0xff]  ;;  %v644_v40 = vsel %vm630_vm0, %v627_v26, 0.0  ;;  %v4192_v44 = vld [vmem:[%s7180_s27 + $0x150] sm:$0xff] }
  0x2d   : > { %908 = vperm.xlu1 %5177, %v4143_v5   ;;  %903 = vperm.xlu0 %5176, %v4142_v6   ;;  %v4193_v43 = vld [vmem:[%s7180_s27 + $0x158] sm:$0xff]  ;;  %v4195_v47 = vld [vmem:[%s7180_s27 + $0x168] sm:$0xff]  ;;  %v4194_v48 = vld [vmem:[%s7180_s27 + $0x160] sm:$0xff] }
  0x2e   : > { %v637_v34 = vadd.f32 %v636_v27, %v635_v29  ;;  %v4197_v51 = vld [vmem:[%s7180_s27 + $0x178] sm:$0xff]  ;;  %v4196_v52 = vld [vmem:[%s7180_s27 + $0x170] sm:$0xff]  ;;  %v4221_v55 = vld [vmem:[%s7180_s27 + $0x1c8] sm:$0xff] }
  0x2f   : > { %v4220_v56 = vld [vmem:[%s7180_s27 + $0x1c0] sm:$0xff]  ;;  %v4223_v59 = vld [vmem:[%s7180_s27 + $0x1d8] sm:$0xff]  ;;  %v4222_v60 = vld [vmem:[%s7180_s27 + $0x1d0] sm:$0xff] }
  0x30   : > { %v639_v39 = vadd.f32 %v638_v31, %v637_v34  ;;  %v4225_v6 = vld [vmem:[%s7180_s27 + $0x1e8] sm:$0xff]  ;;  %v4226_v22 = vld [vmem:[%s7180_s27 + $0x1f0] sm:$0xff]  ;;  %v4238_v30 = vld [vmem:[%s7180_s27 + $0x200] sm:$0xff] }
  0x31   : > { %918 = vperm.xlu1 %5177, %v4145_v7   ;;  %913 = vperm.xlu0 %5176, %v4144_v8   ;;  %v4239_v29 = vld [vmem:[%s7180_s27 + $0x208] sm:$0xff]  ;;  %v4240_v34 = vld [vmem:[%s7180_s27 + $0x210] sm:$0xff] }
  0x32   : > { %v641_v42 = vadd.f32 %v640_v35, %v639_v39 }
  0x34   : > { %v643_v45 = vadd.f32 %v642_v36, %v641_v42 }
  0x35   : > { %1126 = vperm.xlu1 %5177, %v4169_v9   ;;  %1121 = vperm.xlu0 %5176, %v4168_v10  }
  0x36   : > { %v645_v46 = vadd.f32 %v644_v40, %v643_v45 }
  0x38   : > { %v646_v49 = vrot.slane %v645_v46, 4 }
  0x39   : > { %1136 = vperm.xlu1 %5177, %v4171_v11   ;;  %1131 = vperm.xlu0 %5176, %v4170_v12  }
  0x3a   : > { %v647_v50 = vadd.f32 %v646_v49, %v645_v46 }
  0x3c   : > { %v648_v53 = vrot.slane %v647_v50, 2 }
  0x3d   : > { %1146 = vperm.xlu1 %5177, %v4173_v19   ;;  %1141 = vperm.xlu0 %5176, %v4172_v20  }
  0x3e   : > { %v649_v54 = vadd.f32 %v648_v53, %v647_v50 }
  0x40   : > { %v650_v57 = vrot.slane %v649_v54, 1 }
  0x41   : > { %1156 = vperm.xlu1 %5177, %v4175_v28   ;;  %1151 = vperm.xlu0 %5176, %v4174_v33   ;;  %v4241_v33 = vld [vmem:[%s7180_s27 + $0x218] sm:$0xff] }
  0x42   : > { %v651_v58 = vadd.f32 %v650_v57, %v649_v54  ;;  %v813_v54 = vld [vmem:[%s7180_s27 + $0x28] sm:$0xff]  ;;  %v814_v57 = vld [vmem:[%s7180_s27 + $0x30] sm:$0xff] }
  0x44   : > { %v652_v61 = vmul.f32 0.015625, %v651_v58  ;;  %v4157_v58 = vld [vmem:[%s7180_s27 + $0x88] sm:$0xff] }
  0x45   : > { %1286 = vperm.xlu1 %5177, %v4191_v37   ;;  %1281 = vperm.xlu0 %5176, %v4190_v38   ;;  %v4243_v37 = vld [vmem:[%s7180_s27 + $0x228] sm:$0xff]  ;;  %v4242_v38 = vld [vmem:[%s7180_s27 + $0x220] sm:$0xff] }
  0x46   : > { %v5675_v62 = vsub.f32 %v5584_v13, %v652_v61  ;;  %v5678_v63 = vsub.f32 %v5587_v14, %v652_v61  ;;  %v5681_v0 = vsub.f32 %v5590_v15, %v652_v61  ;;  %v5684_v1 = vsub.f32 %v5593_v16, %v652_v61  ;;  %v4224_v13 = vld [vmem:[%s7180_s27 + $0x1e0] sm:$0xff] }
  0x47   : > { %v5687_v2 = vsub.f32 %v5606_v21, %v652_v61  ;;  %v5689_v3 = vsub.f32 %v625_v24, %v652_v61  ;;  %v5691_v4 = vsub.f32 %v626_v25, %v652_v61  ;;  %v5693_v5 = vsub.f32 %v627_v26, %v652_v61  ;;  %v4227_v21 = vld [vmem:[%s7180_s27 + $0x1f8] sm:$0xff]  ;;  %v4136_v61 = vld [vmem:[%s7182_s15] ss:$0 sm:$0xff]  ;;  %s618_s15 = scalar_lea.vmem %s7210_s20, %s5563_s2  ;;  %s608_s2 = sand.u32 1, %s5372_s30  }
  0x48   : > { %v661_v7 = vmul.f32 %v5675_v62, %v5675_v62  ;;  %v662_v8 = vmul.f32 %v5678_v63, %v5678_v63  ;;  %v663_v9 = vmul.f32 %v5681_v0, %v5681_v0  ;;  %v664_v10 = vmul.f32 %v5684_v1, %v5684_v1  ;;  %s4133_s0 = sshll.u32 %s608_s2, 6  ;;  %s7061_s16 = scalar_lea.sflag [#allocation5], %s608_s2 }
  0x49   : > { %1296 = vperm.xlu1 %5177, %v4193_v43   ;;  %1291 = vperm.xlu0 %5176, %v4192_v44   ;;  %v665_v11 = vmul.f32 %v5687_v2, %v5687_v2  ;;  %v666_v12 = vmul.f32 %v5689_v3, %v5689_v3  ;;  %v667_v17 = vmul.f32 %v5691_v4, %v5691_v4  ;;  %v4245_v43 = vld [vmem:[%s7180_s27 + $0x238] sm:$0xff]  ;;  %v4244_v44 = vld [vmem:[%s7180_s27 + $0x230] sm:$0xff] }
  0x4a   : > { %v669_v14 = vsel %vm630_vm0, %v661_v7, 0.0  ;;  %v670_v15 = vsel %vm630_vm0, %v662_v8, 0.0  ;;  %v672_v16 = vsel %vm630_vm0, %v663_v9, 0.0  ;;  %v668_v18 = vmul.f32 %v5693_v5, %v5693_v5 }
  0x4b   : > { %v671_v19 = vadd.f32 %v670_v15, %v669_v14  ;;  %v674_v20 = vsel %vm630_vm0, %v664_v10, 0.0  ;;  %v676_v23 = vsel %vm630_vm0, %v665_v11, 0.0  ;;  %v678_v24 = vsel %vm630_vm0, %v666_v12, 0.0  ;;  %v4137_v10 = vld [vmem:[%s7106_s4] ss:$0 sm:$0xff] }
  0x4c   : > { %v680_v27 = vsel %vm630_vm0, %v667_v17, 0.0  ;;  %v682_v28 = vsel %vm630_vm0, %v668_v18, 0.0 }
  0x4d   : > { %1306 = vperm.xlu1 %5177, %v4195_v47   ;;  %1301 = vperm.xlu0 %5176, %v4194_v48   ;;  %v673_v25 = vadd.f32 %v672_v16, %v671_v19  ;;  %v809_v47 = vld [vmem:[%s7180_s27 + $0x8] sm:$0xff]  ;;  %v808_v48 = vld [vmem:[%s7180_s27] sm:$0xff] }
  0x4f   : > { %v675_v26 = vadd.f32 %v674_v20, %v673_v25 }
  0x51   : > { %1316 = vperm.xlu1 %5177, %v4197_v51   ;;  %1311 = vperm.xlu0 %5176, %v4196_v52   ;;  %v677_v31 = vadd.f32 %v676_v23, %v675_v26  ;;  %v811_v51 = vld [vmem:[%s7180_s27 + $0x18] sm:$0xff]  ;;  %v810_v52 = vld [vmem:[%s7180_s27 + $0x10] sm:$0xff] }
  0x53   : > { %v679_v32 = vadd.f32 %v678_v24, %v677_v31  ;;  %v4160_v24 = vld [vmem:[%s7180_s27 + $0xa0] sm:$0xff] }
  0x55   : > { %1507 = vperm.xlu1 %5177, %v4221_v55   ;;  %1502 = vperm.xlu0 %5176, %v4220_v56   ;;  %v681_v35 = vadd.f32 %v680_v27, %v679_v32  ;;  %v812_v55 = vld [vmem:[%s7180_s27 + $0x20] sm:$0xff]  ;;  %v815_v56 = vld [vmem:[%s7180_s27 + $0x38] sm:$0xff] }
  0x57   : > { %v683_v36 = vadd.f32 %v682_v28, %v681_v35 }
  0x59   : > { %1517 = vperm.xlu1 %5177, %v4223_v59   ;;  %1512 = vperm.xlu0 %5176, %v4222_v60   ;;  %v684_v39 = vrot.slane %v683_v36, 4  ;;  %v4156_v59 = vld [vmem:[%s7180_s27 + $0x80] sm:$0xff] }
  0x5b   : > { %v685_v40 = vadd.f32 %v684_v39, %v683_v36  ;;  %v4162_v39 = vld [vmem:[%s7180_s27 + $0xb0] sm:$0xff] }
  0x5d   : > { %1527 = vperm.xlu1 %5177, %v4225_v6   ;;  %1522 = vperm.xlu0 %5176, %v4224_v13   ;;  %v686_v42 = vrot.slane %v685_v40, 2 }
  0x5f   : > { %v687_v45 = vadd.f32 %v686_v42, %v685_v40 }
  0x61   : > { %1537 = vperm.xlu1 %5177, %v4227_v21   ;;  %1532 = vperm.xlu0 %5176, %v4226_v22   ;;  %v688_v46 = vrot.slane %v687_v45, 1 }
  0x63   : > { %v689_v49 = vadd.f32 %v688_v46, %v687_v45  ;;  %v4209_v46 = vld [vmem:[%s7180_s27 + $0x188] sm:$0xff] }
  0x65   : > { %1662 = vperm.xlu1 %5177, %v4239_v29   ;;  %1657 = vperm.xlu0 %5176, %v4238_v30   ;;  %v690_v50 = vmul.f32 0.015625, %v689_v49  ;;  %v4210_v49 = vld [vmem:[%s7180_s27 + $0x190] sm:$0xff] }
  0x67   : > { %v691_v53 = vadd.f32 1e-05, %v690_v50 }
  0x69   : > { %1672 = vperm.xlu1 %5177, %v4241_v33   ;;  %1667 = vperm.xlu0 %5176, %v4240_v34   ;;  %5238 = vrsqrt.f32 %v691_v53 }
  0x6d   : > { %1682 = vperm.xlu1 %5177, %v4243_v37   ;;  %1677 = vperm.xlu0 %5176, %v4242_v38   ;;  %v4163_v38 = vld [vmem:[%s7180_s27 + $0xb8] sm:$0xff] }
  0x71   : > { %1692 = vperm.xlu1 %5177, %v4245_v43   ;;  %1687 = vperm.xlu0 %5176, %v4244_v44  }
  0x73   : > { %v5239_v60 = vpop.eup %5238 }
  0x74   : > { %v694_v6 = vmul.f32 %v5239_v60, %v5678_v63  ;;  %v700_v7 = vmul.f32 %v5239_v60, %v5693_v5  ;;  %v695_v8 = vmul.f32 %v5239_v60, %v5681_v0  ;;  %v693_v9 = vmul.f32 %v5239_v60, %v5675_v62  ;;  %v4159_v63 = vld [vmem:[%s7180_s27 + $0x98] sm:$0xff]  ;;  %v4158_v62 = vld [vmem:[%s7180_s27 + $0x90] sm:$0xff] }
  0x75   : > { %823 = vperm.xlu1 %5177, %v809_v47   ;;  %818 = vperm.xlu0 %5176, %v808_v48   ;;  %v697_v11 = vmul.f32 %v5239_v60, %v5687_v2  ;;  %v696_v12 = vmul.f32 %v5239_v60, %v5684_v1  ;;  %v699_v13 = vmul.f32 %v5239_v60, %v5691_v4  ;;  %v4208_v47 = vld [vmem:[%s7180_s27 + $0x180] sm:$0xff]  ;;  %v4211_v48 = vld [vmem:[%s7180_s27 + $0x198] sm:$0xff] }
  0x76   : > { %v708_v0 = vmul.f32 %v4136_v61, %v694_v6  ;;  %v714_v5 = vmul.f32 %v4136_v61, %v700_v7  ;;  %v709_v14 = vmul.f32 %v4136_v61, %v695_v8  ;;  %v707_v15 = vmul.f32 %v4136_v61, %v693_v9  ;;  %v4215_v8 = vld [vmem:[%s7180_s27 + $0x1b8] sm:$0xff]  ;;  %v4214_v9 = vld [vmem:[%s7180_s27 + $0x1b0] sm:$0xff] }
  0x77   : > { %v711_v16 = vmul.f32 %v4136_v61, %v697_v11  ;;  %v710_v17 = vmul.f32 %v4136_v61, %v696_v12  ;;  %v713_v18 = vmul.f32 %v4136_v61, %v699_v13  ;;  %v698_v2 = vmul.f32 %v5239_v60, %v5689_v3  ;;  %v4161_v3 = vld [vmem:[%s7180_s27 + $0xa8] sm:$0xff] }
  0x78   : > { %v5805_v1 = vadd.f32 %v4137_v10, %v708_v0  ;;  %v5807_v4 = vadd.f32 %v4137_v10, %v714_v5  ;;  %v5809_v19 = vadd.f32 %v4137_v10, %v709_v14  ;;  %v5811_v20 = vadd.f32 %v4137_v10, %v707_v15 }
  0x79   : > { %833 = vperm.xlu1 %5177, %v811_v51   ;;  %828 = vperm.xlu0 %5176, %v810_v52   ;;  %v5813_v21 = vadd.f32 %v4137_v10, %v711_v16  ;;  %v5815_v22 = vadd.f32 %v4137_v10, %v710_v17  ;;  %v5817_v23 = vadd.f32 %v4137_v10, %v713_v18  ;;  %v797_v17 = vlaneseq }
  0x7a   : > { %v730_v25 = vsub.f32 0.0, %v5805_v1  ;;  %v736_v26 = vsub.f32 0.0, %v5807_v4  ;;  %v731_v27 = vsub.f32 0.0, %v5809_v19  ;;  %v729_v28 = vsub.f32 0.0, %v5811_v20 }
  0x7b   : > { %v733_v29 = vsub.f32 0.0, %v5813_v21  ;;  %v732_v30 = vsub.f32 0.0, %v5815_v22  ;;  %v735_v31 = vsub.f32 0.0, %v5817_v23  ;;  %v712_v32 = vmul.f32 %v4136_v61, %v698_v2 }
  0x7c   : > { %v739_v33 = vmul.f32 1.442695, %v730_v25  ;;  %v751_v34 = vmul.f32 1.442695, %v736_v26  ;;  %v741_v35 = vmul.f32 1.442695, %v731_v27 }
  0x7d   : > { %843 = vperm.xlu1 %5177, %v813_v54   ;;  %838 = vperm.xlu0 %5176, %v812_v55   ;;  %v737_v36 = vmul.f32 1.442695, %v729_v28  ;;  %v5832_v37 = vadd.f32 %v4137_v10, %v712_v32  ;;  %v745_v40 = vmul.f32 1.442695, %v733_v29  ;;  %v743_v42 = vmul.f32 1.442695, %v732_v30 }
  0x7e   : > { %5240 = vpow2.f32 %v739_v33  ;;  %v749_v44 = vmul.f32 1.442695, %v735_v31  ;;  %v4213_v54 = vld [vmem:[%s7180_s27 + $0x1a8] sm:$0xff]  ;;  %v4212_v55 = vld [vmem:[%s7180_s27 + $0x1a0] sm:$0xff]  ;;  %v5899_v31 = vshrl.u32 %v797_v17, 7 }
  0x7f   : > { %5242 = vpow2.f32 %v751_v34  ;;  %v734_v43 = vsub.f32 0.0, %v5832_v37 }
  0x80   : > { %5244 = vpow2.f32 %v741_v35  ;;  %vm799_vm1 = vcmp.lt.s32.totalorder %v5899_v31, 1  ;;  %vm1035_vm3 = vcmp.lt.s32.totalorder %v5899_v31, 7 }
  0x81   : > { %853 = vperm.xlu1 %5177, %v815_v56   ;;  %848 = vperm.xlu0 %5176, %v814_v57   ;;  %5246 = vpow2.f32 %v737_v36  ;;  %v747_v45 = vmul.f32 1.442695, %v734_v43 }
  0x82   : > { %5248 = vpow2.f32 %v745_v40 }
  0x83   : > { %5250 = vpow2.f32 %v743_v42 }
  0x84   : > { %5252 = vpow2.f32 %v749_v44 }
  0x85   : > { %1060 = vperm.xlu1 %5177, %v4157_v58   ;;  %1055 = vperm.xlu0 %5176, %v4156_v59   ;;  %5254 = vpow2.f32 %v747_v45 }
  0x88   : > { %v5241_v50 = vpop.eup %5240 }
  0x89   : > { %1070 = vperm.xlu1 %5177, %v4159_v63   ;;  %1065 = vperm.xlu0 %5176, %v4158_v62   ;;  %v5243_v51 = vpop.eup %5242  ;;  %v754_v52 = vadd.f32 1.0, %v5241_v50 }
  0x8a   : > { %v5245_v53 = vpop.eup %5244  ;;  %v760_v56 = vadd.f32 1.0, %v5243_v51  ;;  %v5182_v51 = vld [vmem:[%s7107_s5 + $0x50] sm:$0xff]  }
  0x8b   : > { %v5247_v57 = vpop.eup %5246  ;;  %5256 = vrcp.f32 %v754_v52  ;;  %v755_v58 = vadd.f32 1.0, %v5245_v53 }
  0x8c   : > { %v5249_v59 = vpop.eup %5248  ;;  %5258 = vrcp.f32 %v760_v56  ;;  %v753_v60 = vadd.f32 1.0, %v5247_v57 }
  0x8d   : > { %1080 = vperm.xlu1 %5177, %v4161_v3   ;;  %1075 = vperm.xlu0 %5176, %v4160_v24   ;;  %v5251_v61 = vpop.eup %5250  ;;  %5260 = vrcp.f32 %v755_v58  ;;  %v757_v6 = vadd.f32 1.0, %v5249_v59 }
  0x8e   : > { %v5253_v7 = vpop.eup %5252  ;;  %5262 = vrcp.f32 %v753_v60  ;;  %v756_v10 = vadd.f32 1.0, %v5251_v61 }
  0x8f   : > { %v5255_v11 = vpop.eup %5254  ;;  %5264 = vrcp.f32 %v757_v6  ;;  %v759_v12 = vadd.f32 1.0, %v5253_v7 }
  0x90   : > { %5266 = vrcp.f32 %v756_v10  ;;  %v758_v13 = vadd.f32 1.0, %v5255_v11 }
  0x91   : > { %1090 = vperm.xlu1 %5177, %v4163_v38   ;;  %1085 = vperm.xlu0 %5176, %v4162_v39   ;;  %5268 = vrcp.f32 %v759_v12 }
  0x92   : > { %5270 = vrcp.f32 %v758_v13 }
  0x95   : > { %1441 = vperm.xlu1 %5177, %v4209_v46   ;;  %1436 = vperm.xlu0 %5176, %v4208_v47   ;;  %v5257_v0 = vpop.eup %5256 }
  0x96   : > { %v5259_v5 = vpop.eup %5258  ;;  %v5870_v14 = vmul.f32 %v5257_v0, %v5805_v1 }
  0x97   : > { %v5261_v15 = vpop.eup %5260  ;;  %v5873_v16 = vmul.f32 %v5259_v5, %v5807_v4 }
  0x98   : > { %v5263_v18 = vpop.eup %5262  ;;  %v5878_v3 = vmul.f32 %v5261_v15, %v5809_v19  ;;  %v790_v42 = vrot.slane %v5870_v14, 7 }
  0x99   : > { %1451 = vperm.xlu1 %5177, %v4211_v48   ;;  %1446 = vperm.xlu0 %5176, %v4210_v49   ;;  %v5265_v25 = vpop.eup %5264  ;;  %v5883_v26 = vmul.f32 %v5263_v18, %v5811_v20  ;;  %v796_v43 = vrot.slane %v5873_v16, 7 }
  0x9a   : > { %v5267_v27 = vpop.eup %5266  ;;  %v5890_v28 = vmul.f32 %v5265_v25, %v5813_v21  ;;  %v791_v50 = vrot.slane %v5878_v3, 7 }
  0x9b   : > { %v5269_v29 = vpop.eup %5268  ;;  %v5897_v20 = vmul.f32 %v5267_v27, %v5815_v22  ;;  %v789_v40 = vrot.slane %v5883_v26, 7  ;;  %v1028_v27 = vrot.slane %v5870_v14, 1 }
  0x9c   : > { %v5271_v32 = vpop.eup %5270  ;;  %v5906_v21 = vmul.f32 %v5269_v29, %v5817_v23  ;;  %v5181_v23 = vld [vmem:[%s7107_s5 + $0x38] sm:$0xff]   ;;  %v5969_v6 = vsel %vm799_vm1, %v790_v42, %v791_v50  ;;  %v793_v7 = vrot.slane %v5890_v28, 7 }
  0x9d   : > { %1461 = vperm.xlu1 %5177, %v4213_v54   ;;  %1456 = vperm.xlu0 %5176, %v4212_v55   ;;  %v5913_v22 = vmul.f32 %v5271_v32, %v5832_v37  ;;  %v5936_v48 = vsel %vm799_vm1, %v789_v40, %v790_v42  ;;  %v5940_v49 = vsel %vm799_vm1, %v796_v43, %v789_v40  ;;  %v1027_v32 = vrot.slane %v5883_v26, 1 }
  0x9e   : > { %v795_v15 = vrot.slane %v5906_v21, 7 }
  0xa0   : > { %v6003_v29 = vsel %vm799_vm1, %v795_v15, %v796_v43 }
  0xa1   : > { %1471 = vperm.xlu1 %5177, %v4215_v8   ;;  %1466 = vperm.xlu0 %5176, %v4214_v9   ;;  %v794_v8 = vrot.slane %v5913_v22, 7 }
  0xa3   : > { %v5985_v0 = vsel %vm799_vm1, %v793_v7, %v794_v8 }
  0xa4   : > { %v5865_v63 = vpop.permute.xlu1 %893  ;;  %v5867_v62 = vpop.permute.xlu0 %883 }
  0xa5   : > { %v923_v1 = vmul.f32 %v5865_v63, %v5870_v14  ;;  %v921_v19 = vmul.f32 %v5867_v62, %v5873_v16 }
  0xa8   : > { %v5875_v2 = vpop.permute.xlu1 %898  ;;  %v5880_v24 = vpop.permute.xlu0 %888 }
  0xa9   : > { %v924_v4 = vmul.f32 %v5875_v2, %v5878_v3  ;;  %v922_v30 = vmul.f32 %v5880_v24, %v5883_v26 }
  0xab   : > { %v930_v33 = vpack.c.bf16 %v924_v4, %v923_v1  ;;  %v929_v39 = vpack.c.bf16 %v922_v30, %v921_v19  ;;  %v6007_v19 = vsel %vm799_vm1, %v794_v8, %v795_v15  ;;  %v1029_v30 = vrot.slane %v5878_v3, 1 }
  0xac   : > { %v5901_v34 = vpop.permute.xlu1 %908  ;;  %v5903_v35 = vpop.permute.xlu0 %903 }
  0xad   : > { %v926_v36 = vmul.f32 %v5901_v34, %v5890_v28  ;;  %v925_v38 = vmul.f32 %v5903_v35, %v5897_v20  ;;  %4611 = vmatprep.mubr.msk.bf16.mxu0 %vm630_vm0, %v929_v39 }
  0xae   : > { %4612 = vmatmul.mubr.msk.bf16.vlgmr.msra.gmra.mrb[0].mxu0 %vm630_vm0, %v930_v33  ;;  %v5183_v33 = vld [vmem:[%s7107_s5 + $0x58] sm:$0xff]  }
  0xaf   : > { %v931_v44 = vpack.c.bf16 %v926_v36, %v925_v38  ;;  %4620 = vmatpush3.bf16.msra.mxu0 %v5641_v41  ;;  %v792_v41 = vrot.slane %v5897_v20, 7  ;;  %v7129_v36 = vmov 0.0  }
  0xb0   : > { %v5924_v45 = vpop.permute.xlu1 %918  ;;  %v5926_v37 = vpop.permute.xlu0 %913  ;;  %4621 = vmatprep.subr.bf16.mxu0 %v5181_v23  ;;  %4754 = vmatprep.mubr.msk.f32.mxu1 %vm5383_vm2, %v7129_v36 }
  0xb1   : > { %v928_v46 = vmul.f32 %v5924_v45, %v5906_v21  ;;  %v927_v47 = vmul.f32 %v5926_v37, %v5913_v22  ;;  %4615 = vmatprep.mubr.msk.bf16.mxu0 %vm630_vm0, %v931_v44  ;;  %v5965_v61 = vsel %vm799_vm1, %v791_v50, %v792_v41  ;;  %v5989_v5 = vsel %vm799_vm1, %v792_v41, %v793_v7  ;;  %v5184_v50 = vld [vmem:[%s7107_s5 + $0x70] sm:$0xff]  }
  0xb2   : > { %v6033_v44 = vsel %vm1035_vm3, %v1027_v32, %v1028_v27 }
  0xb3   : > { %v932_v53 = vpack.c.bf16 %v928_v46, %v927_v47  ;;  %4622 = vmatpush3.bf16.msra.mxu0 %v5181_v23  ;;  %v6029_v23 = vsel %vm1035_vm3, %v1028_v27, %v1029_v30  ;;  %v1030_v46 = vrot.slane %v5897_v20, 1  ;;  %v1031_v47 = vrot.slane %v5890_v28, 1 }
  0xb4   : > { %v5949_v54 = vpop.permute.xlu1 %1126  ;;  %v5951_v55 = vpop.permute.xlu0 %1121  ;;  %4631 = vmatprep.subr.bf16.mxu0 %v5182_v51 }
  0xb5   : > { %v1160_v57 = vmul.f32 %v5949_v54, %v5936_v48  ;;  %v1159_v58 = vmul.f32 %v5951_v55, %v5940_v49  ;;  %v6050_v7 = vsel %vm1035_vm3, %v1030_v46, %v1031_v47  ;;  %v6054_v8 = vsel %vm1035_vm3, %v1029_v30, %v1030_v46 }
  0xb6   : > { %4616 = vmatmul.mubr.msk.bf16.gmra.mrb[4].mxu0 %vm630_vm0, %v932_v53 }
  0xb7   : > { %v1167_v9 = vpack.c.bf16 %v1160_v57, %v1159_v58 }
  0xb8   : > { %v5974_v10 = vpop.permute.xlu1 %1136  ;;  %v5976_v11 = vpop.permute.xlu0 %1131 }
  0xb9   : > { %v1162_v12 = vmul.f32 %v5974_v10, %v5965_v61  ;;  %v1161_v13 = vmul.f32 %v5976_v11, %v5969_v6  ;;  %4623 = vmatprep.mubr.msk.bf16.mxu0 %vm630_vm0, %v1167_v9  ;;  %v1032_v9 = vrot.slane %v5913_v22, 1 }
  0xbb   : > { %v1168_v17 = vpack.c.bf16 %v1162_v12, %v1161_v13  ;;  %v1033_v12 = vrot.slane %v5906_v21, 1  ;;  %v6074_v30 = vsel %vm1035_vm3, %v1031_v47, %v1032_v9 }
  0xbc   : > { %v5992_v18 = vpop.permute.xlu1 %1146  ;;  %v5994_v25 = vpop.permute.xlu0 %1141 }
  0xbd   : > { %v1164_v1 = vmul.f32 %v5992_v18, %v5985_v0  ;;  %v1163_v4 = vmul.f32 %v5994_v25, %v5989_v5 }
  0xbe   : > { %4624 = vmatmul.mubr.msk.bf16.vlgmr.msra.gmra.mrb[0].mxu0 %vm630_vm0, %v1168_v17 }
  0xbf   : > { %v1169_v38 = vpack.c.bf16 %v1164_v1, %v1163_v4  ;;  %4632 = vmatpush3.bf16.msra.mxu0 %v5182_v51  ;;  %v6070_v4 = vsel %vm1035_vm3, %v1032_v9, %v1033_v12 }
  0xc0   : > { %v6018_v39 = vpop.permute.xlu1 %1156  ;;  %v6020_v40 = vpop.permute.xlu0 %1151  ;;  %4633 = vmatprep.subr.bf16.mxu0 %v5183_v33 }
  0xc1   : > { %v1166_v42 = vmul.f32 %v6018_v39, %v6003_v29  ;;  %v1165_v43 = vmul.f32 %v6020_v40, %v6007_v19  ;;  %4627 = vmatprep.mubr.msk.bf16.mxu0 %vm630_vm0, %v1169_v38 }
  0xc3   : > { %v1170_v41 = vpack.c.bf16 %v1166_v42, %v1165_v43  ;;  %4634 = vmatpush3.bf16.msra.mxu0 %v5183_v33  ;;  %v1034_v33 = vrot.slane %v5873_v16, 1 }
  0xc4   : > { %v6040_v51 = vpop.permute.xlu1 %1286  ;;  %v6042_v53 = vpop.permute.xlu0 %1281  ;;  %4643 = vmatprep.subr.bf16.mxu0 %v5184_v50 }
  0xc5   : > { %v1320_v57 = vmul.f32 %v6040_v51, %v6029_v23  ;;  %v1319_v58 = vmul.f32 %v6042_v53, %v6033_v44  ;;  %v6091_v47 = vsel %vm1035_vm3, %v1033_v12, %v1034_v33  ;;  %v5186_v12 = vld [vmem:[%s7107_s5 + $0x80] sm:$0xff]  }
  0xc6   : > { %4628 = vmatmul.mubr.msk.bf16.gmra.mrb[4].mxu0 %vm630_vm0, %v1170_v41 }
  0xc7   : > { %v1327_v13 = vpack.c.bf16 %v1320_v57, %v1319_v58  ;;  %v6087_v57 = vsel %vm1035_vm3, %v1034_v33, %v1027_v32  ;;  %v5185_v58 = vld [vmem:[%s7107_s5 + $0x78] sm:$0xff]  }
  0xc8   : > { %v6059_v15 = vpop.permute.xlu1 %1296  ;;  %v6061_v17 = vpop.permute.xlu0 %1291 }
  0xc9   : > { %v1322_v27 = vmul.f32 %v6059_v15, %v6050_v7  ;;  %v1321_v1 = vmul.f32 %v6061_v17, %v6054_v8  ;;  %4635 = vmatprep.mubr.msk.bf16.mxu0 %vm630_vm0, %v1327_v13 }
  0xcb   : > { %v1328_v38 = vpack.c.bf16 %v1322_v27, %v1321_v1 }
  0xcc   : > { %v6077_v42 = vpop.permute.xlu1 %1306  ;;  %v6079_v43 = vpop.permute.xlu0 %1301 }
  0xcd   : > { %7183 = vst [vmem:[#allocation13_spill] sm:$0xff] %v6077_v42  ;;  %7184 = vst [vmem:[#allocation14_spill] sm:$0xff] %v6079_v43  ;;  %v1324_v46 = vmul.f32 %v6077_v42, %v6070_v4  ;;  %v1323_v41 = vmul.f32 %v6079_v43, %v6074_v30 }
  0xce   : > { %4636 = vmatmul.mubr.msk.bf16.vlgmr.msra.gmra.mrb[0].mxu0 %vm630_vm0, %v1328_v38 }
  0xcf   : > { %v1329_v9 = vpack.c.bf16 %v1324_v46, %v1323_v41  ;;  %4644 = vmatpush3.bf16.msra.mxu0 %v5184_v50 }
  0xd0   : > { %v6097_v13 = vpop.permute.xlu1 %1316  ;;  %v6099_v27 = vpop.permute.xlu0 %1311  ;;  %4645 = vmatprep.subr.bf16.mxu0 %v5185_v58 }
  0xd1   : > { %7185 = vst [vmem:[#allocation15_spill] sm:$0xff] %v6097_v13  ;;  %7186 = vst [vmem:[#allocation16_spill] sm:$0xff] %v6099_v27  ;;  %v1326_v32 = vmul.f32 %v6097_v13, %v6087_v57  ;;  %v1325_v1 = vmul.f32 %v6099_v27, %v6091_v47  ;;  %4639 = vmatprep.mubr.msk.bf16.mxu0 %vm630_vm0, %v1329_v9 }
  0xd3   : > { %v1330_v33 = vpack.c.bf16 %v1326_v32, %v1325_v1  ;;  %4646 = vmatpush3.bf16.msra.mxu0 %v5185_v58 }
  0xd4   : > { %v6109_v38 = vpop.permute.xlu1 %1507  ;;  %v6111_v46 = vpop.permute.xlu0 %1502  ;;  %4655 = vmatprep.subr.bf16.mxu0 %v5186_v12 }
  0xd5   : > { %7187 = vst [vmem:[#allocation17_spill] sm:$0xff] %v6109_v38  ;;  %7188 = vst [vmem:[#allocation18_spill] sm:$0xff] %v6111_v46  ;;  %v1541_v50 = vmul.f32 %v6109_v38, %v5878_v3  ;;  %v1540_v41 = vmul.f32 %v6111_v46, %v5870_v14 }
  0xd6   : > { %4640 = vmatmul.mubr.msk.bf16.gmra.mrb[4].mxu0 %vm630_vm0, %v1330_v33 }
  0xd7   : > { %v1548_v60 = vpack.c.bf16 %v1541_v50, %v1540_v41  ;;  %v5187_v41 = vld [vmem:[%s7107_s5 + $0x88] sm:$0xff]  }
  0xd8   : > { %v6118_v9 = vpop.permute.xlu1 %1517  ;;  %v6120_v36 = vpop.permute.xlu0 %1512 }
  0xd9   : > { %7189 = vst [vmem:[#allocation19_spill] sm:$0xff] %v6118_v9  ;;  %7190 = vst [vmem:[#allocation20_spill] sm:$0xff] %v6120_v36  ;;  %v1543_v32 = vmul.f32 %v6118_v9, %v5890_v28  ;;  %v1542_v1 = vmul.f32 %v6120_v36, %v5897_v20  ;;  %4647 = vmatprep.mubr.msk.bf16.mxu0 %vm630_vm0, %v1548_v60 }
  0xdb   : > { %v1549_v59 = vpack.c.bf16 %v1543_v32, %v1542_v1 }
  0xdc   : > { %v6127_v56 = vpop.permute.xlu1 %1527  ;;  %v6129_v58 = vpop.permute.xlu0 %1522 }
  0xdd   : > { %7191 = vst [vmem:[#allocation21_spill] sm:$0xff] %v6127_v56  ;;  %7192 = vst [vmem:[#allocation22_spill] sm:$0xff] %v6129_v58  ;;  %v1545_v33 = vmul.f32 %v6127_v56, %v5906_v21  ;;  %v1544_v50 = vmul.f32 %v6129_v58, %v5913_v22 }
  0xde   : > { %4648 = vmatmul.mubr.msk.bf16.vlgmr.msra.gmra.mrb[0].mxu0 %vm630_vm0, %v1549_v59 }
  0xdf   : > { %v1550_v52 = vpack.c.bf16 %v1545_v33, %v1544_v50  ;;  %4656 = vmatpush3.bf16.msra.mxu0 %v5186_v12  ;;  %v5188_v33 = vld [vmem:[%s7107_s5] sm:$0xff]  }
  0xe0   : > { %v6139_v9 = vpop.permute.xlu1 %1537  ;;  %v6141_v60 = vpop.permute.xlu0 %1532  ;;  %4657 = vmatprep.subr.bf16.mxu0 %v5187_v41 }
  0xe1   : > { %7193 = vst [vmem:[#allocation23_spill] sm:$0xff] %v6139_v9  ;;  %7194 = vst [vmem:[#allocation24_spill] sm:$0xff] %v6141_v60  ;;  %v1547_v32 = vmul.f32 %v6139_v9, %v5883_v26  ;;  %v1546_v1 = vmul.f32 %v6141_v60, %v5873_v16  ;;  %4651 = vmatprep.mubr.msk.bf16.mxu0 %vm630_vm0, %v1550_v52 }
  0xe3   : > { %v1551_v50 = vpack.c.bf16 %v1547_v32, %v1546_v1  ;;  %4658 = vmatpush3.bf16.msra.mxu0 %v5187_v41 }
  0xe4   : > { %v6151_v59 = vpop.permute.xlu1 %1662  ;;  %v6153_v56 = vpop.permute.xlu0 %1657  ;;  %4667 = vmatprep.subr.bf16.mxu0 %v5188_v33 }
  0xe5   : > { %7195 = vst [vmem:[#allocation25_spill] sm:$0xff] %v6151_v59  ;;  %7196 = vst [vmem:[#allocation26_spill] sm:$0xff] %v6153_v56  ;;  %v1696_v12 = vmul.f32 %v6151_v59, %v6054_v8  ;;  %v1695_v9 = vmul.f32 %v6153_v56, %v6029_v23 }
  0xe6   : > { %4652 = vmatmul.mubr.msk.bf16.gmra.mrb[4].mxu0 %vm630_vm0, %v1551_v50 }
  0xe7   : > { %v1703_v60 = vpack.c.bf16 %v1696_v12, %v1695_v9  ;;  %v5189_v12 = vld [vmem:[%s7107_s5 + $0x8] sm:$0xff]  }
  0xe8   : > { %v6160_v52 = vpop.permute.xlu1 %1672  ;;  %v6162_v58 = vpop.permute.xlu0 %1667 }
  0xe9   : > { %7197 = vst [vmem:[#allocation27_spill] sm:$0xff] %v6160_v52  ;;  %7198 = vst [vmem:[#allocation28_spill] sm:$0xff] %v6162_v58  ;;  %v1698_v32 = vmul.f32 %v6160_v52, %v6074_v30  ;;  %v1697_v1 = vmul.f32 %v6162_v58, %v6050_v7  ;;  %4659 = vmatprep.mubr.msk.bf16.mxu0 %vm630_vm0, %v1703_v60 }
  0xeb   : > { %v1704_v59 = vpack.c.bf16 %v1698_v32, %v1697_v1 }
  0xec   : > { %v6169_v36 = vpop.permute.xlu1 %1682  ;;  %v6171_v41 = vpop.permute.xlu0 %1677 }
  0xed   : > { %7199 = vst [vmem:[#allocation29_spill] sm:$0xff] %v6169_v36  ;;  %7200 = vst [vmem:[#allocation30_spill] sm:$0xff] %v6171_v41  ;;  %v1700_v9 = vmul.f32 %v6169_v36, %v6091_v47  ;;  %v1699_v50 = vmul.f32 %v6171_v41, %v6070_v4 }
  0xee   : > { %4660 = vmatmul.mubr.msk.bf16.vlgmr.msra.gmra.mrb[0].mxu0 %vm630_vm0, %v1704_v59 }
  0xef   : > { %v1705_v52 = vpack.c.bf16 %v1700_v9, %v1699_v50  ;;  %4668 = vmatpush3.bf16.msra.mxu0 %v5188_v33  ;;  %v5190_v9 = vld [vmem:[%s7107_s5 + $0x20] sm:$0xff]  }
  0xf0   : > { %v6181_v58 = vpop.permute.xlu1 %1692  ;;  %v6183_v60 = vpop.permute.xlu0 %1687  ;;  %4669 = vmatprep.subr.bf16.mxu0 %v5189_v12 }
  0xf1   : > { %7201 = vst [vmem:[#allocation31_spill] sm:$0xff] %v6181_v58  ;;  %7202 = vst [vmem:[#allocation32_spill] sm:$0xff] %v6183_v60  ;;  %v1702_v32 = vmul.f32 %v6181_v58, %v6033_v44  ;;  %v1701_v1 = vmul.f32 %v6183_v60, %v6087_v57  ;;  %4663 = vmatprep.mubr.msk.bf16.mxu0 %vm630_vm0, %v1705_v52 }
  0xf3   : > { %v1706_v50 = vpack.c.bf16 %v1702_v32, %v1701_v1  ;;  %4670 = vmatpush3.bf16.msra.mxu0 %v5189_v12 }
  0xf4   : > { %v6193_v59 = vpop.permute.xlu1 %823  ;;  %v6195_v36 = vpop.permute.xlu0 %818  ;;  %4679 = vmatprep.subr.bf16.mxu0 %v5190_v9 }
  0xf5   : > { %v857_v33 = vmul.f32 %v6193_v59, %v5940_v49  ;;  %v856_v58 = vmul.f32 %v6195_v36, %v6003_v29 }
  0xf6   : > { %4664 = vmatmul.mubr.msk.bf16.gmra.mrb[4].mxu0 %vm630_vm0, %v1706_v50 }
  0xf7   : > { %v864_v60 = vpack.c.bf16 %v857_v33, %v856_v58  ;;  %v5191_v33 = vld [vmem:[%s7107_s5 + $0x28] sm:$0xff]  }
  0xf8   : > { %v6202_v52 = vpop.permute.xlu1 %833  ;;  %v6204_v41 = vpop.permute.xlu0 %828 }
  0xf9   : > { %v859_v32 = vmul.f32 %v6202_v52, %v5969_v6  ;;  %v858_v1 = vmul.f32 %v6204_v41, %v5936_v48  ;;  %4671 = vmatprep.mubr.msk.bf16.mxu0 %vm630_vm0, %v864_v60 }
  0xfb   : > { %v865_v56 = vpack.c.bf16 %v859_v32, %v858_v1 }
  0xfc   : > { %v6211_v38 = vpop.permute.xlu1 %843  ;;  %v6213_v12 = vpop.permute.xlu0 %838 }
  0xfd   : > { %7203 = vst [vmem:[#allocation33_spill] sm:$0xff] %v6211_v38  ;;  %v861_v58 = vmul.f32 %v6211_v38, %v5989_v5  ;;  %v860_v50 = vmul.f32 %v6213_v12, %v5965_v61 }
  0xfe   : > { %4672 = vmatmul.mubr.msk.bf16.vlgmr.msra.gmra.mrb[0].mxu0 %vm630_vm0, %v865_v56 }
  0xff   : > { %v866_v46 = vpack.c.bf16 %v861_v58, %v860_v50  ;;  %4680 = vmatpush3.bf16.msra.mxu0 %v5190_v9  ;;  %v5192_v58 = vld [vmem:[%s7107_s5 + $0x40] sm:$0xff]  }
 0x100   : > { %v6223_v13 = vpop.permute.xlu1 %853  ;;  %v6225_v60 = vpop.permute.xlu0 %848  ;;  %4681 = vmatprep.subr.bf16.mxu0 %v5191_v33 }
 0x101   : > { %7204 = vst [vmem:[#allocation34_spill] sm:$0xff] %v6223_v13  ;;  %7205 = vst [vmem:[#allocation35_spill] sm:$0xff] %v6225_v60  ;;  %v863_v32 = vmul.f32 %v6223_v13, %v6007_v19  ;;  %v862_v1 = vmul.f32 %v6225_v60, %v5985_v0  ;;  %4675 = vmatprep.mubr.msk.bf16.mxu0 %vm630_vm0, %v866_v46 }
 0x103   : > { %v867_v50 = vpack.c.bf16 %v863_v32, %v862_v1  ;;  %4682 = vmatpush3.bf16.msra.mxu0 %v5191_v33 }
 0x104   : > { %v6235_v56 = vpop.permute.xlu1 %1060  ;;  %v6237_v27 = vpop.permute.xlu0 %1055  ;;  %4691 = vmatprep.subr.bf16.mxu0 %v5192_v58 }
 0x105   : > { %7206 = vst [vmem:[#allocation36_spill] sm:$0xff] %v6235_v56  ;;  %7207 = vst [vmem:[#allocation37_spill] sm:$0xff] %v6237_v27  ;;  %v1094_v9 = vmul.f32 %v6235_v56, %v6033_v44  ;;  %v1093_v42 = vmul.f32 %v6237_v27, %v6087_v57 }
 0x106   : > { %4676 = vmatmul.mubr.msk.bf16.gmra.mrb[4].mxu0 %vm630_vm0, %v867_v50  ;;  %v2189_v50 = vld [vmem:[%s618_s15] sm:$0x1] }
 0x107   : > { %v1101_v46 = vpack.c.bf16 %v1094_v9, %v1093_v42 }
 0x108   : > { %v6244_v43 = vpop.permute.xlu1 %1070  ;;  %v6246_v13 = vpop.permute.xlu0 %1065 }
 0x109   : > { %v1096_v32 = vmul.f32 %v6244_v43, %v6054_v8  ;;  %v1095_v1 = vmul.f32 %v6246_v13, %v6029_v23  ;;  %4683 = vmatprep.mubr.msk.bf16.mxu0 %vm630_vm0, %v1101_v46  ;;  %v5193_v23 = vld [vmem:[%s7107_s5 + $0x48] sm:$0xff]  }
 0x10b   : > { %v1102_v44 = vpack.c.bf16 %v1096_v32, %v1095_v1  ;;  %v2190_v1 = vsub.f32 0.0, %v2189_v50 }
 0x10c   : > { %v6253_v56 = vpop.permute.xlu1 %1080  ;;  %v6255_v57 = vpop.permute.xlu0 %1075 }
 0x10d   : > { %7208 = vst [vmem:[#allocation38_spill] sm:$0xff] %v6253_v56  ;;  %7209 = vst [vmem:[#allocation39_spill] sm:$0xff] %v6255_v57  ;;  %v1098_v42 = vmul.f32 %v6253_v56, %v6074_v30  ;;  %v1097_v8 = vmul.f32 %v6255_v57, %v6050_v7  ;;  %v5194_v7 = vld [vmem:[%s7107_s5 + $0x60] sm:$0xff]  }
 0x10e   : > { %4684 = vmatmul.mubr.msk.bf16.vlgmr.msra.gmra.mrb[0].mxu0 %vm630_vm0, %v1102_v44 }
 0x10f   : > { %v1103_v33 = vpack.c.bf16 %v1098_v42, %v1097_v8  ;;  %4692 = vmatpush3.bf16.msra.mxu0 %v5192_v58  ;;  %v2191_v42 = vmul.f32 1.442695, %v2190_v1  ;;  %v5195_v8 = vld [vmem:[%s7107_s5 + $0x68] sm:$0xff]  }
 0x110   : > { %v6269_v9 = vpop.permute.xlu1 %1090  ;;  %v6271_v46 = vpop.permute.xlu0 %1085  ;;  %4693 = vmatprep.subr.bf16.mxu0 %v5193_v23 }
 0x111   : > { %7211 = vst [vmem:[#allocation40_spill] sm:$0xff] %v6269_v9  ;;  %7212 = vst [vmem:[#allocation41_spill] sm:$0xff] %v6271_v46  ;;  %v1100_v32 = vmul.f32 %v6269_v9, %v6091_v47  ;;  %v1099_v30 = vmul.f32 %v6271_v46, %v6070_v4  ;;  %4687 = vmatprep.mubr.msk.bf16.mxu0 %vm630_vm0, %v1103_v33  ;;  %v7213_v47 = vpack.c.bf16 %v5870_v14, %v5883_v26 }
 0x112   : > { %5272 = vpow2.f32 %v2191_v42  ;;  %v7217_v14 = vpack.c.bf16 %v5913_v22, %v5890_v28 }
 0x113   : > { %v1104_v44 = vpack.c.bf16 %v1100_v32, %v1099_v30  ;;  %4694 = vmatpush3.bf16.msra.mxu0 %v5193_v23  ;;  %v7216_v23 = vpack.c.bf16 %v5897_v20, %v5878_v3  ;;  %v7218_v20 = vmov 0.0  }
 0x114   : > { %4703 = vmatprep.subr.bf16.mxu0 %v5194_v7  ;;  %v6286_v4 = vpop.permute.xlu1 %1441  ;;  %v6288_v58 = vpop.permute.xlu0 %1436 }
 0x115   : > { %7214 = vst [vmem:[#allocation42_spill] sm:$0xff] %v6286_v4  ;;  %7215 = vst [vmem:[#allocation43_spill] sm:$0xff] %v6288_v58  ;;  %v1475_v32 = vmul.f32 %v6286_v4, %v5969_v6  ;;  %v1474_v30 = vmul.f32 %v6288_v58, %v5936_v48 }
 0x116   : > { %4688 = vmatmul.mubr.msk.bf16.gmra.mrb[4].mxu0 %vm630_vm0, %v1104_v44  ;;  %v7221_v44 = vpack.c.bf16 %v5873_v16, %v5906_v21  ;;  %v5196_v16 = vld [vmem:[%s7109_s7] sm:$0xff]  }
 0x117   : > { %4695 = vmatprep.mubr.msk.bf16.mxu0 %vm630_vm0, %v7213_v47 }
 0x118   : > { %v6301_v26 = vpop.permute.xlu1 %1451  ;;  %v6303_v33 = vpop.permute.xlu0 %1446 }
 0x119   : > { %v1477_v48 = vmul.f32 %v6301_v26, %v5989_v5  ;;  %v1476_v6 = vmul.f32 %v6303_v33, %v5965_v61  ;;  %v5197_v61 = vld [vmem:[%s7109_s7 + $0x8] sm:$0xff]  }
 0x11b   : > { %v1483_v21 = vpack.c.bf16 %v1477_v48, %v1476_v6  ;;  %v2316_v6 = vld [vmem:[%s7118_s17 + $0x18] sm:$0xff] }
 0x11c   : > { %v5273_v3 = vpop.eup %5272  ;;  %v6310_v28 = vpop.permute.xlu1 %1461 }
 0x11d   : > { %v2193_v1 = vadd.f32 1.0, %v5273_v3  ;;  %7219 = vst [vmem:[#allocation44_spill] sm:$0xff] %v6310_v28  ;;  %v6312_v22 = vpop.permute.xlu0 %1456  ;;  %v1479_v42 = vmul.f32 %v6310_v28, %v6007_v19 }
 0x11e   : > { %4696 = vmatmul.mubr.msk.bf16.vlgmr.msra.gmra.mrb[0].mxu0 %vm630_vm0, %v7216_v23  ;;  %7220 = vst [vmem:[#allocation45_spill] sm:$0xff] %v6312_v22  ;;  %v1478_v47 = vmul.f32 %v6312_v22, %v5985_v0 }
 0x11f   : > { %4704 = vmatpush3.bf16.msra.mxu0 %v5194_v7  ;;  %4699 = vmatprep.mubr.msk.bf16.mxu0 %vm630_vm0, %v7217_v14  ;;  %v1482_v7 = vpack.c.bf16 %v1475_v32, %v1474_v30  ;;  %5274 = vrcp.f32 %v2193_v1  ;;  %v5198_v32 = vld [vmem:[%s7109_s7 + $0x10] sm:$0xff]  }
 0x120   : > { %4705 = vmatprep.subr.bf16.mxu0 %v5195_v8  ;;  %v6330_v23 = vpop.permute.xlu1 %1471  ;;  %v2315_v1 = vld [vmem:[%s7118_s17 + $0x10] sm:$0xff] }
 0x121   : > { %7222 = vst [vmem:[#allocation46_spill] sm:$0xff] %v6330_v23  ;;  %v6332_v14 = vpop.permute.xlu0 %1466  ;;  %v1481_v0 = vmul.f32 %v6330_v23, %v5940_v49  ;;  %v5199_v49 = vld [vmem:[%s7109_s7 + $0x18] sm:$0xff]  }
 0x122   : > { %7223 = vst [vmem:[#allocation47_spill] sm:$0xff] %v6332_v14  ;;  %v1480_v5 = vmul.f32 %v6332_v14, %v6003_v29 }
 0x123   : > { %4706 = vmatpush3.bf16.msra.mxu0 %v5195_v8  ;;  %v1484_v8 = vpack.c.bf16 %v1479_v42, %v1478_v47  ;;  %v6375_v42 = vpack.c.bf16 %v2316_v6, %v2315_v1  ;;  %v2317_v47 = vld [vmem:[%s7118_s17 + $0x20] sm:$0xff] }
 0x124   : > { %4715 = vmatprep.subr.bf16.mxu0 %v7218_v20  ;;  %v1485_v30 = vpack.c.bf16 %v1481_v0, %v1480_v5  ;;  %v2321_v5 = vld [vmem:[%s7119_s18] sm:$0xff] }
 0x126   : > { %4700 = vmatmul.mubr.msk.bf16.gmra.mrb[4].mxu0 %vm630_vm0, %v7221_v44  ;;  %v7153_v44 = vmov 0.0|0.0  }
 0x127   : > { %4707 = vmatprep.mubr.msk.bf16.mxu0 %vm630_vm0, %v1482_v7  ;;  %v2314_v7 = vld [vmem:[%s7118_s17 + $0x8] sm:$0xff]  ;;  %4955 = vmatprep.subr.bf16.mxu1 %v7153_v44 }
 0x129   : > { %v5275_v19 = vpop.eup %5274 }
 0x12a   : > { %v2196_v3 = vmul.f32 %v5275_v19, %v2189_v50  ;;  %v2313_v50 = vld [vmem:[%s7118_s17] sm:$0xff]  ;;  %v2322_v19 = vld [vmem:[%s7119_s18 + $0x8] sm:$0xff] }
 0x12b   : > { %v6368_v48 = vpack.c.bf16 %v2314_v7, %v2313_v50 }
 0x12c   : > { %v2197_v29 = vpack.c.bf16 %v2196_v3, %v2196_v3  ;;  %v2324_v3 = vld [vmem:[%s7119_s18 + $0x18] sm:$0xff] }
 0x12e   : > { %4708 = vmatmul.mubr.msk.bf16.vlgmr.msra.gmra.mrb[0].mxu0 %vm630_vm0, %v1483_v21 }
 0x12f   : > { %4716 = vmatpush3.bf16.msra.mxu0 %v5196_v16  ;;  %4711 = vmatprep.mubr.msk.bf16.mxu0 %vm630_vm0, %v1484_v8  ;;  %v2318_v16 = vld [vmem:[%s7118_s17 + $0x28] sm:$0xff]  ;;  %v2319_v8 = vld [vmem:[%s7118_s17 + $0x30] sm:$0xff] }
 0x130   : > { %4717 = vmatprep.subr.bf16.mxu0 %v7218_v20  ;;  %v6385_v21 = vpack.c.bf16 %v2318_v16, %v2317_v47 }
 0x133   : > { %4718 = vmatpush3.bf16.msra.mxu0 %v5197_v61  ;;  %v2320_v61 = vld [vmem:[%s7118_s17 + $0x38] sm:$0xff] }
 0x134   : > { %4719 = vmatprep.subr.bf16.mxu0 %v7218_v20  ;;  %v6395_v0 = vpack.c.bf16 %v2320_v61, %v2319_v8  ;;  %v2206_v61 = vld [vmem:[%s7110_s8] sm:$0x1] }
 0x136   : > { %4712 = vmatmul.mubr.msk.bf16.gmra.mrb[4].mxu0 %vm630_vm0, %v1485_v30  ;;  %v6409_v30 = vpack.c.bf16 %v2322_v19, %v2321_v5  ;;  %v2275_v19 = vld [vmem:[%s7108_s6] sm:$0x1] }
 0x137   : > { %4720 = vmatpush3.bf16.msra.mxu0 %v5198_v32  ;;  %4723 = vmatprep.mubr.msk.bf16.mxu0 %vm5383_vm2, %v7218_v20  ;;  %v2323_v32 = vld [vmem:[%s7119_s18 + $0x10] sm:$0xff] }
 0x138   : > { %4721 = vmatprep.subr.bf16.mxu0 %v7218_v20  ;;  %4957 = vmatpush3.bf16.msra.mxu1 %v6409_v30 }
 0x139   : > { %4958 = vmatprep.subr.bf16.mxu1 %v7153_v44 }
 0x13b   : > { %4722 = vmatpush3.bf16.msra.mxu0 %v5199_v49  ;;  %v6415_v49 = vpack.c.bf16 %v2324_v3, %v2323_v32  ;;  %v6427_v3 = vsub.s32 0, %v5899_v31 }
 0x13c   : > { %4943 = vmatprep.subr.bf16.mxu0 %v7153_v44 }
 0x13d   : > { %4960 = vmatpush3.bf16.msra.mxu1 %v6415_v49 }
 0x13e   : > { %4724 = vmatmul.mubr.msk.bf16.vlgmr.msra.gmra.mrb[8].mxu0 %vm2231_vm4, %v2197_v29  ;;  %4973 = vmatprep.subr.bf16.mxu1 %v7153_v44 }
 0x13f   : > { %4743 = vmatprep.mubr.msk.f32.mxu0 %vm5383_vm2, %v7218_v20  ;;  %4945 = vmatpush3.bf16.msra.mxu0 %v6368_v48 }
 0x140   : > { %4946 = vmatprep.subr.bf16.mxu0 %v7153_v44 }
 0x143   : > { %4948 = vmatpush3.bf16.msra.mxu0 %v6375_v42 }
 0x144   : > { %4949 = vmatprep.subr.bf16.mxu0 %v7153_v44 }
 0x147   : > { %4951 = vmatpush3.bf16.msra.mxu0 %v6385_v21 }
 0x148   : > { %4952 = vmatprep.subr.bf16.mxu0 %v7153_v44 }
 0x14b   : > { %4954 = vmatpush3.bf16.msra.mxu0 %v6395_v0 }
 0x14c   : > { %4961 = vmatprep.subr.bf16.mxu0 %v7153_v44 }
 0x201   : > { %v4709_v29 = vpop.f32.mrb[0].mxu0 }
 0x202   : > { %v2126_v50 = vpop.f32.mrb[1].mxu0 }
 0x203   : > { %v4710_v7 = vpop.f32.mrb[2].mxu0 }
 0x204   : > { %v2129_v1 = vpop.f32.mrb[3].mxu0 }
 0x209   : > { %v4713_v6 = vpop.f32.mrb[4].mxu0 }
 0x20a   : > { %v2142_v47 = vpop.f32.mrb[5].mxu0 }
 0x20b   : > { %v4714_v16 = vpop.f32.mrb[6].mxu0 }
 0x20c   : > { %v2145_v8 = vpop.f32.mrb[7].mxu0 }
 0x211   : > { %v2269_v5 = vpop.f32.mrb[8].mxu0 }
 0x212   : > { %v2270_v32 = vadd.f32 %v2269_v5, %v2206_v61  ;;  %v4725_v44 = vpop.f32.mrb[9].mxu0 }
 0x213   : > { %v2272_v23 = vpop.f32.mrb[10].mxu0 }
 0x214   : > { %v2276_v14 = vadd.f32 %v2275_v19, %v2270_v32  ;;  %v4726_v28 = vpop.f32.mrb[11].mxu0 }
 0x216   : > { %v2280_v22 = vrot.slane %v2276_v14, %v6427_v3 }
 0x218   : > { %v2281_v4 = vadd.f32 %v2280_v22, %v2126_v50  ;;  %v2282_v58 = vadd.f32 %v2280_v22, %v2129_v1  ;;  %v2283_v9 = vadd.f32 %v4709_v29, %v2280_v22  ;;  %v2284_v46 = vadd.f32 %v4710_v7, %v2280_v22 }
 0x219   : > { %v2285_v56 = vadd.f32 %v2280_v22, %v2142_v47  ;;  %v2286_v57 = vadd.f32 %v2280_v22, %v2145_v8  ;;  %v2287_v27 = vadd.f32 %v4713_v6, %v2280_v22  ;;  %v2288_v60 = vadd.f32 %v4714_v16, %v2280_v22 }
 0x21a   : > { %v2291_v38 = vsel %vm2231_vm4, %v2281_v4, 0.0  ;;  %v2292_v61 = vsel %vm2231_vm4, %v2282_v58, 0.0  ;;  %v2294_v44 = vsel %vm2231_vm4, %v2283_v9, 0.0  ;;  %v2296_v28 = vsel %vm2231_vm4, %v2284_v46, 0.0 }
 0x21b   : > { %v2293_v5 = vadd.f32 %v2292_v61, %v2291_v38  ;;  %v2298_v14 = vsel %vm2231_vm4, %v2285_v56, 0.0  ;;  %v2300_v29 = vsel %vm2231_vm4, %v2286_v57, 0.0  ;;  %v2302_v1 = vsel %vm2231_vm4, %v2287_v27, 0.0 }
 0x21c   : > { %v2304_v6 = vsel %vm2231_vm4, %v2288_v60, 0.0 }
 0x21d   : > { %v2295_v23 = vadd.f32 %v2294_v44, %v2293_v5 }
 0x21f   : > { %v2297_v19 = vadd.f32 %v2296_v28, %v2295_v23  ;;  %v7224_v23 = vmov 0.0|0.0  }
 0x221   : > { %v2299_v50 = vadd.f32 %v2298_v14, %v2297_v19 }
 0x223   : > { %v2301_v7 = vadd.f32 %v2300_v29, %v2299_v50 }
 0x225   : > { %v2303_v22 = vadd.f32 %v2302_v1, %v2301_v7 }
 0x227   : > { %v2305_v47 = vadd.f32 %v2304_v6, %v2303_v22 }
 0x229   : > { %v2306_v16 = vrot.slane %v2305_v47, 4 }
 0x22b   : > { %v2307_v38 = vadd.f32 %v2306_v16, %v2305_v47 }
 0x22d   : > { %v2308_v8 = vrot.slane %v2307_v38, 2 }
 0x22f   : > { %v2309_v32 = vadd.f32 %v2308_v8, %v2307_v38 }
 0x231   : > { %v2310_v61 = vrot.slane %v2309_v32, 1 }
 0x233   : > { %v2311_v5 = vadd.f32 %v2310_v61, %v2309_v32 }
 0x235   : > { %v2312_v44 = vmul.f32 0.0078125, %v2311_v5 }
 0x237   : > { %4744 = vmatmul.mubr.msk.f32.vlgmr.msra.gmra.mrb[12].mxu0 %vm2231_vm4, %v2312_v44 }
 0x238   : > { %4963 = vmatpush3.bf16.msra.mxu0 %v6368_v48  ;;  %4773 = vmatprep.mubr.msk.f32.mxu0 %vm5383_vm2, %v7218_v20 }
 0x239   : > { %4964 = vmatprep.subr.bf16.mxu0 %v7224_v23 }
 0x23c   : > { %4966 = vmatpush3.bf16.msra.mxu0 %v6375_v42 }
 0x23d   : > { %4967 = vmatprep.subr.bf16.mxu0 %v7224_v23 }
 0x240   : > { %4969 = vmatpush3.bf16.msra.mxu0 %v6385_v21 }
 0x241   : > { %4970 = vmatprep.subr.bf16.mxu0 %v7224_v23 }
 0x244   : > { %4972 = vmatpush3.bf16.msra.mxu0 %v6395_v0 }
 0x30a   : > { %v2394_v28 = vpop.f32.mrb[12].mxu0 }
 0x30b   : > { %v4745_v19 = vpop.f32.mrb[13].mxu0  ;;  %4755 = vmatmul.mubr.msk.f32.vlgmr.msra.gmra.mrb[0].mxu1 %vm630_vm0, %v2394_v28 }
 0x30c   : > { %4975 = vmatpush3.bf16.msra.mxu1 %v6409_v30  ;;  %4784 = vmatprep.mubr.msk.f32.mxu1 %vm5383_vm2, %v7218_v20 }
 0x30d   : > { %4976 = vmatprep.subr.bf16.mxu1 %v7224_v23 }
 0x310   : > { %4978 = vmatpush3.bf16.msra.mxu1 %v6415_v49 }
 0x3de   : > { %v2467_v48 = vpop.f32.mrb[0].mxu1 }
 0x3df   : > { %v2474_v42 = vrot.slane %v2467_v48, %v6427_v3  ;;  %v4756_v21 = vpop.f32.mrb[1].mxu1 }
 0x3e1   : > { %v6455_v14 = vsub.f32 %v2281_v4, %v2474_v42  ;;  %v6457_v0 = vsub.f32 %v2282_v58, %v2474_v42  ;;  %v6459_v50 = vsub.f32 %v2283_v9, %v2474_v42  ;;  %v6461_v29 = vsub.f32 %v2284_v46, %v2474_v42 }
 0x3e2   : > { %v6463_v30 = vsub.f32 %v2285_v56, %v2474_v42  ;;  %v2480_v1 = vsub.f32 %v2286_v57, %v2474_v42  ;;  %v2481_v56 = vsub.f32 %v2287_v27, %v2474_v42  ;;  %v2482_v16 = vsub.f32 %v2288_v60, %v2474_v42 }
 0x3e3   : > { %v2483_v20 = vmul.f32 %v6455_v14, %v6455_v14  ;;  %v2484_v49 = vmul.f32 %v6457_v0, %v6457_v0  ;;  %v2485_v7 = vmul.f32 %v6459_v50, %v6459_v50  ;;  %v2486_v4 = vmul.f32 %v6461_v29, %v6461_v29 }
 0x3e4   : > { %v2487_v22 = vmul.f32 %v6463_v30, %v6463_v30  ;;  %v2488_v38 = vmul.f32 %v2480_v1, %v2480_v1  ;;  %v2489_v32 = vmul.f32 %v2481_v56, %v2481_v56  ;;  %v2490_v44 = vmul.f32 %v2482_v16, %v2482_v16 }
 0x3e5   : > { %v2491_v9 = vsel %vm2231_vm4, %v2483_v20, 0.0  ;;  %v2492_v46 = vsel %vm2231_vm4, %v2484_v49, 0.0  ;;  %v2494_v6 = vsel %vm2231_vm4, %v2485_v7, 0.0  ;;  %v2496_v8 = vsel %vm2231_vm4, %v2486_v4, 0.0 }
 0x3e6   : > { %v2493_v58 = vadd.f32 %v2492_v46, %v2491_v9  ;;  %v2498_v61 = vsel %vm2231_vm4, %v2487_v22, 0.0  ;;  %v2500_v23 = vsel %vm2231_vm4, %v2488_v38, 0.0  ;;  %v2502_v27 = vsel %vm2231_vm4, %v2489_v32, 0.0  ;;  %v5200_v22 = vld [vmem:[%s7113_s11 + $0x20] sm:$0xff]   ;;  %v5203_v38 = vld [vmem:[%s7113_s11 + $0x38] sm:$0xff]  }
 0x3e7   : > { %v2504_v48 = vsel %vm2231_vm4, %v2490_v44, 0.0  ;;  %4787 = vmatprep.subr.bf16.mxu1 %v5200_v22 }
 0x3e8   : > { %v2495_v47 = vadd.f32 %v2494_v6, %v2493_v58  ;;  %v5201_v6 = vld [vmem:[%s7113_s11 + $0x28] sm:$0xff]  }
 0x3ea   : > { %v2497_v57 = vadd.f32 %v2496_v8, %v2495_v47  ;;  %v5202_v47 = vld [vmem:[%s7113_s11 + $0x30] sm:$0xff]   ;;  %v6500_v8 = vld [vmem:[%s7113_s11 + $0x60] sm:$0xff]  }
 0x3ec   : > { %v2499_v5 = vadd.f32 %v2498_v61, %v2497_v57 }
 0x3ee   : > { %v2501_v28 = vadd.f32 %v2500_v23, %v2499_v5  ;;  %v4289_v23 = vld [vmem:[%s7111_s9] ss:$0 sm:$0xff] }
 0x3f0   : > { %v2503_v19 = vadd.f32 %v2502_v27, %v2501_v28 }
 0x3f2   : > { %v2505_v21 = vadd.f32 %v2504_v48, %v2503_v19 }
 0x3f4   : > { %v2506_v20 = vrot.slane %v2505_v21, 4 }
 0x3f6   : > { %v2507_v60 = vadd.f32 %v2506_v20, %v2505_v21  ;;  %v4290_v21 = vld [vmem:[%s7112_s10] ss:$0 sm:$0xff] }
 0x3f8   : > { %v2508_v42 = vrot.slane %v2507_v60, 2 }
 0x3fa   : > { %v2509_v49 = vadd.f32 %v2508_v42, %v2507_v60 }
 0x3fc   : > { %v2510_v7 = vrot.slane %v2509_v49, 1 }
 0x3fe   : > { %v2511_v4 = vadd.f32 %v2510_v7, %v2509_v49 }
 0x400   : > { %v2512_v9 = vmul.f32 0.0078125, %v2511_v4 }
 0x402   : > { %4774 = vmatmul.mubr.msk.f32.vlgmr.msra.gmra.mrb[14].mxu0 %vm2231_vm4, %v2512_v9 }
 0x4d5   : > { %v2582_v46 = vpop.f32.mrb[14].mxu0 }
 0x4d6   : > { %v4775_v58 = vpop.f32.mrb[15].mxu0  ;;  %4785 = vmatmul.mubr.msk.f32.vlgmr.msra.gmra.mrb[2].mxu1 %vm630_vm0, %v2582_v46 }
 0x4d7   : > { %4788 = vmatpush3.bf16.msra.mxu1 %v5200_v22 }
 0x4d8   : > { %4789 = vmatprep.subr.bf16.mxu1 %v5201_v6 }
 0x4db   : > { %4790 = vmatpush3.bf16.msra.mxu1 %v5201_v6 }
 0x4dc   : > { %4791 = vmatprep.subr.bf16.mxu1 %v5202_v47 }
 0x4df   : > { %4792 = vmatpush3.bf16.msra.mxu1 %v5202_v47 }
 0x4e0   : > { %4793 = vmatprep.subr.bf16.mxu1 %v5203_v38 }
 0x4e3   : > { %4794 = vmatpush3.bf16.msra.mxu1 %v5203_v38 }
 0x4e4   : > { %4803 = vmatprep.subr.bf16.mxu1 %v6500_v8 }
 0x5a9   : > { %v2655_v57 = vpop.f32.mrb[2].mxu1 }
 0x5aa   : > { %v2656_v32 = vadd.f32 1e-05, %v2655_v57  ;;  %v4786_v61 = vpop.f32.mrb[3].mxu1 }
 0x5ac   : > { %5276 = vrsqrt.f32 %v2656_v32 }
 0x5b6   : > { %v5277_v5 = vpop.eup %5276 }
 0x5b7   : > { %v2663_v44 = vrot.slane %v5277_v5, %v6427_v3 }
 0x5b9   : > { %v2664_v28 = vmul.f32 %v2663_v44, %v6455_v14  ;;  %v2671_v27 = vmul.f32 %v2663_v44, %v2482_v16  ;;  %v2665_v19 = vmul.f32 %v2663_v44, %v6457_v0  ;;  %v2666_v48 = vmul.f32 %v2663_v44, %v6459_v50 }
 0x5ba   : > { %v2667_v20 = vmul.f32 %v2663_v44, %v6461_v29  ;;  %v2668_v60 = vmul.f32 %v2663_v44, %v6463_v30  ;;  %v2669_v3 = vmul.f32 %v2663_v44, %v2480_v1  ;;  %v2670_v42 = vmul.f32 %v2663_v44, %v2481_v56 }
 0x5bb   : > { %v2678_v49 = vmul.f32 %v4289_v23, %v2664_v28  ;;  %v2685_v7 = vmul.f32 %v4289_v23, %v2671_v27  ;;  %v2679_v4 = vmul.f32 %v4289_v23, %v2665_v19  ;;  %v2680_v9 = vmul.f32 %v4289_v23, %v2666_v48 }
 0x5bc   : > { %v2681_v14 = vmul.f32 %v4289_v23, %v2667_v20  ;;  %v2682_v16 = vmul.f32 %v4289_v23, %v2668_v60  ;;  %v2683_v46 = vmul.f32 %v4289_v23, %v2669_v3  ;;  %v2684_v0 = vmul.f32 %v4289_v23, %v2670_v42 }
 0x5bd   : > { %v2692_v58 = vadd.f32 %v4290_v21, %v2678_v49  ;;  %v2699_v50 = vadd.f32 %v4290_v21, %v2685_v7  ;;  %v2693_v22 = vadd.f32 %v4290_v21, %v2679_v4  ;;  %v6515_v6 = vadd.f32 %v4290_v21, %v2680_v9 }
 0x5be   : > { %v6517_v47 = vadd.f32 %v4290_v21, %v2681_v14  ;;  %v6519_v29 = vadd.f32 %v4290_v21, %v2682_v16  ;;  %v6521_v30 = vadd.f32 %v4290_v21, %v2683_v46  ;;  %v6523_v1 = vadd.f32 %v4290_v21, %v2684_v0 }
 0x5bf   : > { %v2700_v56 = vsub.f32 0.0, %v2692_v58  ;;  %v2707_v38 = vsub.f32 0.0, %v2699_v50  ;;  %v2701_v57 = vsub.f32 0.0, %v2693_v22  ;;  %v2702_v32 = vsub.f32 0.0, %v6515_v6 }
 0x5c0   : > { %v2703_v61 = vsub.f32 0.0, %v6517_v47  ;;  %v2704_v5 = vsub.f32 0.0, %v6519_v29  ;;  %v2705_v44 = vsub.f32 0.0, %v6521_v30  ;;  %v2706_v48 = vsub.f32 0.0, %v6523_v1 }
 0x5c1   : > { %v2708_v23 = vmul.f32 1.442695, %v2700_v56  ;;  %v2722_v28 = vmul.f32 1.442695, %v2707_v38  ;;  %v2710_v27 = vmul.f32 1.442695, %v2701_v57 }
 0x5c2   : > { %v2712_v19 = vmul.f32 1.442695, %v2702_v32  ;;  %v2714_v21 = vmul.f32 1.442695, %v2703_v61  ;;  %v2716_v20 = vmul.f32 1.442695, %v2704_v5 }
 0x5c3   : > { %5278 = vpow2.f32 %v2708_v23  ;;  %v2718_v60 = vmul.f32 1.442695, %v2705_v44  ;;  %v2720_v3 = vmul.f32 1.442695, %v2706_v48 }
 0x5c4   : > { %5280 = vpow2.f32 %v2722_v28 }
 0x5c5   : > { %5282 = vpow2.f32 %v2710_v27 }
 0x5c6   : > { %5284 = vpow2.f32 %v2712_v19 }
 0x5c7   : > { %5286 = vpow2.f32 %v2714_v21 }
 0x5c8   : > { %5288 = vpow2.f32 %v2716_v20 }
 0x5c9   : > { %5290 = vpow2.f32 %v2718_v60 }
 0x5ca   : > { %5292 = vpow2.f32 %v2720_v3 }
 0x5cd   : > { %v5279_v42 = vpop.eup %5278 }
 0x5ce   : > { %v5281_v49 = vpop.eup %5280  ;;  %v2724_v7 = vadd.f32 1.0, %v5279_v42 }
 0x5cf   : > { %v5283_v4 = vpop.eup %5282  ;;  %v2731_v9 = vadd.f32 1.0, %v5281_v49 }
 0x5d0   : > { %v5285_v14 = vpop.eup %5284  ;;  %5294 = vrcp.f32 %v2724_v7  ;;  %v2725_v16 = vadd.f32 1.0, %v5283_v4 }
 0x5d1   : > { %v5287_v46 = vpop.eup %5286  ;;  %5296 = vrcp.f32 %v2731_v9  ;;  %v2726_v0 = vadd.f32 1.0, %v5285_v14 }
 0x5d2   : > { %v5289_v56 = vpop.eup %5288  ;;  %5298 = vrcp.f32 %v2725_v16  ;;  %v2727_v38 = vadd.f32 1.0, %v5287_v46 }
 0x5d3   : > { %v5291_v57 = vpop.eup %5290  ;;  %5300 = vrcp.f32 %v2726_v0  ;;  %v2728_v32 = vadd.f32 1.0, %v5289_v56 }
 0x5d4   : > { %v5293_v61 = vpop.eup %5292  ;;  %5302 = vrcp.f32 %v2727_v38  ;;  %v2729_v5 = vadd.f32 1.0, %v5291_v57 }
 0x5d5   : > { %5304 = vrcp.f32 %v2728_v32  ;;  %v2730_v44 = vadd.f32 1.0, %v5293_v61 }
 0x5d6   : > { %5306 = vrcp.f32 %v2729_v5 }
 0x5d7   : > { %5308 = vrcp.f32 %v2730_v44 }
 0x5da   : > { %v5295_v23 = vpop.eup %5294 }
 0x5db   : > { %v5297_v28 = vpop.eup %5296  ;;  %v6530_v27 = vmul.f32 %v5295_v23, %v2692_v58 }
 0x5dc   : > { %v5299_v19 = vpop.eup %5298  ;;  %v6532_v48 = vmul.f32 %v5297_v28, %v2699_v50 }
 0x5dd   : > { %v5301_v21 = vpop.eup %5300  ;;  %v2797_v20 = vmul.f32 %v6530_v27, %v5880_v24  ;;  %v6536_v60 = vmul.f32 %v5299_v19, %v2693_v22  ;;  %v2760_v3 = vrot.slane %v6530_v27, 7 }
 0x5de   : > { %v5303_v42 = vpop.eup %5302  ;;  %v2796_v49 = vmul.f32 %v6532_v48, %v5867_v62  ;;  %v6542_v7 = vmul.f32 %v5301_v21, %v6515_v6  ;;  %v2767_v22 = vrot.slane %v6532_v48, 7 }
 0x5df   : > { %v5305_v58 = vpop.eup %5304  ;;  %v2798_v50 = vmul.f32 %v6536_v60, %v5865_v63  ;;  %v6547_v4 = vmul.f32 %v5303_v42, %v6517_v47  ;;  %v2761_v24 = vrot.slane %v6536_v60, 7  ;;  %v2919_v23 = vrot.slane %v6536_v60, 1 }
 0x5e0   : > { %v5307_v9 = vpop.eup %5306  ;;  %v2804_v14 = vpack.c.bf16 %v2797_v20, %v2796_v49  ;;  %v2799_v16 = vmul.f32 %v6542_v7, %v5875_v2  ;;  %v6554_v62 = vmul.f32 %v5305_v58, %v6519_v29  ;;  %v2762_v6 = vrot.slane %v6542_v7, 7  ;;  %v5205_v29 = vld [vmem:[%s7113_s11 + $0x68] sm:$0xff]  }
 0x5e1   : > { %v5309_v46 = vpop.eup %5308  ;;  %v2800_v63 = vmul.f32 %v6547_v4, %v5903_v35  ;;  %v6560_v47 = vmul.f32 %v5307_v9, %v6521_v30  ;;  %v6564_v0 = vsel %vm799_vm1, %v2760_v3, %v2761_v24  ;;  %v6583_v30 = vsel %vm799_vm1, %v2767_v22, %v2760_v3 }
 0x5e2   : > { %4795 = vmatprep.mubr.msk.bf16.mxu1 %vm2231_vm4, %v2804_v14  ;;  %v2805_v56 = vpack.c.bf16 %v2799_v16, %v2798_v50  ;;  %v2801_v2 = vmul.f32 %v6554_v62, %v5901_v34  ;;  %v6573_v38 = vmul.f32 %v5309_v46, %v6523_v1  ;;  %v6577_v35 = vsel %vm799_vm1, %v2761_v24, %v2762_v6 }
 0x5e3   : > { %v6587_v34 = vmul.f32 %v6564_v0, %v6204_v41  ;;  %v6591_v57 = vmul.f32 %v6577_v35, %v6202_v52  ;;  %v2763_v32 = vrot.slane %v6547_v4, 7  ;;  %v2802_v61 = vmul.f32 %v6560_v47, %v5926_v37  ;;  %v5206_v52 = vld [vmem:[%s7113_s11 + $0x70] sm:$0xff]  }
 0x5e4   : > { %4796 = vmatmul.mubr.msk.bf16.vlgmr.msra.gmra.mrb[4].mxu1 %vm2231_vm4, %v2805_v56  ;;  %v2806_v1 = vpack.c.bf16 %v2801_v2, %v2800_v63  ;;  %v2764_v41 = vrot.slane %v6554_v62, 7  ;;  %v2803_v44 = vmul.f32 %v6573_v38, %v5924_v45  ;;  %v2956_v28 = vmul.f32 %v6564_v0, %v5949_v54  ;;  %v5207_v54 = vld [vmem:[%s7113_s11 + $0x78] sm:$0xff]  }
 0x5e5   : > { %4804 = vmatpush3.bf16.msra.mxu1 %v6500_v8  ;;  %v2785_v5 = vpack.c.bf16 %v6591_v57, %v6587_v34  ;;  %v2955_v8 = vmul.f32 %v6583_v30, %v5951_v55  ;;  %v6611_v37 = vsel %vm799_vm1, %v2762_v6, %v2763_v32  ;;  %v2765_v19 = vrot.slane %v6560_v47, 7  ;;  %v5208_v6 = vld [vmem:[%s7113_s11 + $0xa0] sm:$0xff]   ;;  %v5229_v57 = vld [vmem:[%s7113_s11 + $0x88] sm:$0xff]  }
 0x5e6   : > { %4799 = vmatprep.mubr.msk.bf16.mxu1 %vm2231_vm4, %v2806_v1  ;;  %4805 = vmatprep.subr.bf16.mxu1 %v5205_v29  ;;  %v2771_v21 = vsel %vm799_vm1, %v2763_v32, %v2764_v41  ;;  %v6621_v45 = vmul.f32 %v6611_v37, %v6303_v33  ;;  %v2920_v20 = vrot.slane %v6542_v7, 1  ;;  %v2807_v3 = vpack.c.bf16 %v2803_v44, %v2802_v61  ;;  %v5228_v34 = vld [vmem:[%s7113_s11 + $0x80] sm:$0xff]  }
 0x5e7   : > { %v6624_v55 = vmul.f32 %v2771_v21, %v6301_v26  ;;  %v2921_v49 = vrot.slane %v6547_v4, 1  ;;  %v2963_v58 = vpack.c.bf16 %v2956_v28, %v2955_v8  ;;  %v6635_v33 = vsel %vm799_vm1, %v2764_v41, %v2765_v19  ;;  %v5210_v8 = vld [vmem:[%s7113_s11 + $0xb0] sm:$0xff]  }
 0x5e8   : > { %v2766_v26 = vrot.slane %v6573_v38, 7  ;;  %v6640_v50 = vsel %vm1035_vm3, %v2919_v23, %v2920_v20  ;;  %v2918_v14 = vrot.slane %v6530_v27, 1  ;;  %v2957_v46 = vmul.f32 %v6577_v35, %v5976_v11 }
 0x5e9   : > { %4806 = vmatpush3.bf16.msra.mxu1 %v5205_v29  ;;  %v6645_v24 = vsel %vm1035_vm3, %v2920_v20, %v2921_v49  ;;  %v6649_v9 = vmul.f32 %v6640_v50, %v6246_v13  ;;  %v2958_v13 = vmul.f32 %v6611_v37, %v5974_v10  ;;  %v2959_v63 = vmul.f32 %v2771_v21, %v5994_v25  ;;  %v5209_v29 = vld [vmem:[%s7113_s11 + $0xa8] sm:$0xff]  }
 0x5ea   : > { %4807 = vmatprep.subr.bf16.mxu1 %v5206_v52  ;;  %v6655_v16 = vmul.f32 %v6645_v24, %v6244_v43  ;;  %v2960_v56 = vmul.f32 %v6635_v33, %v5992_v18  ;;  %v6671_v43 = vsel %vm799_vm1, %v2766_v26, %v2767_v22  ;;  %v6675_v2 = vsel %vm799_vm1, %v2765_v19, %v2766_v26  ;;  %v7226_v26 = vld [vmem:[#allocation35_spill] sm:$0xff] }
 0x5eb   : > { %v2922_v10 = vrot.slane %v6554_v62, 1  ;;  %v2925_v25 = vrot.slane %v6532_v48, 1  ;;  %v2964_v18 = vpack.c.bf16 %v2958_v13, %v2957_v46  ;;  %v2961_v22 = vmul.f32 %v6675_v2, %v6020_v40  ;;  %v7228_v46 = vld [vmem:[#allocation37_spill] sm:$0xff]  ;;  %v7229_v13 = vld [vmem:[#allocation36_spill] sm:$0xff] }
 0x5ec   : > { %4800 = vmatmul.mubr.msk.bf16.gmra.mrb[8].mxu1 %vm2231_vm4, %v2807_v3  ;;  %v2943_v11 = vpack.c.bf16 %v6655_v16, %v6649_v9  ;;  %v2962_v1 = vmul.f32 %v6671_v43, %v6018_v39  ;;  %v6690_v32 = vsel %vm1035_vm3, %v2918_v14, %v2919_v23  ;;  %v2965_v61 = vpack.c.bf16 %v2960_v56, %v2959_v63  ;;  %v7230_v56 = vld [vmem:[#allocation39_spill] sm:$0xff]  ;;  %v5232_v16 = vld [vmem:[%s7113_s11 + $0xc0] sm:$0xff]  }
 0x5ed   : > { %4808 = vmatpush3.bf16.msra.mxu1 %v5206_v52  ;;  %4811 = vmatprep.mubr.msk.bf16.mxu1 %vm2231_vm4, %v2963_v58  ;;  %v6694_v41 = vsel %vm1035_vm3, %v2921_v49, %v2922_v10  ;;  %v2923_v52 = vrot.slane %v6560_v47, 1  ;;  %v2924_v44 = vrot.slane %v6573_v38, 1  ;;  %v3086_v39 = vmul.f32 %v6690_v32, %v6042_v53  ;;  %v7225_v49 = vld [vmem:[#allocation33_spill] sm:$0xff] }
 0x5ee   : > { %4809 = vmatprep.subr.bf16.mxu1 %v5207_v54  ;;  %v3087_v40 = vmul.f32 %v6640_v50, %v6040_v51  ;;  %v2966_v23 = vpack.c.bf16 %v2962_v1, %v2961_v22  ;;  %v3088_v28 = vmul.f32 %v6645_v24, %v6061_v17  ;;  %v3089_v19 = vmul.f32 %v6694_v41, %v6059_v15  ;;  %v7232_v22 = vld [vmem:[#allocation41_spill] sm:$0xff] }
 0x5ef   : > { %v6713_v20 = vsel %vm1035_vm3, %v2925_v25, %v2918_v14  ;;  %v6717_v53 = vsel %vm1035_vm3, %v2923_v52, %v2924_v44  ;;  %v6721_v51 = vsel %vm1035_vm3, %v2922_v10, %v2923_v52  ;;  %v6725_v3 = vmul.f32 %v6671_v43, %v6195_v36 }
 0x5f0   : > { %v6729_v17 = vmul.f32 %v6583_v30, %v6193_v59  ;;  %v6733_v15 = vsel %vm1035_vm3, %v2924_v44, %v2925_v25  ;;  %v6740_v58 = vmul.f32 %v2771_v21, %v7225_v49  ;;  %v6744_v14 = vmul.f32 %v6635_v33, %v7226_v26  ;;  %v7231_v25 = vld [vmem:[#allocation38_spill] sm:$0xff]  ;;  %v7240_v49 = vld [vmem:[#allocation13_spill] sm:$0xff] }
 0x5f1   : > { %4810 = vmatpush3.bf16.msra.mxu1 %v5207_v54  ;;  %v6737_v54 = vmul.f32 %v6611_v37, %v6213_v12  ;;  %v3094_v36 = vpack.c.bf16 %v3087_v40, %v3086_v39  ;;  %v6754_v12 = vmul.f32 %v6713_v20, %v7228_v46  ;;  %v5211_v37 = vld [vmem:[%s7113_s11 + $0xb8] sm:$0xff]   ;;  %v6763_v63 = vmul.f32 %v6690_v32, %v7229_v13  ;;  %v7234_v46 = vld [vmem:[#allocation43_spill] sm:$0xff] }
 0x5f2   : > { %4819 = vmatprep.subr.bf16.mxu1 %v5208_v6  ;;  %v2784_v59 = vpack.c.bf16 %v6729_v17, %v6725_v3  ;;  %v6767_v10 = vmul.f32 %v6694_v41, %v7230_v56  ;;  %v6777_v1 = vmul.f32 %v6717_v53, %v7232_v22  ;;  %v6801_v13 = vmul.f32 %v6564_v0, %v7234_v46  ;;  %v5212_v56 = vld [vmem:[%s7113_s11 + $0xe0] sm:$0xff]   ;;  %v7239_v46 = vld [vmem:[#allocation14_spill] sm:$0xff]  ;;  %v5226_v3 = vld [vmem:[%s7113_s11 + $0x50] sm:$0xff]  }
 0x5f3   : > { %v2786_v21 = vpack.c.bf16 %v6740_v58, %v6737_v54  ;;  %v2942_v39 = vpack.c.bf16 %v6763_v63, %v6754_v12  ;;  %v3090_v26 = vmul.f32 %v6721_v51, %v7239_v46  ;;  %v3091_v44 = vmul.f32 %v6717_v53, %v7240_v49  ;;  %v5213_v49 = vld [vmem:[%s7113_s11 + $0xe8] sm:$0xff]   ;;  %v7243_v46 = vld [vmem:[#allocation15_spill] sm:$0xff]  ;;  %v5227_v17 = vld [vmem:[%s7113_s11 + $0x58] sm:$0xff]  }
 0x5f4   : > { %4812 = vmatmul.mubr.msk.bf16.vlgmr.msra.gmra.mrb[4].mxu1 %vm2231_vm4, %v2964_v18  ;;  %v6771_v18 = vmul.f32 %v6721_v51, %v7231_v25  ;;  %v7235_v25 = vld [vmem:[#allocation42_spill] sm:$0xff]  ;;  %v5231_v54 = vld [vmem:[%s7113_s11 + $0x98] sm:$0xff]   ;;  %v7260_v9 = vpack.c.bf16 %v6536_v60, %v6530_v27  ;;  %v7261_v58 = vpack.c.bf16 %v6547_v4, %v6542_v7  ;;  %v5316_v63 = vld [vmem:[%s5575_s23 + $0x30] sm:$0xff] }
 0x5f5   : > { %4820 = vmatpush3.bf16.msra.mxu1 %v5208_v6  ;;  %4815 = vmatprep.mubr.msk.bf16.mxu1 %vm2231_vm4, %v2965_v61  ;;  %v7227_v6 = vld [vmem:[#allocation34_spill] sm:$0xff]  ;;  %v7233_v61 = vld [vmem:[#allocation40_spill] sm:$0xff] }
 0x5f6   : > { %4821 = vmatprep.subr.bf16.mxu1 %v5209_v29  ;;  %v6750_v31 = vmul.f32 %v6675_v2, %v7227_v6  ;;  %v6781_v52 = vmul.f32 %v6733_v15, %v7233_v61  ;;  %v2944_v40 = vpack.c.bf16 %v6771_v18, %v6767_v10  ;;  %v7237_v61 = vld [vmem:[#allocation44_spill] sm:$0xff]  ;;  %v5315_v12 = vld [vmem:[%s5575_s23 + $0x28] sm:$0xff] }
 0x5f7   : > { %v6816_v42 = vmul.f32 %v6675_v2, %v7237_v61  ;;  %v5317_v10 = vld [vmem:[%s5575_s23 + $0x38] sm:$0xff] }
 0x5f8   : > { %v2945_v6 = vpack.c.bf16 %v6781_v52, %v6777_v1  ;;  %v3912_v18 = vpack.c.bf16 %v5317_v10, %v5316_v63  ;;  %v4434_v52 = vld [vmem:[%s7114_s12] ss:$0 sm:$0xff] }
 0x5f9   : > { %4822 = vmatpush3.bf16.msra.mxu1 %v5209_v29  ;;  %v2787_v29 = vpack.c.bf16 %v6750_v31, %v6744_v14  ;;  %v5311_v14 = vld [vmem:[%s5575_s23 + $0x8] sm:$0xff]  ;;  %v5314_v31 = vld [vmem:[%s5575_s23 + $0x20] sm:$0xff] }
 0x5fa   : > { %4823 = vmatprep.subr.bf16.mxu1 %v5210_v8 }
 0x5fc   : > { %4816 = vmatmul.mubr.msk.bf16.gmra.mrb[8].mxu1 %vm2231_vm4, %v2966_v23  ;;  %v7238_v23 = vld [vmem:[#allocation47_spill] sm:$0xff] }
 0x5fd   : > { %4824 = vmatpush3.bf16.msra.mxu1 %v5210_v8  ;;  %4827 = vmatprep.mubr.msk.bf16.mxu1 %vm2231_vm4, %v3094_v36  ;;  %v6808_v8 = vmul.f32 %v6577_v35, %v7235_v25  ;;  %v7236_v36 = vld [vmem:[#allocation45_spill] sm:$0xff]  ;;  %v6820_v0 = vmul.f32 %v6671_v43, %v7238_v23  ;;  %v7241_v35 = vld [vmem:[#allocation46_spill] sm:$0xff]  ;;  %v3095_v23 = vpack.c.bf16 %v3089_v19, %v3088_v28 }
 0x5fe   : > { %4825 = vmatprep.subr.bf16.mxu1 %v5211_v37  ;;  %v6812_v22 = vmul.f32 %v6635_v33, %v7236_v36  ;;  %v6828_v25 = vmul.f32 %v6583_v30, %v7241_v35  ;;  %v3096_v36 = vpack.c.bf16 %v3091_v44, %v3090_v26  ;;  %v5214_v30 = vld [vmem:[%s7113_s11 + $0xf0] sm:$0xff]   ;;  %v3093_v28 = vmul.f32 %v6713_v20, %v7243_v46  ;;  %v7244_v19 = vld [vmem:[#allocation18_spill] sm:$0xff]  ;;  %v7245_v44 = vld [vmem:[#allocation17_spill] sm:$0xff] }
 0x5ff   : > { %v3216_v33 = vpack.c.bf16 %v6808_v8, %v6801_v13  ;;  %v3229_v35 = vmul.f32 %v6536_v60, %v7244_v19  ;;  %v3230_v26 = vmul.f32 %v6542_v7, %v7245_v44  ;;  %v7246_v46 = vld [vmem:[#allocation20_spill] sm:$0xff]  ;;  %v7247_v19 = vld [vmem:[#allocation19_spill] sm:$0xff] }
 0x600   : > { %v3218_v2 = vpack.c.bf16 %v6816_v42, %v6812_v22  ;;  %v3219_v43 = vpack.c.bf16 %v6828_v25, %v6820_v0  ;;  %v5234_v60 = vld [vmem:[%s7113_s11 + $0xd0] sm:$0xff]   ;;  %v5235_v7 = vld [vmem:[%s7113_s11 + $0xd8] sm:$0xff]  }
 0x601   : > { %4826 = vmatpush3.bf16.msra.mxu1 %v5211_v37  ;;  %v7242_v37 = vld [vmem:[#allocation16_spill] sm:$0xff] }
 0x602   : > { %4835 = vmatprep.subr.bf16.mxu1 %v5212_v56  ;;  %v3092_v61 = vmul.f32 %v6733_v15, %v7242_v37  ;;  %v5216_v37 = vld [vmem:[%s7113_s11 + $0x100] sm:$0xff]  }
 0x604   : > { %4828 = vmatmul.mubr.msk.bf16.vlgmr.msra.gmra.mrb[4].mxu1 %vm2231_vm4, %v3095_v23  ;;  %v5215_v23 = vld [vmem:[%s7113_s11 + $0xf8] sm:$0xff]  }
 0x605   : > { %4836 = vmatpush3.bf16.msra.mxu1 %v5212_v56  ;;  %4831 = vmatprep.mubr.msk.bf16.mxu1 %vm2231_vm4, %v3096_v36  ;;  %v3097_v56 = vpack.c.bf16 %v3093_v28, %v3092_v61  ;;  %v3237_v36 = vpack.c.bf16 %v3230_v26, %v3229_v35  ;;  %v3232_v61 = vmul.f32 %v6554_v62, %v7247_v19  ;;  %v7248_v28 = vld [vmem:[#allocation22_spill] sm:$0xff]  ;;  %v7249_v35 = vld [vmem:[#allocation21_spill] sm:$0xff]  ;;  %v7250_v19 = vld [vmem:[#allocation24_spill] sm:$0xff] }
 0x606   : > { %4837 = vmatprep.subr.bf16.mxu1 %v5213_v49  ;;  %v3233_v44 = vmul.f32 %v6560_v47, %v7248_v28  ;;  %v3234_v26 = vmul.f32 %v6573_v38, %v7249_v35  ;;  %v7251_v28 = vld [vmem:[#allocation23_spill] sm:$0xff] }
 0x609   : > { %4838 = vmatpush3.bf16.msra.mxu1 %v5213_v49  ;;  %v3231_v49 = vmul.f32 %v6547_v4, %v7246_v46  ;;  %v5218_v46 = vld [vmem:[%s7113_s11 + $0x110] sm:$0xff]   ;;  %v7263_v4 = vpack.c.bf16 %v6532_v48, %v6573_v38  ;;  %v5310_v38 = vld [vmem:[%s5575_s23] sm:$0xff] }
 0x60a   : > { %4839 = vmatprep.subr.bf16.mxu1 %v5214_v30 }
 0x60c   : > { %4832 = vmatmul.mubr.msk.bf16.gmra.mrb[8].mxu1 %vm2231_vm4, %v3097_v56  ;;  %v5217_v56 = vld [vmem:[%s7113_s11 + $0x108] sm:$0xff]  }
 0x60d   : > { %4840 = vmatpush3.bf16.msra.mxu1 %v5214_v30  ;;  %4843 = vmatprep.mubr.msk.bf16.mxu1 %vm2231_vm4, %v3237_v36  ;;  %v3238_v30 = vpack.c.bf16 %v3232_v61, %v3231_v49  ;;  %v3239_v36 = vpack.c.bf16 %v3234_v26, %v3233_v44  ;;  %v3236_v49 = vmul.f32 %v6530_v27, %v7251_v28  ;;  %v7252_v61 = vld [vmem:[#allocation26_spill] sm:$0xff]  ;;  %v7253_v44 = vld [vmem:[#allocation25_spill] sm:$0xff] }
 0x60e   : > { %4841 = vmatprep.subr.bf16.mxu1 %v5215_v23  ;;  %v3351_v35 = vmul.f32 %v6640_v50, %v7252_v61  ;;  %v3352_v26 = vmul.f32 %v6645_v24, %v7253_v44  ;;  %v7255_v50 = vld [vmem:[#allocation27_spill] sm:$0xff]  ;;  %v5220_v24 = vld [vmem:[%s7113_s11] sm:$0xff]   ;;  %v7262_v27 = vpack.c.bf16 %v6560_v47, %v6554_v62  ;;  %v7264_v47 = vpack.c.bf16 %v6624_v55, %v6621_v45  ;;  %v5313_v55 = vld [vmem:[%s5575_s23 + $0x18] sm:$0xff] }
 0x60f   : > { %v3354_v61 = vmul.f32 %v6721_v51, %v7255_v50  ;;  %v7258_v51 = vld [vmem:[#allocation32_spill] sm:$0xff]  ;;  %v5236_v62 = vld [vmem:[%s7115_s13] sm:$0xff]   ;;  %v5312_v45 = vld [vmem:[%s5575_s23 + $0x10] sm:$0xff]  ;;  %s610_s23 = scalar_lea.vmem [#allocation4], %s4133_s0  ;;  %s5324_s0 = scalar_lea.vmem %s5323_s26, 2048 }
 0x610   : > { %v3910_v42 = vpack.c.bf16 %v5313_v55, %v5312_v45  ;;  %s4058_s29 = sshll.u32 %s610_s23, 4  ;;  %s7054_s29 = int_to_ptr.vmem [resolvable:$true] %s4058_s29 }
 0x611   : > { %4842 = vmatpush3.bf16.msra.mxu1 %v5215_v23  ;;  %v3235_v23 = vmul.f32 %v6532_v48, %v7250_v19  ;;  %v7254_v19 = vld [vmem:[#allocation28_spill] sm:$0xff]  ;;  %v5237_v48 = vld [vmem:[%s7115_s13 + $0x8] sm:$0xff]   ;;  %s5318_s22 = scalar_lea.vmem %s7054_s29, 1024  ;;  %p5325_p0 = scmp.lt.s32.totalorder %s7054_s29, %s5323_s26 }
 0x612   : > { %4851 = vmatprep.subr.bf16.mxu1 %v5216_v37  ;;  %v3353_v28 = vmul.f32 %v6694_v41, %v7254_v19  ;;  %v5221_v41 = vld [vmem:[%s7113_s11 + $0x8] sm:$0xff]   ;;  %p5319_p11 = scmp.ne.s32.totalorder %s7054_s29, %s5318_s22  ;;  %p5326_p1 = scmp.lt.s32.totalorder %s5324_s0, %s5318_s22 }
 0x614   : > { %4844 = vmatmul.mubr.msk.bf16.vlgmr.msra.gmra.mrb[4].mxu1 %vm2231_vm4, %v3238_v30  ;;  %v5219_v30 = vld [vmem:[%s7113_s11 + $0x118] sm:$0xff]   ;;  %p5320_p12 = pnand %p5319_p11, %p5527_p5  ;;  %p5327_p2 = por %p5326_p1, %p5325_p0 }
 0x615   : > { %4852 = vmatpush3.bf16.msra.mxu1 %v5216_v37  ;;  %4847 = vmatprep.mubr.msk.bf16.mxu1 %vm2231_vm4, %v3239_v36  ;;  %v3240_v37 = vpack.c.bf16 %v3236_v49, %v3235_v23  ;;  %v3359_v36 = vpack.c.bf16 %v3352_v26, %v3351_v35  ;;  %v7257_v49 = vld [vmem:[#allocation29_spill] sm:$0xff]  ;;  %v7259_v26 = vld [vmem:[#allocation31_spill] sm:$0xff] }
 0x616   : > { %4853 = vmatprep.subr.bf16.mxu1 %v5217_v56  ;;  %v3356_v35 = vmul.f32 %v6733_v15, %v7257_v49  ;;  %v3357_v15 = vmul.f32 %v6713_v20, %v7258_v51  ;;  %v5225_v20 = vld [vmem:[%s7113_s11 + $0x48] sm:$0xff]   ;;  %p5321_p13 = pneg %p5320_p12 }
 0x618   : > { %p5328_p3 = pnand %p5327_p2, %p5321_p13 }
 0x619   : > { %4854 = vmatpush3.bf16.msra.mxu1 %v5217_v56  ;;  %v7256_v56 = vld [vmem:[#allocation30_spill] sm:$0xff] }
 0x61a   : > { %4855 = vmatprep.subr.bf16.mxu1 %v5218_v46  ;;  %v3355_v23 = vmul.f32 %v6717_v53, %v7256_v56  ;;  %v5222_v53 = vld [vmem:[%s7113_s11 + $0x10] sm:$0xff]  }
 0x61c   : > { %4848 = vmatmul.mubr.msk.bf16.gmra.mrb[8].mxu1 %vm2231_vm4, %v3240_v37  ;;  %v3361_v44 = vpack.c.bf16 %v3356_v35, %v3355_v23  ;;  %v3358_v37 = vmul.f32 %v6690_v32, %v7259_v26  ;;  %v5224_v32 = vld [vmem:[%s7113_s11 + $0x40] sm:$0xff]  }
 0x61d   : > { %4856 = vmatpush3.bf16.msra.mxu1 %v5218_v46  ;;  %4859 = vmatprep.mubr.msk.bf16.mxu1 %vm2231_vm4, %v3359_v36  ;;  %v3360_v46 = vpack.c.bf16 %v3354_v61, %v3353_v28  ;;  %v5223_v36 = vld [vmem:[%s7113_s11 + $0x18] sm:$0xff]  }
 0x61e   : > { %4857 = vmatprep.subr.bf16.mxu1 %v5219_v30 }
 0x621   : > { %4858 = vmatpush3.bf16.msra.mxu1 %v5219_v30  ;;  %v3362_v30 = vpack.c.bf16 %v3358_v37, %v3357_v15 }
 0x622   : > { %4867 = vmatprep.subr.bf16.mxu1 %v5220_v24 }
 0x624   : > { %4860 = vmatmul.mubr.msk.bf16.vlgmr.msra.gmra.mrb[4].mxu1 %vm2231_vm4, %v3360_v46 }
 0x625   : > { %4868 = vmatpush3.bf16.msra.mxu1 %v5220_v24  ;;  %4863 = vmatprep.mubr.msk.bf16.mxu1 %vm2231_vm4, %v3361_v44 }
 0x626   : > { %4869 = vmatprep.subr.bf16.mxu1 %v5221_v41 }
 0x629   : > { %4870 = vmatpush3.bf16.msra.mxu1 %v5221_v41 }
 0x62a   : > { %4871 = vmatprep.subr.bf16.mxu1 %v5222_v53 }
 0x62c   : > { %4864 = vmatmul.mubr.msk.bf16.gmra.mrb[8].mxu1 %vm2231_vm4, %v3362_v30 }
 0x62d   : > { %4872 = vmatpush3.bf16.msra.mxu1 %v5222_v53  ;;  %4875 = vmatprep.mubr.msk.bf16.mxu1 %vm2231_vm4, %v2784_v59  ;;  %v3909_v59 = vpack.c.bf16 %v5311_v14, %v5310_v38 }
 0x62e   : > { %4873 = vmatprep.subr.bf16.mxu1 %v5223_v36 }
 0x631   : > { %4874 = vmatpush3.bf16.msra.mxu1 %v5223_v36 }
 0x632   : > { %4883 = vmatprep.subr.bf16.mxu1 %v5224_v32 }
 0x634   : > { %4876 = vmatmul.mubr.msk.bf16.vlgmr.msra.gmra.mrb[4].mxu1 %vm2231_vm4, %v2785_v5  ;;  %v5230_v5 = vld [vmem:[%s7113_s11 + $0x90] sm:$0xff]  }
 0x635   : > { %4884 = vmatpush3.bf16.msra.mxu1 %v5224_v32  ;;  %4879 = vmatprep.mubr.msk.bf16.mxu1 %vm2231_vm4, %v2786_v21  ;;  %v3911_v21 = vpack.c.bf16 %v5315_v12, %v5314_v31 }
 0x636   : > { %4885 = vmatprep.subr.bf16.mxu1 %v5225_v20 }
 0x639   : > { %4886 = vmatpush3.bf16.msra.mxu1 %v5225_v20 }
 0x63a   : > { %4887 = vmatprep.subr.bf16.mxu1 %v5226_v3 }
 0x63c   : > { %4880 = vmatmul.mubr.msk.bf16.gmra.mrb[8].mxu1 %vm2231_vm4, %v2787_v29  ;;  %v4427_v29 = vld [vmem:[%s7116_s14] ss:$0 sm:$0xff] }
 0x63d   : > { %4888 = vmatpush3.bf16.msra.mxu1 %v5226_v3  ;;  %4891 = vmatprep.mubr.msk.bf16.mxu1 %vm2231_vm4, %v2942_v39 }
 0x63e   : > { %4889 = vmatprep.subr.bf16.mxu1 %v5227_v17 }
 0x641   : > { %4890 = vmatpush3.bf16.msra.mxu1 %v5227_v17 }
 0x642   : > { %4899 = vmatprep.subr.bf16.mxu1 %v5228_v34 }
 0x644   : > { %4892 = vmatmul.mubr.msk.bf16.vlgmr.msra.gmra.mrb[4].mxu1 %vm2231_vm4, %v2943_v11  ;;  %v5233_v11 = vld [vmem:[%s7113_s11 + $0xc8] sm:$0xff]  }
 0x645   : > { %4900 = vmatpush3.bf16.msra.mxu1 %v5228_v34  ;;  %4895 = vmatprep.mubr.msk.bf16.mxu1 %vm2231_vm4, %v2944_v40 }
 0x646   : > { %4901 = vmatprep.subr.bf16.mxu1 %v5229_v57 }
 0x649   : > { %4902 = vmatpush3.bf16.msra.mxu1 %v5229_v57 }
 0x64a   : > { %4903 = vmatprep.subr.bf16.mxu1 %v5230_v5 }
 0x64c   : > { %4896 = vmatmul.mubr.msk.bf16.gmra.mrb[8].mxu1 %vm2231_vm4, %v2945_v6 }
 0x64d   : > { %4904 = vmatpush3.bf16.msra.mxu1 %v5230_v5  ;;  %4907 = vmatprep.mubr.msk.bf16.mxu1 %vm2231_vm4, %v7260_v9 }
 0x64e   : > { %4905 = vmatprep.subr.bf16.mxu1 %v5231_v54 }
 0x651   : > { %4906 = vmatpush3.bf16.msra.mxu1 %v5231_v54 }
 0x652   : > { %4915 = vmatprep.subr.bf16.mxu1 %v5232_v16 }
 0x654   : > { %4908 = vmatmul.mubr.msk.bf16.vlgmr.msra.gmra.mrb[4].mxu1 %vm2231_vm4, %v7261_v58 }
 0x655   : > { %4916 = vmatpush3.bf16.msra.mxu1 %v5232_v16  ;;  %4911 = vmatprep.mubr.msk.bf16.mxu1 %vm2231_vm4, %v7262_v27 }
 0x656   : > { %4917 = vmatprep.subr.bf16.mxu1 %v5233_v11 }
 0x659   : > { %4918 = vmatpush3.bf16.msra.mxu1 %v5233_v11 }
 0x65a   : > { %4919 = vmatprep.subr.bf16.mxu1 %v5234_v60 }
 0x65c   : > { %4912 = vmatmul.mubr.msk.bf16.gmra.mrb[8].mxu1 %vm2231_vm4, %v7263_v4 }
 0x65d   : > { %4920 = vmatpush3.bf16.msra.mxu1 %v5234_v60  ;;  %4923 = vmatprep.mubr.msk.bf16.mxu1 %vm2231_vm4, %v3216_v33 }
 0x65e   : > { %4921 = vmatprep.subr.bf16.mxu1 %v5235_v7 }
 0x661   : > { %4922 = vmatpush3.bf16.msra.mxu1 %v5235_v7 }
 0x662   : > { %4931 = vmatprep.subr.bf16.mxu1 %v5236_v62 }
 0x664   : > { %4924 = vmatmul.mubr.msk.bf16.vlgmr.msra.gmra.mrb[4].mxu1 %vm2231_vm4, %v7264_v47 }
 0x665   : > { %4932 = vmatpush3.bf16.msra.mxu1 %v5236_v62  ;;  %4927 = vmatprep.mubr.msk.bf16.mxu1 %vm2231_vm4, %v3218_v2 }
 0x666   : > { %4933 = vmatprep.subr.bf16.mxu1 %v5237_v48 }
 0x669   : > { %4934 = vmatpush3.bf16.msra.mxu1 %v5237_v48 }
 0x66c   : > { %4928 = vmatmul.mubr.msk.bf16.gmra.mrb[8].mxu1 %vm2231_vm4, %v3219_v43 }
 0x66d   : > { %4935 = vmatprep.mubr.msk.bf16.mxu1 %vm630_vm0, %v3909_v59 }
 0x674   : > { %4936 = vmatmul.mubr.msk.bf16.vlgmr.msra.gmra.mrb[4].mxu1 %vm630_vm0, %v3910_v42 }
 0x675   : > { %4939 = vmatprep.mubr.msk.bf16.mxu1 %vm630_vm0, %v3911_v21 }
 0x67c   : > { %4940 = vmatmul.mubr.msk.bf16.gmra.mrb[8].mxu1 %vm630_vm0, %v3912_v18 }
 0x747   : > { %v4937_v1 = vpop.f32.mrb[4].mxu1 }
 0x748   : > { %v3991_v39 = vadd.f32 %v4937_v1, %v4427_v29  ;;  %v3982_v40 = vpop.f32.mrb[5].mxu1 }
 0x749   : > { %v3983_v6 = vadd.f32 %v4427_v29, %v3982_v40  ;;  %v4938_v13 = vpop.f32.mrb[6].mxu1 }
 0x74a   : > { %v4980_v8 = vadd.f32 %v4434_v52, %v3991_v39  ;;  %v3994_v22 = vadd.f32 %v4938_v13, %v4427_v29  ;;  %v3985_v0 = vpop.f32.mrb[7].mxu1 }
 0x74b   : > { %v4982_v25 = vadd.f32 %v4434_v52, %v3983_v6  ;;  %v3986_v33 = vadd.f32 %v4427_v29, %v3985_v0 }
 0x74c   : > { %4038 = vst.msk [vmem:[%s610_s23 + $0x10] sm:$0xff] %vm2231_vm4, %v4980_v8  ;;  %v4984_v2 = vadd.f32 %v4434_v52, %v3994_v22 }
 0x74d   : > { %4036 = vst.msk [vmem:[%s610_s23] sm:$0xff] %vm2231_vm4, %v4982_v25  ;;  %v4986_v43 = vadd.f32 %v4434_v52, %v3986_v33 }
 0x74e   : > { %4039 = vst.msk [vmem:[%s610_s23 + $0x18] sm:$0xff] %vm2231_vm4, %v4984_v2 }
 0x74f   : > { %4037 = vst.msk [vmem:[%s610_s23 + $0x8] sm:$0xff] %vm2231_vm4, %v4986_v43  ;;  %v4941_v19 = vpop.f32.mrb[8].mxu1 }
 0x750   : > { %v4007_v28 = vadd.f32 %v4941_v19, %v4427_v29  ;;  %v3998_v50 = vpop.f32.mrb[9].mxu1 }
 0x751   : > { %v3999_v61 = vadd.f32 %v4427_v29, %v3998_v50  ;;  %v4942_v24 = vpop.f32.mrb[10].mxu1 }
 0x752   : > { %v4988_v56 = vadd.f32 %v4434_v52, %v4007_v28  ;;  %v4010_v23 = vadd.f32 %v4942_v24, %v4427_v29  ;;  %v4001_v49 = vpop.f32.mrb[11].mxu1 }
 0x753   : > { %v4990_v35 = vadd.f32 %v4434_v52, %v3999_v61  ;;  %v4002_v46 = vadd.f32 %v4427_v29, %v4001_v49 }
 0x754   : > { %4042 = vst.msk [vmem:[%s610_s23 + $0x30] sm:$0xff] %vm2231_vm4, %v4988_v56  ;;  %v4992_v41 = vadd.f32 %v4434_v52, %v4010_v23 }
 0x755   : > { %4040 = vst.msk [vmem:[%s610_s23 + $0x20] sm:$0xff] %vm2231_vm4, %v4990_v35  ;;  %v4994_v44 = vadd.f32 %v4434_v52, %v4002_v46 }
 0x756   : > { %4043 = vst.msk [vmem:[%s610_s23 + $0x38] sm:$0xff] %vm2231_vm4, %v4992_v41 }
 0x757   : > { %4041 = vst.msk [vmem:[%s610_s23 + $0x28] sm:$0xff] %vm2231_vm4, %v4994_v44 }
 0x758   : > { %5331 = shalt.err (!%p5328_p3)
}
 0x759   : > { %s5332_s2 = scalar_lea.hbm %s7052_s21, 1024  ;;  %s5336_s23 = scalar_lea.hbm %s7120_s19, 2048 }
 0x75a   : > { %p5333_p4 = scmp.ne.s32.totalorder %s7052_s21, %s5332_s2  ;;  %p5337_p9 = scmp.lt.u32.totalorder %s7052_s21, %s7120_s19 }
 0x75b   : > { %p5338_p10 = scmp.lt.u32.totalorder %s5336_s23, %s5332_s2  ;;  %p5340_p12 = scmp.lt.u32.totalorder %s5332_s2, %s7052_s21 }
 0x75c   : > { %p5334_p7 = pnand %p5333_p4, %p5527_p5 }
 0x75d   : > { %p5339_p11 = por %p5338_p10, %p5337_p9 }
 0x75e   : > { %p5335_p8 = pneg %p5334_p7 }
 0x75f   : > { %p5341_p13 = por %p5340_p12, %p5339_p11 }
 0x761   : > { %p5342_p0 = pnand %p5341_p13, %p5335_p8 }
 0x763   : > { %5345 = shalt.err (!%p5342_p0)
}
 0x764   : > { %s5387_s15 = smov 128   ;;  %s5388_s22 = smov 8  }
 0x765   : > { %5131 = dma.vmem_to_hbm [thread:$0]  (%p5527_p5), %s7054_s29, 1024, %s7052_s21, %s7061_s16, %s5387_s15, %s5387_s15, %s5388_s22  }
 0x766 PF: > { %s7265_s3 = sld [smem:[#allocation9_spill]]  ;;  %s7266_s26 = sld [smem:[#allocation7_spill]] }
 0x76c   : > { %p5137_p1 = scmp.ge.s32.totalorder %s7265_s3, 2  ;;  %s4073_s1 = sand.u32 1, %s7266_s26  }
 0x76d   : > { %s4074_s2 = scalar_lea.sflag [#allocation5], %s4073_s1 }
 0x76e   : > { %p5134_p2 = pnand %p5137_p1, %p5531_p6 }
 0x770   : > { %5363 = dma.done.wait (!%p5134_p2), %s4074_s2, 1024  }
 0x771   : > { %5365 = vsyncadd (!%p5134_p2), %s4074_s2, 4294966272  ;;  %s7268_s15 = sld [smem:[#allocation10_spill]]  ;;  %s7269_s25 = sld [smem:[#allocation8_spill]] }
 0x772   : > { %s7270_s20 = sld [smem:[#allocation11_spill]]  ;;  %s7271_s0 = smov %s5372_s30 }
 0x777   : > { %p33_p3 = scmp.ge.s32.totalorder %s7268_s15, 4   ;;  %s7272_s30 = smov %s7269_s25 }
 0x779   :  { %35 = sbr.rel (!%p33_p3) target bundleno = 8 (0x8), region = 157 }
 0x780   :  { %4079 = vsyncpa [#allocation5], 1 }
 0x781   :  { %4081 = vsyncpa [#allocation5 + $0x1], 1 }

// kernel: res_block_forward.1
= control target key start
LH: loop header
LB: loop body
LE: loop exit
PB: predicated region body
PF: predicated region fallthrough
CT: control target
= control target key end

     0   :  { %s8462_s0 = inlined_call_operand.vmem [shape: f32[2,64,32], index: 0, kind: input, shape index: {}]   ;;  %s8463_s1 = inlined_call_operand.vmem [shape: f32[2,1,64], index: 1, kind: input, shape index: {}]   ;;  %s8464_s2 = inlined_call_operand.vmem [shape: bf16[9,64,64], index: 2, kind: input, shape index: {}]   ;;  %s8465_s3 = inlined_call_operand.vmem [shape: f32[1,32], index: 3, kind: input, shape index: {}]   ;;  %s8466_s4 = inlined_call_operand.vmem [shape: f32[1,32], index: 4, kind: input, shape index: {}]   ;;  %s8467_s5 = inlined_call_operand.vmem [shape: bf16[9,32,64], index: 5, kind: input, shape index: {}]   ;;  %s8468_s6 = inlined_call_operand.vmem [shape: f32[1,64], index: 6, kind: input, shape index: {}]   ;;  %s8469_s7 = inlined_call_operand.vmem [shape: bf16[64,64], index: 7, kind: input, shape index: {}]   ;;  %s8470_s8 = inlined_call_operand.vmem [shape: f32[1,64], index: 8, kind: input, shape index: {}]   ;;  %s8471_s9 = inlined_call_operand.vmem [shape: f32[1,64], index: 9, kind: input, shape index: {}]   ;;  %s8472_s10 = inlined_call_operand.vmem [shape: f32[1,64], index: 10, kind: input, shape index: {}]   ;;  %s8473_s11 = inlined_call_operand.vmem [shape: bf16[9,64,64], index: 11, kind: input, shape index: {}]   ;;  %s8474_s12 = inlined_call_operand.vmem [shape: f32[1,64], index: 12, kind: input, shape index: {}]   ;;  %s8475_s13 = inlined_call_operand.vmem [shape: bf16[32,64], index: 13, kind: input, shape index: {}]   ;;  %s8476_s14 = inlined_call_operand.vmem [shape: f32[1,64], index: 14, kind: input, shape index: {}]   ;;  %s8477_s15 = inlined_call_operand.<no memory space> [shape: f32[1,1], index: 15, kind: input, shape index: {}, may-alias: {15,16}]   ;;  %s8478_s17 = inlined_call_operand.vmem [shape: f32[64,32], index: 17, kind: input, shape index: {}]   ;;  %s8479_s18 = inlined_call_operand.vmem [shape: f32[32,64], index: 18, kind: input, shape index: {}]   ;;  %s8480_s19 = inlined_call_operand.hbm [shape: f32[2,64,64], index: 19, kind: output, shape index: {}]   ;;  %s8481_s16 = inlined_call_operand.<no memory space> [shape: f32[1,1], index: 16, kind: input, shape index: {}, may-alias: {15,16}]  }
   0x1   :  { %8486 = sst [smem:[#allocation10_spill]] %s8462_s0 }
   0x2   :  { %8487 = sst [smem:[#allocation11_spill]] %s8463_s1 }
   0x3   :  { %8488 = sst [smem:[#allocation12_spill]] %s8464_s2 }
   0x4   :  { %8489 = sst [smem:[#allocation13_spill]] %s8465_s3 }
   0x5   :  { %8490 = sst [smem:[#allocation14_spill]] %s8466_s4 }
   0x6   :  { %28 = vsyncpa [#allocation5], 0 }
   0x7   :  { %30 = vsyncpa [#allocation5 + $0x1], 0  ;;  %s7064_s0 = smov 0   ;;  %s7066_s30 = smov 0  }
   0x8   :  { %s7068_s20 = smov 0   ;;  %s7070_s15 = smov 0  }
   0x9 LB: > { %8491 = sst [smem:[#allocation7_spill]] %s6952_s20  ;;  %s7085_s16 = sadd.s32 4294967295, %s6956_s15   ;;  %s6956_s15 = sphi %s7070_s15, %s8514_s15   ;;  %s6952_s20 = sphi %s7068_s20, %s8516_s20   ;;  %s6948_s30 = sphi %s7066_s30, %s8518_s30   ;;  %s6944_s0 = sphi %s7064_s0, %s8517_s0  }
   0xa   : > { %s5088_s21 = sadd.s32 4294967294, %s6956_s15   ;;  %s7089_s1 = sadd.s32 1, %s6956_s15  }
   0xb   : > { %8492 = sst [smem:[#allocation8_spill]] %s7089_s1  ;;  %s452_s22 = sadd.s32 1, %s6952_s20 }
   0xc   : > { %s449_s2 = ssub.s32 %s6956_s15, %s7089_s1  ;;  %p462_p0 = scmp.ne.s32.totalorder %s6952_s20, %s6948_s30 }
   0xd   : > { %p450_p1 = scmp.eq.s32.totalorder %s449_s2, 0  ;;  %p463_p2 = scmp.eq.s32.totalorder %s7085_s16, 1 }
   0xe   : > { %p468_p3 = scmp.ne.s32.totalorder %s6948_s30, %s6944_s0  ;;  %p469_p4 = scmp.eq.s32.totalorder %s5088_s21, 1 }
   0xf   : > { %s7100_s23 = scalar_select %p450_p1, %s6952_s20, %s452_s22  }
  0x10   : > { %p7102_p5 = por %p463_p2, %p462_p0  ;;  %p7106_p6 = por %p469_p4, %p468_p3 }
  0x11   : > { %8493 = sst [smem:[#allocation9_spill]] %s7100_s23  ;;  %p5091_p7 = scmp.ge.s32.totalorder %s6956_s15, 1 }
  0x12   : > { %p552_p8 = scmp.lt.s32.totalorder %s6956_s15, 3 }
  0x14   : > { %p553_p9 = pnand %p5091_p7, %p552_p8 }
  0x15   : > { %p611_p10 = scmp.lt.s32.totalorder (!%p553_p9), %s7085_s16, 1  ;;  %vm630_vm0 = vcmask (!%p553_p9), 261120   ;;  %s8496_s29 = sld [smem:[#allocation10_spill]] (!%p553_p9)  ;;  %vm817_vm1 = vcmask (!%p553_p9), 523264   ;;  %vm6959_vm2 = vmmov (!%p553_p9), 0  }
  0x16   : > { %556 = sbr.rel (%p553_p9) target bundleno = 3251 (0xcb3), region = 96  ;;  %s8499_s4 = sld [smem:[#allocation14_spill]] (!%p553_p9) }
  0x17   : > { %s8500_s27 = sld [smem:[#allocation11_spill]] (!%p553_p9)  ;;  %s5516_s22 = sshll.u32 (!%p553_p9), %s7085_s16, 10 }
  0x18   : > { %s8412_s2 = scalar_lea.hbm (!%p553_p9), %s8480_s19, %s5516_s22 }
  0x1d   : > { %s7114_s3 = scalar_select %p611_p10, %s7085_s16, 1 }
  0x1f   : > { %s5515_s26 = sshll.u32 %s7114_s3, 6  ;;  %s618_s1 = scalar_lea.vmem %s8500_s27, %s7114_s3 }
  0x20   : > { %s7120_s21 = scalar_lea.vmem %s8496_s29, %s5515_s26  ;;  %s8497_s26 = sld [smem:[#allocation12_spill]] }
  0x21   : > { %v620_v0 = vld [vmem:[%s7120_s21] sm:$0xff]  ;;  %v621_v1 = vld [vmem:[%s7120_s21 + $0x8] sm:$0xff]  ;;  %v622_v2 = vld [vmem:[%s7120_s21 + $0x10] sm:$0xff]  ;;  %s8498_s29 = sld [smem:[#allocation13_spill]] }
  0x22   : > { %v623_v3 = vld [vmem:[%s7120_s21 + $0x18] sm:$0xff]  ;;  %v624_v4 = vld [vmem:[%s7120_s21 + $0x20] sm:$0xff]  ;;  %v625_v5 = vld [vmem:[%s7120_s21 + $0x28] sm:$0xff]  ;;  %v631_v6 = vsel %vm630_vm0, %v620_v0, 0.0  ;;  %v632_v7 = vsel %vm630_vm0, %v621_v1, 0.0  ;;  %v634_v8 = vsel %vm630_vm0, %v622_v2, 0.0 }
  0x23   : > { %v633_v9 = vadd.f32 %v632_v7, %v631_v6  ;;  %v626_v11 = vld [vmem:[%s7120_s21 + $0x30] sm:$0xff]  ;;  %v627_v12 = vld [vmem:[%s7120_s21 + $0x38] sm:$0xff]  ;;  %v636_v13 = vsel %vm630_vm0, %v623_v3, 0.0  ;;  %v638_v14 = vsel %vm630_vm0, %v624_v4, 0.0  ;;  %v640_v15 = vsel %vm630_vm0, %v625_v5, 0.0 }
  0x24   : > { %v642_v19 = vsel %vm630_vm0, %v626_v11, 0.0  ;;  %v644_v20 = vsel %vm630_vm0, %v627_v12, 0.0 }
  0x25   : > { %v635_v16 = vadd.f32 %v634_v8, %v633_v9 }
  0x26   : > { %v6682_v10 = vld [vmem:[%s8497_s26] sm:$0xff]  }
  0x27   : > { %5834 = vmatprep.mubr.msk.bf16.mxu1 %vm817_vm1, %v6682_v10  ;;  %v637_v17 = vadd.f32 %v636_v13, %v635_v16  ;;  %v5095_v7 = vld [vmem:[%s8498_s29] ss:$0 sm:$0xff] }
  0x29   : > { %v639_v18 = vadd.f32 %v638_v14, %v637_v17 }
  0x2b   : > { %v641_v21 = vadd.f32 %v640_v15, %v639_v18 }
  0x2d   : > { %v643_v22 = vadd.f32 %v642_v19, %v641_v21 }
  0x2f   : > { %v645_v23 = vadd.f32 %v644_v20, %v643_v22 }
  0x31   : > { %v646_v24 = vrot.slane %v645_v23, 4 }
  0x33   : > { %v647_v25 = vadd.f32 %v646_v24, %v645_v23 }
  0x35   : > { %v648_v26 = vrot.slane %v647_v25, 2 }
  0x37   : > { %v649_v27 = vadd.f32 %v648_v26, %v647_v25 }
  0x39   : > { %v650_v28 = vrot.slane %v649_v27, 1 }
  0x3b   : > { %v651_v29 = vadd.f32 %v650_v28, %v649_v27 }
  0x3d   : > { %v652_v30 = vmul.f32 0.015625, %v651_v29 }
  0x3f   : > { %v653_v31 = vsub.f32 %v620_v0, %v652_v30  ;;  %v654_v32 = vsub.f32 %v621_v1, %v652_v30  ;;  %v655_v33 = vsub.f32 %v622_v2, %v652_v30  ;;  %v656_v34 = vsub.f32 %v623_v3, %v652_v30 }
  0x40   : > { %v657_v35 = vsub.f32 %v624_v4, %v652_v30  ;;  %v658_v36 = vsub.f32 %v625_v5, %v652_v30  ;;  %v659_v37 = vsub.f32 %v626_v11, %v652_v30  ;;  %v660_v38 = vsub.f32 %v627_v12, %v652_v30  ;;  %v5096_v12 = vld [vmem:[%s8499_s4] ss:$0 sm:$0xff]  ;;  %s608_s4 = sand.u32 1, %s6948_s30  }
  0x41   : > { %v661_v39 = vmul.f32 %v653_v31, %v653_v31  ;;  %v662_v40 = vmul.f32 %v654_v32, %v654_v32  ;;  %v663_v41 = vmul.f32 %v655_v33, %v655_v33  ;;  %v664_v42 = vmul.f32 %v656_v34, %v656_v34  ;;  %s8421_s16 = scalar_lea.sflag [#allocation5], %s608_s4 }
  0x42   : > { %v665_v43 = vmul.f32 %v657_v35, %v657_v35  ;;  %v666_v44 = vmul.f32 %v658_v36, %v658_v36  ;;  %v667_v45 = vmul.f32 %v659_v37, %v659_v37  ;;  %v668_v46 = vmul.f32 %v660_v38, %v660_v38 }
  0x43   : > { %v669_v47 = vsel %vm630_vm0, %v661_v39, 0.0  ;;  %v670_v48 = vsel %vm630_vm0, %v662_v40, 0.0  ;;  %v672_v49 = vsel %vm630_vm0, %v663_v41, 0.0  ;;  %v674_v51 = vsel %vm630_vm0, %v664_v42, 0.0 }
  0x44   : > { %v671_v50 = vadd.f32 %v670_v48, %v669_v47  ;;  %v676_v52 = vsel %vm630_vm0, %v665_v43, 0.0  ;;  %v678_v53 = vsel %vm630_vm0, %v666_v44, 0.0  ;;  %v680_v54 = vsel %vm630_vm0, %v667_v45, 0.0 }
  0x45   : > { %v682_v55 = vsel %vm630_vm0, %v668_v46, 0.0 }
  0x46   : > { %v673_v56 = vadd.f32 %v672_v49, %v671_v50 }
  0x48   : > { %v675_v57 = vadd.f32 %v674_v51, %v673_v56 }
  0x4a   : > { %v677_v58 = vadd.f32 %v676_v52, %v675_v57 }
  0x4c   : > { %v679_v59 = vadd.f32 %v678_v53, %v677_v58 }
  0x4e   : > { %v681_v60 = vadd.f32 %v680_v54, %v679_v59 }
  0x50   : > { %v683_v61 = vadd.f32 %v682_v55, %v681_v60 }
  0x52   : > { %v684_v62 = vrot.slane %v683_v61, 4 }
  0x54   : > { %v685_v63 = vadd.f32 %v684_v62, %v683_v61 }
  0x56   : > { %v686_v0 = vrot.slane %v685_v63, 2 }
  0x58   : > { %v687_v1 = vadd.f32 %v686_v0, %v685_v63 }
  0x5a   : > { %v688_v2 = vrot.slane %v687_v1, 1 }
  0x5c   : > { %v689_v3 = vadd.f32 %v688_v2, %v687_v1 }
  0x5e   : > { %v690_v4 = vmul.f32 0.015625, %v689_v3 }
  0x60   : > { %v691_v5 = vadd.f32 1e-05, %v690_v4 }
  0x62   : > { %6778 = vrsqrt.f32 %v691_v5 }
  0x6c   : > { %v6779_v6 = vpop.eup %6778 }
  0x6d   : > { %v693_v8 = vmul.f32 %v6779_v6, %v653_v31  ;;  %v694_v9 = vmul.f32 %v6779_v6, %v654_v32  ;;  %v695_v10 = vmul.f32 %v6779_v6, %v655_v33  ;;  %v696_v11 = vmul.f32 %v6779_v6, %v656_v34 }
  0x6e   : > { %v697_v13 = vmul.f32 %v6779_v6, %v657_v35  ;;  %v698_v14 = vmul.f32 %v6779_v6, %v658_v36  ;;  %v699_v15 = vmul.f32 %v6779_v6, %v659_v37  ;;  %v700_v16 = vmul.f32 %v6779_v6, %v660_v38 }
  0x6f   : > { %v707_v17 = vmul.f32 %v5095_v7, %v693_v8  ;;  %v708_v18 = vmul.f32 %v5095_v7, %v694_v9  ;;  %v709_v19 = vmul.f32 %v5095_v7, %v695_v10  ;;  %v710_v20 = vmul.f32 %v5095_v7, %v696_v11 }
  0x70   : > { %v711_v21 = vmul.f32 %v5095_v7, %v697_v13  ;;  %v712_v22 = vmul.f32 %v5095_v7, %v698_v14  ;;  %v713_v23 = vmul.f32 %v5095_v7, %v699_v15  ;;  %v714_v24 = vmul.f32 %v5095_v7, %v700_v16 }
  0x71   : > { %v721_v25 = vadd.f32 %v5096_v12, %v707_v17  ;;  %v722_v26 = vadd.f32 %v5096_v12, %v708_v18  ;;  %v723_v27 = vadd.f32 %v5096_v12, %v709_v19  ;;  %v724_v28 = vadd.f32 %v5096_v12, %v710_v20 }
  0x72   : > { %v7156_v29 = vadd.f32 %v5096_v12, %v711_v21  ;;  %v7158_v30 = vadd.f32 %v5096_v12, %v712_v22  ;;  %v7160_v31 = vadd.f32 %v5096_v12, %v713_v23  ;;  %v7162_v32 = vadd.f32 %v5096_v12, %v714_v24  ;;  %v6683_v21 = vld [vmem:[%s8497_s26 + $0x8] sm:$0xff]   ;;  %v6684_v22 = vld [vmem:[%s8497_s26 + $0x10] sm:$0xff]   ;;  %v6685_v23 = vld [vmem:[%s8497_s26 + $0x18] sm:$0xff]  }
  0x73   : > { %v729_v33 = vsub.f32 0.0, %v721_v25  ;;  %v730_v34 = vsub.f32 0.0, %v722_v26  ;;  %v731_v35 = vsub.f32 0.0, %v723_v27  ;;  %v732_v36 = vsub.f32 0.0, %v724_v28  ;;  %v6686_v24 = vld [vmem:[%s8497_s26 + $0x20] sm:$0xff]  }
  0x74   : > { %v733_v37 = vsub.f32 0.0, %v7156_v29  ;;  %v734_v38 = vsub.f32 0.0, %v7158_v30  ;;  %v735_v39 = vsub.f32 0.0, %v7160_v31  ;;  %v736_v44 = vsub.f32 0.0, %v7162_v32 }
  0x75   : > { %v737_v40 = vmul.f32 1.442695, %v729_v33  ;;  %v739_v41 = vmul.f32 1.442695, %v730_v34  ;;  %v741_v42 = vmul.f32 1.442695, %v731_v35 }
  0x76   : > { %v743_v43 = vmul.f32 1.442695, %v732_v36  ;;  %v745_v45 = vmul.f32 1.442695, %v733_v37  ;;  %v747_v46 = vmul.f32 1.442695, %v734_v38 }
  0x77   : > { %6780 = vpow2.f32 %v737_v40  ;;  %v749_v47 = vmul.f32 1.442695, %v735_v39  ;;  %v751_v48 = vmul.f32 1.442695, %v736_v44 }
  0x78   : > { %6782 = vpow2.f32 %v739_v41 }
  0x79   : > { %6784 = vpow2.f32 %v741_v42 }
  0x7a   : > { %6786 = vpow2.f32 %v743_v43 }
  0x7b   : > { %6788 = vpow2.f32 %v745_v45 }
  0x7c   : > { %6790 = vpow2.f32 %v747_v46 }
  0x7d   : > { %6792 = vpow2.f32 %v749_v47 }
  0x7e   : > { %6794 = vpow2.f32 %v751_v48 }
  0x81   : > { %v6781_v49 = vpop.eup %6780 }
  0x82   : > { %v6783_v50 = vpop.eup %6782  ;;  %v753_v51 = vadd.f32 1.0, %v6781_v49 }
  0x83   : > { %v6785_v52 = vpop.eup %6784  ;;  %v754_v53 = vadd.f32 1.0, %v6783_v50 }
  0x84   : > { %v6787_v54 = vpop.eup %6786  ;;  %6796 = vrcp.f32 %v753_v51  ;;  %v755_v55 = vadd.f32 1.0, %v6785_v52 }
  0x85   : > { %v6789_v56 = vpop.eup %6788  ;;  %6798 = vrcp.f32 %v754_v53  ;;  %v756_v57 = vadd.f32 1.0, %v6787_v54  ;;  %v6692_v54 = vld [vmem:[%s8497_s26 + $0x40] sm:$0xff]  }
  0x86   : > { %v6791_v58 = vpop.eup %6790  ;;  %6800 = vrcp.f32 %v755_v55  ;;  %v757_v59 = vadd.f32 1.0, %v6789_v56  ;;  %v6693_v55 = vld [vmem:[%s8497_s26 + $0x48] sm:$0xff]   ;;  %v6694_v56 = vld [vmem:[%s8497_s26 + $0x50] sm:$0xff]  }
  0x87   : > { %v6793_v60 = vpop.eup %6792  ;;  %6802 = vrcp.f32 %v756_v57  ;;  %v758_v61 = vadd.f32 1.0, %v6791_v58  ;;  %v6695_v57 = vld [vmem:[%s8497_s26 + $0x58] sm:$0xff]   ;;  %v6696_v58 = vld [vmem:[%s8497_s26 + $0x60] sm:$0xff]  }
  0x88   : > { %v6795_v62 = vpop.eup %6794  ;;  %6804 = vrcp.f32 %v757_v59  ;;  %v759_v63 = vadd.f32 1.0, %v6793_v60  ;;  %v6697_v59 = vld [vmem:[%s8497_s26 + $0x68] sm:$0xff]   ;;  %v6698_v60 = vld [vmem:[%s8497_s26 + $0x70] sm:$0xff]  }
  0x89   : > { %6806 = vrcp.f32 %v758_v61  ;;  %v760_v0 = vadd.f32 1.0, %v6795_v62  ;;  %v6699_v61 = vld [vmem:[%s8497_s26 + $0x78] sm:$0xff]   ;;  %v6700_v62 = vld [vmem:[%s8497_s26 + $0x80] sm:$0xff]  }
  0x8a   : > { %6808 = vrcp.f32 %v759_v63  ;;  %v6701_v63 = vld [vmem:[%s8497_s26 + $0x88] sm:$0xff]  }
  0x8b   : > { %6810 = vrcp.f32 %v760_v0  ;;  %v6702_v0 = vld [vmem:[%s8497_s26 + $0x90] sm:$0xff]  }
  0x8e   : > { %v6797_v1 = vpop.eup %6796 }
  0x8f   : > { %v6799_v2 = vpop.eup %6798  ;;  %v777_v3 = vmul.f32 %v6797_v1, %v721_v25  ;;  %v6687_v25 = vld [vmem:[%s8497_s26 + $0x28] sm:$0xff]   ;;  %v6703_v1 = vld [vmem:[%s8497_s26 + $0x98] sm:$0xff]  }
  0x90   : > { %v6801_v4 = vpop.eup %6800  ;;  %v778_v5 = vmul.f32 %v6799_v2, %v722_v26  ;;  %v6688_v26 = vld [vmem:[%s8497_s26 + $0x30] sm:$0xff]   ;;  %v6704_v2 = vld [vmem:[%s8497_s26 + $0xa0] sm:$0xff]  }
  0x91   : > { %v6803_v6 = vpop.eup %6802  ;;  %v779_v7 = vmul.f32 %v6801_v4, %v723_v27  ;;  %v6689_v27 = vld [vmem:[%s8497_s26 + $0x38] sm:$0xff]   ;;  %v6706_v4 = vld [vmem:[%s8497_s26 + $0xb0] sm:$0xff]  }
  0x92   : > { %v6805_v8 = vpop.eup %6804  ;;  %v7168_v9 = vpack.c.bf16 %v778_v5, %v777_v3  ;;  %v780_v10 = vmul.f32 %v6803_v6, %v724_v28  ;;  %v6690_v28 = vld [vmem:[%s8467_s5 + $0x10] sm:$0xff]   ;;  %v6705_v3 = vld [vmem:[%s8497_s26 + $0xa8] sm:$0xff]   ;;  %v6707_v5 = vld [vmem:[%s8497_s26 + $0xb8] sm:$0xff]  }
  0x93   : > { %v6807_v11 = vpop.eup %6806  ;;  %v781_v12 = vmul.f32 %v6805_v8, %v7156_v29  ;;  %v6691_v29 = vld [vmem:[%s8467_s5 + $0x18] sm:$0xff]   ;;  %v6708_v6 = vld [vmem:[%s8467_s5 + $0x30] sm:$0xff]  }
  0x94   : > { %v6809_v13 = vpop.eup %6808  ;;  %5826 = vmatprep.subr.bf16.mxu1 %v7168_v9  ;;  %v7172_v14 = vpack.c.bf16 %v780_v10, %v779_v7  ;;  %v782_v15 = vmul.f32 %v6807_v11, %v7158_v30  ;;  %5902 = vmatprep.subr.bf16.mxu0 %v6708_v6  ;;  %v6709_v7 = vld [vmem:[%s8467_s5 + $0x38] sm:$0xff]   ;;  %v6710_v8 = vld [vmem:[%s8467_s5 + $0x50] sm:$0xff]   ;;  %v6712_v10 = vld [vmem:[%s8497_s26 + $0xc0] sm:$0xff]  }
  0x95   : > { %v6811_v16 = vpop.eup %6810  ;;  %5827 = vmatpush3.bf16.msra.mxu1 %v7168_v9  ;;  %v783_v18 = vmul.f32 %v6809_v13, %v7160_v31  ;;  %5903 = vmatpush3.bf16.msra.mxu0 %v6708_v6  ;;  %v6713_v11 = vld [vmem:[%s8497_s26 + $0xc8] sm:$0xff]   ;;  %v6717_v13 = vld [vmem:[%s8497_s26 + $0xd8] sm:$0xff]  }
  0x96   : > { %5828 = vmatprep.subr.bf16.mxu1 %v7172_v14  ;;  %v7177_v17 = vpack.c.bf16 %v782_v15, %v781_v12  ;;  %v784_v19 = vmul.f32 %v6811_v16, %v7162_v32  ;;  %5904 = vmatprep.subr.bf16.mxu0 %v6709_v7  ;;  %v6716_v12 = vld [vmem:[%s8497_s26 + $0xd0] sm:$0xff]   ;;  %v6720_v15 = vld [vmem:[%s8497_s26 + $0x100] sm:$0xff]   ;;  %v6721_v16 = vld [vmem:[%s8497_s26 + $0x108] sm:$0xff]  }
  0x98   : > { %v7183_v20 = vpack.c.bf16 %v784_v19, %v783_v18  ;;  %v6722_v18 = vld [vmem:[%s8497_s26 + $0x110] sm:$0xff]   ;;  %v6723_v19 = vld [vmem:[%s8497_s26 + $0x118] sm:$0xff]  }
  0x99   : > { %5829 = vmatpush3.bf16.msra.mxu1 %v7172_v14  ;;  %5905 = vmatpush3.bf16.msra.mxu0 %v6709_v7 }
  0x9a   : > { %5830 = vmatprep.subr.bf16.mxu1 %v7177_v17  ;;  %5946 = vmatprep.subr.bf16.mxu0 %v6710_v8 }
  0x9d   : > { %5831 = vmatpush3.bf16.msra.mxu1 %v7177_v17 }
  0x9e   : > { %5832 = vmatprep.subr.bf16.mxu1 %v7183_v20 }
  0xa1   : > { %5833 = vmatpush3.bf16.msra.mxu1 %v7183_v20 }
  0xa2   : > { %5842 = vmatprep.subr.bf16.mxu1 %v7168_v9 }
  0xa4   : > { %5835 = vmatmul.mubr.msk.bf16.vlgmr.msra.gmra.mrb[0].mxu1 %vm817_vm1, %v6683_v21 }
  0xa5   : > { %5843 = vmatpush3.bf16.msra.mxu1 %v7168_v9  ;;  %5838 = vmatprep.mubr.msk.bf16.mxu1 %vm817_vm1, %v6684_v22 }
  0xa6   : > { %5844 = vmatprep.subr.bf16.mxu1 %v7172_v14 }
  0xa9   : > { %5845 = vmatpush3.bf16.msra.mxu1 %v7172_v14 }
  0xaa   : > { %5846 = vmatprep.subr.bf16.mxu1 %v7177_v17 }
  0xac   : > { %5839 = vmatmul.mubr.msk.bf16.gmra.mrb[4].mxu1 %vm817_vm1, %v6685_v23 }
  0xad   : > { %5847 = vmatpush3.bf16.msra.mxu1 %v7177_v17  ;;  %5850 = vmatprep.mubr.msk.bf16.mxu1 %vm817_vm1, %v6686_v24 }
  0xae   : > { %5848 = vmatprep.subr.bf16.mxu1 %v7183_v20 }
  0xb1   : > { %5849 = vmatpush3.bf16.msra.mxu1 %v7183_v20 }
  0xb2   : > { %5858 = vmatprep.subr.bf16.mxu1 %v6690_v28 }
  0xb4   : > { %5851 = vmatmul.mubr.msk.bf16.vlgmr.msra.gmra.mrb[8].mxu1 %vm817_vm1, %v6687_v25 }
  0xb5   : > { %5854 = vmatprep.mubr.msk.bf16.mxu1 %vm817_vm1, %v6688_v26  ;;  %5859 = vmatpush3.bf16.msra.mxu1 %v6690_v28 }
  0xb6   : > { %5860 = vmatprep.subr.bf16.mxu1 %v6691_v29 }
  0xb9   : > { %5861 = vmatpush3.bf16.msra.mxu1 %v6691_v29 }
  0xba   : > { %5870 = vmatprep.subr.bf16.mxu1 %v7168_v9 }
  0xbc   : > { %5855 = vmatmul.mubr.msk.bf16.gmra.mrb[12].mxu1 %vm817_vm1, %v6689_v27 }
 0x177   : > { %v7231_v30 = vpop.f32.mrb[0].mxu1 }
 0x178   : > { %v7233_v31 = vpop.f32.mrb[1].mxu1 }
 0x179   : > { %v7235_v32 = vpop.f32.mrb[2].mxu1 }
 0x17a   : > { %v896_v33 = vpack.c.bf16 %v7235_v32, %v7231_v30  ;;  %v7239_v34 = vpop.f32.mrb[3].mxu1  ;;  %v6733_v30 = vld [vmem:[%s8467_s5 + $0x48] sm:$0xff]   ;;  %v6735_v32 = vld [vmem:[%s8467_s5 + $0x60] sm:$0xff]  }
 0x17b   : > { %v895_v35 = vpack.c.bf16 %v7239_v34, %v7233_v31  ;;  %v6732_v31 = vld [vmem:[%s8467_s5 + $0x40] sm:$0xff]  }
 0x17f   : > { %v7243_v36 = vpop.f32.mrb[4].mxu1 }
 0x180   : > { %v7245_v37 = vpop.f32.mrb[5].mxu1 }
 0x181   : > { %v7247_v38 = vpop.f32.mrb[6].mxu1 }
 0x182   : > { %v898_v39 = vpack.c.bf16 %v7247_v38, %v7243_v36  ;;  %v7251_v40 = vpop.f32.mrb[7].mxu1 }
 0x183   : > { %v897_v41 = vpack.c.bf16 %v7251_v40, %v7245_v37 }
 0x187   : > { %v5852_v42 = vpop.f32.mrb[8].mxu1 }
 0x188   : > { %v978_v43 = vpop.f32.mrb[9].mxu1 }
 0x189   : > { %v5853_v44 = vpop.f32.mrb[10].mxu1 }
 0x18a   : > { %v1010_v45 = vpack.c.bf16 %v5853_v44, %v5852_v42  ;;  %v981_v46 = vpop.f32.mrb[11].mxu1 }
 0x18b   : > { %v1009_v47 = vpack.c.bf16 %v981_v46, %v978_v43 }
 0x18d   : > { %5862 = vmatprep.mubr.msk.bf16.mxu1 %vm630_vm0, %v1009_v47 }
 0x18e   : > { %5863 = vmatmul.mubr.msk.bf16.vlgmr.msra.gmra.mrb[16].mxu1 %vm630_vm0, %v1010_v45 }
 0x18f   : > { %v5856_v48 = vpop.f32.mrb[12].mxu1  ;;  %5871 = vmatpush3.bf16.msra.mxu1 %v7168_v9 }
 0x190   : > { %v994_v49 = vpop.f32.mrb[13].mxu1  ;;  %5872 = vmatprep.subr.bf16.mxu1 %v7172_v14 }
 0x191   : > { %v5857_v50 = vpop.f32.mrb[14].mxu1 }
 0x192   : > { %v1012_v51 = vpack.c.bf16 %v5857_v50, %v5856_v48  ;;  %v997_v52 = vpop.f32.mrb[15].mxu1 }
 0x193   : > { %v1011_v53 = vpack.c.bf16 %v997_v52, %v994_v49  ;;  %5873 = vmatpush3.bf16.msra.mxu1 %v7172_v14 }
 0x194   : > { %5874 = vmatprep.subr.bf16.mxu1 %v7177_v17 }
 0x195   : > { %5866 = vmatprep.mubr.msk.bf16.mxu1 %vm630_vm0, %v1011_v53 }
 0x196   : > { %5867 = vmatmul.mubr.msk.bf16.gmra.mrb[20].mxu1 %vm630_vm0, %v1012_v51 }
 0x197   : > { %5875 = vmatpush3.bf16.msra.mxu1 %v7177_v17  ;;  %5878 = vmatprep.mubr.msk.bf16.mxu1 %vm817_vm1, %v6692_v54 }
 0x198   : > { %5876 = vmatprep.subr.bf16.mxu1 %v7183_v20 }
 0x19b   : > { %5877 = vmatpush3.bf16.msra.mxu1 %v7183_v20 }
 0x19c   : > { %5886 = vmatprep.subr.bf16.mxu1 %v7168_v9 }
 0x19e   : > { %5879 = vmatmul.mubr.msk.bf16.vlgmr.msra.gmra.mrb[24].mxu1 %vm817_vm1, %v6693_v55 }
 0x19f   : > { %5887 = vmatpush3.bf16.msra.mxu1 %v7168_v9  ;;  %5882 = vmatprep.mubr.msk.bf16.mxu1 %vm817_vm1, %v6694_v56 }
 0x1a0   : > { %5888 = vmatprep.subr.bf16.mxu1 %v7172_v14 }
 0x1a3   : > { %5889 = vmatpush3.bf16.msra.mxu1 %v7172_v14 }
 0x1a4   : > { %5890 = vmatprep.subr.bf16.mxu1 %v7177_v17 }
 0x1a6   : > { %5883 = vmatmul.mubr.msk.bf16.gmra.mrb[28].mxu1 %vm817_vm1, %v6695_v57 }
 0x1a7   : > { %5891 = vmatpush3.bf16.msra.mxu1 %v7177_v17  ;;  %5894 = vmatprep.mubr.msk.bf16.mxu1 %vm817_vm1, %v6696_v58 }
 0x1a8   : > { %5892 = vmatprep.subr.bf16.mxu1 %v7183_v20 }
 0x1ab   : > { %5893 = vmatpush3.bf16.msra.mxu1 %v7183_v20 }
 0x1ac   : > { %5914 = vmatprep.subr.bf16.mxu1 %v7168_v9 }
 0x1ae   : > { %5895 = vmatmul.mubr.msk.bf16.vlgmr.msra.gmra.mrb[32].mxu1 %vm817_vm1, %v6697_v59  ;;  %v6711_v59 = vld [vmem:[%s8467_s5 + $0x58] sm:$0xff]  }
 0x1af   : > { %5915 = vmatpush3.bf16.msra.mxu1 %v7168_v9  ;;  %5898 = vmatprep.mubr.msk.bf16.mxu1 %vm817_vm1, %v6698_v60 }
 0x1b0   : > { %5916 = vmatprep.subr.bf16.mxu1 %v7172_v14 }
 0x1b3   : > { %5917 = vmatpush3.bf16.msra.mxu1 %v7172_v14 }
 0x1b4   : > { %5918 = vmatprep.subr.bf16.mxu1 %v7177_v17 }
 0x1b6   : > { %5899 = vmatmul.mubr.msk.bf16.gmra.mrb[36].mxu1 %vm817_vm1, %v6699_v61 }
 0x1b7   : > { %5919 = vmatpush3.bf16.msra.mxu1 %v7177_v17  ;;  %5922 = vmatprep.mubr.msk.bf16.mxu1 %vm817_vm1, %v6700_v62 }
 0x1b8   : > { %5920 = vmatprep.subr.bf16.mxu1 %v7183_v20 }
 0x1bb   : > { %5921 = vmatpush3.bf16.msra.mxu1 %v7183_v20 }
 0x1bc   : > { %5930 = vmatprep.subr.bf16.mxu1 %v7168_v9 }
 0x1be   : > { %5923 = vmatmul.mubr.msk.bf16.vlgmr.msra.gmra.mrb[40].mxu1 %vm817_vm1, %v6701_v63 }
 0x1bf   : > { %5931 = vmatpush3.bf16.msra.mxu1 %v7168_v9  ;;  %5926 = vmatprep.mubr.msk.bf16.mxu1 %vm817_vm1, %v6702_v0 }
 0x1c0   : > { %5932 = vmatprep.subr.bf16.mxu1 %v7172_v14 }
 0x1c3   : > { %5933 = vmatpush3.bf16.msra.mxu1 %v7172_v14 }
 0x1c4   : > { %5934 = vmatprep.subr.bf16.mxu1 %v7177_v17 }
 0x1c6   : > { %5927 = vmatmul.mubr.msk.bf16.gmra.mrb[44].mxu1 %vm817_vm1, %v6703_v1 }
 0x1c7   : > { %5935 = vmatpush3.bf16.msra.mxu1 %v7177_v17  ;;  %5938 = vmatprep.mubr.msk.bf16.mxu1 %vm817_vm1, %v6704_v2 }
 0x1c8   : > { %5936 = vmatprep.subr.bf16.mxu1 %v7183_v20 }
 0x1cb   : > { %5937 = vmatpush3.bf16.msra.mxu1 %v7183_v20 }
 0x1cc   : > { %5958 = vmatprep.subr.bf16.mxu1 %v7168_v9 }
 0x1ce   : > { %5939 = vmatmul.mubr.msk.bf16.vlgmr.msra.gmra.mrb[48].mxu1 %vm817_vm1, %v6705_v3 }
 0x1cf   : > { %5942 = vmatprep.mubr.msk.bf16.mxu1 %vm817_vm1, %v6706_v4  ;;  %5959 = vmatpush3.bf16.msra.mxu1 %v7168_v9 }
 0x1d0   : > { %5960 = vmatprep.subr.bf16.mxu1 %v7172_v14 }
 0x1d3   : > { %5961 = vmatpush3.bf16.msra.mxu1 %v7172_v14 }
 0x1d4   : > { %5962 = vmatprep.subr.bf16.mxu1 %v7177_v17 }
 0x1d6   : > { %5943 = vmatmul.mubr.msk.bf16.gmra.mrb[52].mxu1 %vm817_vm1, %v6707_v5 }
 0x1d7   : > { %5963 = vmatpush3.bf16.msra.mxu1 %v7177_v17  ;;  %5966 = vmatprep.mubr.msk.bf16.mxu1 %vm817_vm1, %v6712_v10 }
 0x1d8   : > { %5964 = vmatprep.subr.bf16.mxu1 %v7183_v20 }
 0x1db   : > { %5965 = vmatpush3.bf16.msra.mxu1 %v7183_v20 }
 0x1dc   : > { %6002 = vmatprep.subr.bf16.mxu1 %v7168_v9 }
 0x1de   : > { %5967 = vmatmul.mubr.msk.bf16.vlgmr.msra.gmra.mrb[56].mxu1 %vm817_vm1, %v6713_v11 }
 0x1df   : > { %6003 = vmatpush3.bf16.msra.mxu1 %v7168_v9  ;;  %5970 = vmatprep.mubr.msk.bf16.mxu1 %vm817_vm1, %v6716_v12 }
 0x1e0   : > { %6004 = vmatprep.subr.bf16.mxu1 %v7172_v14 }
 0x1e3   : > { %6005 = vmatpush3.bf16.msra.mxu1 %v7172_v14 }
 0x1e4   : > { %6006 = vmatprep.subr.bf16.mxu1 %v7177_v17 }
 0x1e6   : > { %5971 = vmatmul.mubr.msk.bf16.gmra.mrb[60].mxu1 %vm817_vm1, %v6717_v13 }
 0x1e7   : > { %6007 = vmatpush3.bf16.msra.mxu1 %v7177_v17  ;;  %6010 = vmatprep.mubr.msk.bf16.mxu1 %vm817_vm1, %v6720_v15  ;;  %v2656_v15 = vld [vmem:[%s618_s1] sm:$0x1]  ;;  %s5092_s1 = sshll.u32 %s608_s4, 6 }
 0x1e8   : > { %6008 = vmatprep.subr.bf16.mxu1 %v7183_v20  ;;  %v2657_v5 = vsub.f32 0.0, %v2656_v15 }
 0x1ea   : > { %v2658_v7 = vmul.f32 1.442695, %v2657_v5  ;;  %v6737_v5 = vld [vmem:[%s8469_s7 + $0x10] sm:$0xff]  }
 0x1eb   : > { %6009 = vmatpush3.bf16.msra.mxu1 %v7183_v20 }
 0x1ec   : > { %6812 = vpow2.f32 %v2658_v7 }
 0x1ee   : > { %6011 = vmatmul.mubr.msk.bf16.vlgmr.msra.gmra.mrb[64].mxu1 %vm817_vm1, %v6721_v16 }
 0x1ef   : > { %6014 = vmatprep.mubr.msk.bf16.mxu1 %vm817_vm1, %v6722_v18 }
 0x1f6   : > { %6015 = vmatmul.mubr.msk.bf16.gmra.mrb[68].mxu1 %vm817_vm1, %v6723_v19 }
 0x261   : > { %v7411_v21 = vpop.f32.mrb[16].mxu1 }
 0x262   : > { %v7413_v22 = vpop.f32.mrb[17].mxu1 }
 0x263   : > { %v7415_v23 = vpop.f32.mrb[18].mxu1 }
 0x264   : > { %v7417_v24 = vpop.f32.mrb[19].mxu1 }
 0x269   : > { %v7419_v25 = vpop.f32.mrb[20].mxu1 }
 0x26a   : > { %v7421_v26 = vpop.f32.mrb[21].mxu1 }
 0x26b   : > { %v7423_v27 = vpop.f32.mrb[22].mxu1 }
 0x26c   : > { %v7425_v28 = vpop.f32.mrb[23].mxu1 }
 0x271   : > { %v7427_v29 = vpop.f32.mrb[24].mxu1 }
 0x272   : > { %v7429_v42 = vpop.f32.mrb[25].mxu1 }
 0x273   : > { %v7431_v43 = vpop.f32.mrb[26].mxu1 }
 0x274   : > { %v1214_v44 = vpack.c.bf16 %v7431_v43, %v7427_v29  ;;  %v7435_v45 = vpop.f32.mrb[27].mxu1 }
 0x275   : > { %v1213_v46 = vpack.c.bf16 %v7435_v45, %v7429_v42 }
 0x279   : > { %v7439_v47 = vpop.f32.mrb[28].mxu1 }
 0x27a   : > { %v7441_v48 = vpop.f32.mrb[29].mxu1 }
 0x27b   : > { %v7443_v49 = vpop.f32.mrb[30].mxu1 }
 0x27c   : > { %v7447_v51 = vpop.f32.mrb[31].mxu1 }
 0x27d   : > { %v1215_v52 = vpack.c.bf16 %v7447_v51, %v7441_v48  ;;  %v2781_v51 = vld [vmem:[%s8478_s17 + $0x10] sm:$0xff] }
 0x281   : > { %v5896_v53 = vpop.f32.mrb[32].mxu1 }
 0x282   : > { %v1297_v54 = vpop.f32.mrb[33].mxu1 }
 0x283   : > { %v5897_v55 = vpop.f32.mrb[34].mxu1 }
 0x284   : > { %v1329_v56 = vpack.c.bf16 %v5897_v55, %v5896_v53  ;;  %v1300_v57 = vpop.f32.mrb[35].mxu1 }
 0x285   : > { %v1328_v58 = vpack.c.bf16 %v1300_v57, %v1297_v54 }
 0x287   : > { %5906 = vmatprep.mubr.msk.bf16.mxu0 %vm630_vm0, %v1328_v58 }
 0x288   : > { %5907 = vmatmul.mubr.msk.bf16.vlgmr.msra.gmra.mrb[0].mxu0 %vm630_vm0, %v1329_v56 }
 0x289   : > { %v5900_v60 = vpop.f32.mrb[36].mxu1  ;;  %5947 = vmatpush3.bf16.msra.mxu0 %v6710_v8 }
 0x28a   : > { %v1313_v61 = vpop.f32.mrb[37].mxu1  ;;  %5948 = vmatprep.subr.bf16.mxu0 %v6711_v59 }
 0x28b   : > { %v5901_v62 = vpop.f32.mrb[38].mxu1 }
 0x28c   : > { %v1331_v63 = vpack.c.bf16 %v5901_v62, %v5900_v60  ;;  %v1316_v0 = vpop.f32.mrb[39].mxu1  ;;  %v6714_v62 = vld [vmem:[%s8497_s26 + $0xe0] sm:$0xff]  }
 0x28d   : > { %v1330_v1 = vpack.c.bf16 %v1316_v0, %v1313_v61  ;;  %5949 = vmatpush3.bf16.msra.mxu0 %v6711_v59  ;;  %v6719_v0 = vld [vmem:[%s8497_s26 + $0xf8] sm:$0xff]  }
 0x28e   : > { %5974 = vmatprep.subr.bf16.mxu0 %v7168_v9 }
 0x28f   : > { %5910 = vmatprep.mubr.msk.bf16.mxu0 %vm630_vm0, %v1330_v1 }
 0x290   : > { %5911 = vmatmul.mubr.msk.bf16.gmra.mrb[4].mxu0 %vm630_vm0, %v1331_v63  ;;  %v6718_v63 = vld [vmem:[%s8497_s26 + $0xf0] sm:$0xff]  }
 0x291   : > { %v7459_v2 = vpop.f32.mrb[40].mxu1 }
 0x292   : > { %v7461_v3 = vpop.f32.mrb[41].mxu1 }
 0x293   : > { %v7463_v4 = vpop.f32.mrb[42].mxu1 }
 0x294   : > { %v7467_v6 = vpop.f32.mrb[43].mxu1  ;;  %v8503_v36 = vpack.c.bf16 %v7463_v4, %v7459_v2  ;;  %v2784_v4 = vld [vmem:[%s8478_s17 + $0x28] sm:$0xff] }
 0x295   : > { %v8502_v34 = vpack.c.bf16 %v7467_v6, %v7461_v3  ;;  %v2783_v3 = vld [vmem:[%s8478_s17 + $0x20] sm:$0xff] }
 0x296   : > { %v7706_v6 = vpack.c.bf16 %v2784_v4, %v2783_v3 }
 0x299   : > { %v7471_v8 = vpop.f32.mrb[44].mxu1 }
 0x29a   : > { %v7473_v10 = vpop.f32.mrb[45].mxu1 }
 0x29b   : > { %v7475_v11 = vpop.f32.mrb[46].mxu1 }
 0x29c   : > { %v7479_v13 = vpop.f32.mrb[47].mxu1  ;;  %v8505_v38 = vpack.c.bf16 %v7475_v11, %v7471_v8  ;;  %v2785_v8 = vld [vmem:[%s8478_s17 + $0x30] sm:$0xff] }
 0x29d   : > { %v8504_v37 = vpack.c.bf16 %v7479_v13, %v7473_v10  ;;  %v2786_v10 = vld [vmem:[%s8478_s17 + $0x38] sm:$0xff]  ;;  %v2673_v13 = vld [vmem:[%s8470_s8] sm:$0x1] }
 0x29e   : > { %v7715_v11 = vpack.c.bf16 %v2786_v10, %v2785_v8  ;;  %v2789_v10 = vld [vmem:[%s8479_s18 + $0x10] sm:$0xff] }
 0x2a1   : > { %v5940_v16 = vpop.f32.mrb[48].mxu1 }
 0x2a2   : > { %v1616_v18 = vpop.f32.mrb[49].mxu1 }
 0x2a3   : > { %v5941_v19 = vpop.f32.mrb[50].mxu1 }
 0x2a4   : > { %v1648_v53 = vpack.c.bf16 %v5941_v19, %v5940_v16  ;;  %v1619_v54 = vpop.f32.mrb[51].mxu1 }
 0x2a5   : > { %v1647_v55 = vpack.c.bf16 %v1619_v54, %v1616_v18 }
 0x2a7   : > { %5950 = vmatprep.mubr.msk.bf16.mxu0 %vm630_vm0, %v1647_v55 }
 0x2a8   : > { %5951 = vmatmul.mubr.msk.bf16.vlgmr.msra.gmra.mrb[0].mxu0 %vm630_vm0, %v1648_v53 }
 0x2a9   : > { %v5944_v56 = vpop.f32.mrb[52].mxu1  ;;  %5975 = vmatpush3.bf16.msra.mxu0 %v7168_v9  ;;  %v6724_v9 = vld [vmem:[%s8467_s5 + $0x70] sm:$0xff]  }
 0x2aa   : > { %v1632_v57 = vpop.f32.mrb[53].mxu1  ;;  %5976 = vmatprep.subr.bf16.mxu0 %v7172_v14 }
 0x2ab   : > { %v5945_v58 = vpop.f32.mrb[54].mxu1 }
 0x2ac   : > { %v1650_v59 = vpack.c.bf16 %v5945_v58, %v5944_v56  ;;  %v1635_v60 = vpop.f32.mrb[55].mxu1  ;;  %v6726_v58 = vld [vmem:[%s8467_s5 + $0x80] sm:$0xff]  }
 0x2ad   : > { %v1649_v61 = vpack.c.bf16 %v1635_v60, %v1632_v57  ;;  %5977 = vmatpush3.bf16.msra.mxu0 %v7172_v14  ;;  %v6715_v14 = vld [vmem:[%s8497_s26 + $0xe8] sm:$0xff]  }
 0x2ae   : > { %5978 = vmatprep.subr.bf16.mxu0 %v7177_v17 }
 0x2af   : > { %5954 = vmatprep.mubr.msk.bf16.mxu0 %vm630_vm0, %v1649_v61 }
 0x2b0   : > { %5955 = vmatmul.mubr.msk.bf16.gmra.mrb[4].mxu0 %vm630_vm0, %v1650_v59 }
 0x2b1   : > { %5979 = vmatpush3.bf16.msra.mxu0 %v7177_v17  ;;  %5982 = vmatprep.mubr.msk.bf16.mxu0 %vm817_vm1, %v6714_v62  ;;  %v6725_v17 = vld [vmem:[%s8467_s5 + $0x78] sm:$0xff]  }
 0x2b2   : > { %5980 = vmatprep.subr.bf16.mxu0 %v7183_v20 }
 0x2b5   : > { %5981 = vmatpush3.bf16.msra.mxu0 %v7183_v20  ;;  %v7516_v20 = vpop.f32.mrb[56].mxu1 }
 0x2b6   : > { %5990 = vmatprep.subr.bf16.mxu0 %v6724_v9  ;;  %v7518_v1 = vpop.f32.mrb[57].mxu1 }
 0x2b7   : > { %v7520_v16 = vpop.f32.mrb[58].mxu1 }
 0x2b8   : > { %5983 = vmatmul.mubr.msk.bf16.vlgmr.msra.gmra.mrb[8].mxu0 %vm817_vm1, %v6715_v14  ;;  %v7524_v19 = vpop.f32.mrb[59].mxu1  ;;  %v8507_v40 = vpack.c.bf16 %v7520_v16, %v7516_v20  ;;  %v2741_v16 = vld [vmem:[%s8468_s6] sm:$0x1] }
 0x2b9   : > { %5986 = vmatprep.mubr.msk.bf16.mxu0 %vm817_vm1, %v6718_v63  ;;  %5991 = vmatpush3.bf16.msra.mxu0 %v6724_v9  ;;  %v7528_v54 = vpop.f32.mrb[60].mxu1 }
 0x2ba   : > { %5992 = vmatprep.subr.bf16.mxu0 %v6725_v17  ;;  %v7530_v55 = vpop.f32.mrb[61].mxu1 }
 0x2bb   : > { %v7532_v56 = vpop.f32.mrb[62].mxu1 }
 0x2bc   : > { %v7539_v59 = vpop.f32.mrb[63].mxu1  ;;  %v8509_v29 = vpack.c.bf16 %v7532_v56, %v7528_v54 }
 0x2bd   : > { %5993 = vmatpush3.bf16.msra.mxu0 %v6725_v17 }
 0x2be   : > { %6018 = vmatprep.subr.bf16.mxu0 %v6726_v58 }
 0x2c0   : > { %5987 = vmatmul.mubr.msk.bf16.gmra.mrb[12].mxu0 %vm817_vm1, %v6719_v0 }
 0x2c1   : > { %v7543_v61 = vpop.f32.mrb[64].mxu1 }
 0x2c2   : > { %v2139_v62 = vpop.f32.mrb[65].mxu1 }
 0x2c3   : > { %v7545_v9 = vpop.f32.mrb[66].mxu1 }
 0x2c4   : > { %v2171_v14 = vpack.c.bf16 %v7545_v9, %v7543_v61  ;;  %v2142_v63 = vpop.f32.mrb[67].mxu1  ;;  %v6734_v61 = vld [vmem:[%s8469_s7] sm:$0xff]   ;;  %v6958_v9 = vmov 0.0  }
 0x2c5   : > { %v2170_v17 = vpack.c.bf16 %v2142_v63, %v2139_v62  ;;  %v6813_v62 = vpop.eup %6812  ;;  %6078 = vmatprep.subr.bf16.mxu1 %v6958_v9  ;;  %6086 = vmatprep.mubr.msk.bf16.mxu1 %vm6959_vm2, %v6958_v9 }
 0x2c6   : > { %6079 = vmatpush3.bf16.msra.mxu1 %v6734_v61 }
 0x2c7   : > { %6080 = vmatprep.subr.bf16.mxu1 %v6958_v9 }
 0x2c9   : > { %v7549_v0 = vpop.f32.mrb[68].mxu1 }
 0x2ca   : > { %v2155_v57 = vpop.f32.mrb[69].mxu1 }
 0x2cb   : > { %v7551_v18 = vpop.f32.mrb[70].mxu1 }
 0x2cc   : > { %v2173_v53 = vpack.c.bf16 %v7551_v18, %v7549_v0  ;;  %v2158_v60 = vpop.f32.mrb[71].mxu1  ;;  %v2660_v18 = vadd.f32 1.0, %v6813_v62 }
 0x2cd   : > { %v2172_v12 = vpack.c.bf16 %v2158_v60, %v2155_v57  ;;  %v6736_v57 = vld [vmem:[%s8469_s7 + $0x8] sm:$0xff]   ;;  %v6739_v60 = vld [vmem:[%s8469_s7 + $0x18] sm:$0xff]  }
 0x2ce   : > { %6814 = vrcp.f32 %v2660_v18  ;;  %6081 = vmatpush3.bf16.msra.mxu1 %v6736_v57 }
 0x2cf   : > { %6082 = vmatprep.subr.bf16.mxu1 %v6958_v9 }
 0x2d2   : > { %6083 = vmatpush3.bf16.msra.mxu1 %v6737_v5 }
 0x2d3   : > { %6084 = vmatprep.subr.bf16.mxu1 %v6958_v9 }
 0x2d6   : > { %6085 = vmatpush3.bf16.msra.mxu1 %v6739_v60 }
 0x2d8   : > { %v6815_v7 = vpop.eup %6814 }
 0x2d9   : > { %v2663_v63 = vmul.f32 %v6815_v7, %v2656_v15  ;;  %v6727_v15 = vld [vmem:[%s8467_s5 + $0x88] sm:$0xff]  }
 0x2db   : > { %v2664_v0 = vpack.c.bf16 %v2663_v63, %v2663_v63  ;;  %v6728_v63 = vld [vmem:[%s8467_s5] sm:$0xff]  }
 0x2dd   : > { %6087 = vmatmul.mubr.msk.bf16.vlgmr.msra.gmra.mrb[72].mxu1 %vm817_vm1, %v2664_v0 }
 0x2de   : > { %6106 = vmatprep.mubr.msk.f32.mxu1 %vm6959_vm2, %v6958_v9 }
 0x38b   : > { %v5984_v61 = vpop.f32.mrb[8].mxu0 }
 0x38c   : > { %v1935_v62 = vpop.f32.mrb[9].mxu0 }
 0x38d   : > { %v5985_v18 = vpop.f32.mrb[10].mxu0 }
 0x38e   : > { %v1967_v57 = vpack.c.bf16 %v5985_v18, %v5984_v61  ;;  %v1938_v5 = vpop.f32.mrb[11].mxu0 }
 0x38f   : > { %v1966_v50 = vpack.c.bf16 %v1938_v5, %v1935_v62 }
 0x391   : > { %5994 = vmatprep.mubr.msk.bf16.mxu0 %vm630_vm0, %v1966_v50  ;;  %v6729_v50 = vld [vmem:[%s8467_s5 + $0x8] sm:$0xff]  }
 0x392   : > { %5995 = vmatmul.mubr.msk.bf16.vlgmr.msra.gmra.mrb[0].mxu0 %vm630_vm0, %v1967_v57 }
 0x393   : > { %v5988_v7 = vpop.f32.mrb[12].mxu0  ;;  %6019 = vmatpush3.bf16.msra.mxu0 %v6726_v58  ;;  %v6730_v58 = vld [vmem:[%s8467_s5 + $0x20] sm:$0xff]  }
 0x394   : > { %v1951_v60 = vpop.f32.mrb[13].mxu0  ;;  %6020 = vmatprep.subr.bf16.mxu0 %v6727_v15 }
 0x395   : > { %v5989_v0 = vpop.f32.mrb[14].mxu0 }
 0x396   : > { %v1969_v61 = vpack.c.bf16 %v5989_v0, %v5988_v7  ;;  %v1954_v18 = vpop.f32.mrb[15].mxu0 }
 0x397   : > { %v1968_v62 = vpack.c.bf16 %v1954_v18, %v1951_v60  ;;  %6021 = vmatpush3.bf16.msra.mxu0 %v6727_v15 }
 0x398   : > { %6030 = vmatprep.subr.bf16.mxu0 %v6728_v63 }
 0x399   : > { %5998 = vmatprep.mubr.msk.bf16.mxu0 %vm630_vm0, %v1968_v62 }
 0x39a   : > { %5999 = vmatmul.mubr.msk.bf16.gmra.mrb[4].mxu0 %vm630_vm0, %v1969_v61 }
 0x39b   : > { %6022 = vmatprep.mubr.msk.bf16.mxu0 %vm630_vm0, %v2170_v17 }
 0x3a2   : > { %6023 = vmatmul.mubr.msk.bf16.vlgmr.msra.gmra.mrb[0].mxu0 %vm630_vm0, %v2171_v14  ;;  %v6731_v14 = vld [vmem:[%s8467_s5 + $0x28] sm:$0xff]  }
 0x3a3   : > { %6031 = vmatpush3.bf16.msra.mxu0 %v6728_v63  ;;  %6026 = vmatprep.mubr.msk.bf16.mxu0 %vm630_vm0, %v2172_v12  ;;  %v2743_v12 = vlaneseq }
 0x3a4   : > { %6032 = vmatprep.subr.bf16.mxu0 %v6729_v50 }
 0x3a7   : > { %6033 = vmatpush3.bf16.msra.mxu0 %v6729_v50 }
 0x3a8   : > { %6042 = vmatprep.subr.bf16.mxu0 %v6730_v58 }
 0x3aa   : > { %6027 = vmatmul.mubr.msk.bf16.gmra.mrb[4].mxu0 %vm630_vm0, %v2173_v53 }
 0x3ab   : > { %6034 = vmatprep.mubr.msk.bf16.mxu0 %vm630_vm0, %v895_v35  ;;  %v6738_v35 = vld [vmem:[%s8467_s5 + $0x68] sm:$0xff]  }
 0x3b0   : > { %v2735_v42 = vpop.f32.mrb[72].mxu1 }
 0x3b1   : > { %v6088_v43 = vpop.f32.mrb[73].mxu1  ;;  %v2736_v20 = vadd.f32 %v2735_v42, %v2673_v13 }
 0x3b2   : > { %6035 = vmatmul.mubr.msk.bf16.vlgmr.msra.gmra.mrb[0].mxu0 %vm630_vm0, %v896_v33  ;;  %v8501_v33 = vpack.c.bf16 %v7443_v49, %v7439_v47  ;;  %v2780_v47 = vld [vmem:[%s8478_s17 + $0x8] sm:$0xff]  ;;  %v6960_v49 = vmov 0.0|0.0  }
 0x3b3   : > { %6038 = vmatprep.mubr.msk.bf16.mxu0 %vm630_vm0, %v897_v41  ;;  %6043 = vmatpush3.bf16.msra.mxu0 %v6730_v58  ;;  %v8508_v41 = vpack.c.bf16 %v7539_v59, %v7530_v55 }
 0x3b4   : > { %6044 = vmatprep.subr.bf16.mxu0 %v6731_v14  ;;  %6450 = vmatprep.subr.bf16.mxu1 %v6960_v49 }
 0x3b7   : > { %6045 = vmatpush3.bf16.msra.mxu0 %v6731_v14 }
 0x3b8   : > { %6054 = vmatprep.subr.bf16.mxu0 %v6732_v31 }
 0x3ba   : > { %6039 = vmatmul.mubr.msk.bf16.gmra.mrb[4].mxu0 %vm630_vm0, %v898_v39  ;;  %v8506_v39 = vpack.c.bf16 %v7524_v19, %v7518_v1  ;;  %v2744_v1 = vshrl.u32 %v2743_v12, 7  ;;  %v2742_v19 = vadd.f32 %v2741_v16, %v2736_v20  ;;  %v2790_v12 = vld [vmem:[%s8479_s18 + $0x18] sm:$0xff] }
 0x3bb   : > { %6046 = vmatprep.mubr.msk.bf16.mxu0 %vm630_vm0, %v1213_v46  ;;  %v2779_v46 = vld [vmem:[%s8478_s17] sm:$0xff]  ;;  %v6466_v13 = vpack.c.bf16 %v2790_v12, %v2789_v10 }
 0x3bc   : > { %v7685_v48 = vpack.c.bf16 %v2780_v47, %v2779_v46  ;;  %v7726_v53 = vsub.s32 0, %v2744_v1  ;;  %v5329_v10 = vld [vmem:[%s8472_s10] ss:$0 sm:$0xff] }
 0x3be   : > { %6452 = vmatpush3.bf16.msra.mxu1 %v7685_v48  ;;  %v2746_v54 = vrot.slane %v2742_v19, %v7726_v53 }
 0x3bf   : > { %6453 = vmatprep.subr.bf16.mxu1 %v6960_v49 }
 0x3c2   : > { %6047 = vmatmul.mubr.msk.bf16.vlgmr.msra.gmra.mrb[0].mxu0 %vm630_vm0, %v1214_v44  ;;  %v2738_v44 = vpop.f32.mrb[74].mxu1 }
 0x3c3   : > { %6050 = vmatprep.mubr.msk.bf16.mxu0 %vm630_vm0, %v1215_v52  ;;  %6055 = vmatpush3.bf16.msra.mxu0 %v6732_v31  ;;  %v6089_v45 = vpop.f32.mrb[75].mxu1  ;;  %v2782_v52 = vld [vmem:[%s8478_s17 + $0x18] sm:$0xff] }
 0x3c4   : > { %6056 = vmatprep.subr.bf16.mxu0 %v6733_v30  ;;  %v7696_v2 = vpack.c.bf16 %v2782_v52, %v2781_v51  ;;  %v2787_v51 = vld [vmem:[%s8479_s18] sm:$0xff]  ;;  %v2788_v52 = vld [vmem:[%s8479_s18 + $0x8] sm:$0xff] }
 0x3c5   : > { %v7766_v4 = vpack.c.bf16 %v2788_v52, %v2787_v51  ;;  %v5328_v51 = vld [vmem:[%s8471_s9] ss:$0 sm:$0xff] }
 0x3c6   : > { %6455 = vmatpush3.bf16.msra.mxu1 %v7696_v2 }
 0x3c7   : > { %6057 = vmatpush3.bf16.msra.mxu0 %v6733_v30  ;;  %6456 = vmatprep.subr.bf16.mxu1 %v6960_v49 }
 0x3c8   : > { %6066 = vmatprep.subr.bf16.mxu0 %v6735_v32 }
 0x3ca   : > { %6051 = vmatmul.mubr.msk.bf16.gmra.mrb[4].mxu0 %vm630_vm0, %v8501_v33  ;;  %6458 = vmatpush3.bf16.msra.mxu1 %v7706_v6 }
 0x3cb   : > { %6058 = vmatprep.mubr.msk.bf16.mxu0 %vm630_vm0, %v8502_v34  ;;  %6459 = vmatprep.subr.bf16.mxu1 %v6960_v49 }
 0x3ce   : > { %6461 = vmatpush3.bf16.msra.mxu1 %v7715_v11 }
 0x3cf   : > { %6462 = vmatprep.subr.bf16.mxu1 %v6960_v49 }
 0x3d2   : > { %6059 = vmatmul.mubr.msk.bf16.vlgmr.msra.gmra.mrb[0].mxu0 %vm630_vm0, %v8503_v36 }
 0x3d3   : > { %6062 = vmatprep.mubr.msk.bf16.mxu0 %vm630_vm0, %v8504_v37  ;;  %6067 = vmatpush3.bf16.msra.mxu0 %v6735_v32 }
 0x3d4   : > { %6068 = vmatprep.subr.bf16.mxu0 %v6738_v35 }
 0x3d7   : > { %6069 = vmatpush3.bf16.msra.mxu0 %v6738_v35 }
 0x3da   : > { %6063 = vmatmul.mubr.msk.bf16.gmra.mrb[4].mxu0 %vm630_vm0, %v8505_v38 }
 0x3db   : > { %6070 = vmatprep.mubr.msk.bf16.mxu0 %vm630_vm0, %v8506_v39 }
 0x3e2   : > { %6071 = vmatmul.mubr.msk.bf16.vlgmr.msra.gmra.mrb[0].mxu0 %vm630_vm0, %v8507_v40 }
 0x3e3   : > { %6074 = vmatprep.mubr.msk.bf16.mxu0 %vm630_vm0, %v8508_v41 }
 0x3ea   : > { %6075 = vmatmul.mubr.msk.bf16.gmra.mrb[4].mxu0 %vm630_vm0, %v8509_v29 }
 0x4b5   : > { %v6072_v55 = vpop.f32.mrb[0].mxu0 }
 0x4b6   : > { %v6486_v56 = vadd.f32 %v6072_v55, %v7411_v21  ;;  %v2593_v59 = vpop.f32.mrb[1].mxu0 }
 0x4b7   : > { %v6487_v17 = vadd.f32 %v2593_v59, %v7413_v22  ;;  %v6073_v57 = vpop.f32.mrb[2].mxu0 }
 0x4b8   : > { %v7731_v5 = vadd.f32 %v6486_v56, %v2746_v54  ;;  %v6488_v15 = vadd.f32 %v6073_v57, %v7415_v23  ;;  %v2596_v7 = vpop.f32.mrb[3].mxu0 }
 0x4b9   : > { %v7734_v60 = vadd.f32 %v6487_v17, %v2746_v54  ;;  %v6489_v63 = vadd.f32 %v2596_v7, %v7417_v24 }
 0x4ba   : > { %v7737_v0 = vadd.f32 %v6488_v15, %v2746_v54  ;;  %v2760_v58 = vsel %vm817_vm1, %v7731_v5, 0.0 }
 0x4bb   : > { %v7739_v61 = vadd.f32 %v6489_v63, %v2746_v54  ;;  %v2757_v21 = vsel %vm817_vm1, %v7734_v60, 0.0 }
 0x4bc   : > { %v2762_v34 = vsel %vm817_vm1, %v7737_v0, 0.0 }
 0x4bd   : > { %v2758_v22 = vsel %vm817_vm1, %v7739_v61, 0.0  ;;  %v6076_v18 = vpop.f32.mrb[4].mxu0 }
 0x4be   : > { %v2759_v62 = vadd.f32 %v2758_v22, %v2757_v21  ;;  %v6490_v50 = vadd.f32 %v6076_v18, %v7419_v25  ;;  %v2609_v23 = vpop.f32.mrb[5].mxu0 }
 0x4bf   : > { %v6491_v24 = vadd.f32 %v2609_v23, %v7421_v26  ;;  %v6077_v14 = vpop.f32.mrb[6].mxu0 }
 0x4c0   : > { %v2761_v31 = vadd.f32 %v2760_v58, %v2759_v62  ;;  %v7749_v30 = vadd.f32 %v6490_v50, %v2746_v54  ;;  %v6492_v32 = vadd.f32 %v6077_v14, %v7423_v27  ;;  %v2612_v33 = vpop.f32.mrb[7].mxu0 }
 0x4c1   : > { %v2751_v35 = vadd.f32 %v6491_v24, %v2746_v54  ;;  %v6493_v36 = vadd.f32 %v2612_v33, %v7425_v28 }
 0x4c2   : > { %v2763_v25 = vadd.f32 %v2762_v34, %v2761_v31  ;;  %v2754_v37 = vadd.f32 %v6492_v32, %v2746_v54  ;;  %v2768_v29 = vsel %vm817_vm1, %v7749_v30, 0.0 }
 0x4c3   : > { %v2764_v38 = vsel %vm817_vm1, %v2751_v35, 0.0  ;;  %v2752_v39 = vadd.f32 %v6493_v36, %v2746_v54 }
 0x4c4   : > { %v2765_v40 = vadd.f32 %v2764_v38, %v2763_v25  ;;  %v2770_v42 = vsel %vm817_vm1, %v2754_v37, 0.0 }
 0x4c5   : > { %v2766_v26 = vsel %vm817_vm1, %v2752_v39, 0.0 }
 0x4c6   : > { %v2767_v41 = vadd.f32 %v2766_v26, %v2765_v40 }
 0x4c8   : > { %v2769_v27 = vadd.f32 %v2768_v29, %v2767_v41 }
 0x4ca   : > { %v2771_v43 = vadd.f32 %v2770_v42, %v2769_v27  ;;  %v6850_v27 = vld [vmem:[%s8497_s26] sm:$0xff]  }
 0x4cb   : > { %v6740_v42 = vld [vmem:[%s8473_s11 + $0x20] sm:$0xff]  }
 0x4cc   : > { %v2772_v44 = vrot.slane %v2771_v43, 4  ;;  %6182 = vmatprep.subr.bf16.mxu0 %v6740_v42 }
 0x4cd   : > { %6183 = vmatpush3.bf16.msra.mxu0 %v6740_v42 }
 0x4ce   : > { %v2773_v45 = vadd.f32 %v2772_v44, %v2771_v43  ;;  %v6743_v43 = vld [vmem:[%s8473_s11 + $0x38] sm:$0xff]  }
 0x4d0   : > { %v2774_v46 = vrot.slane %v2773_v45, 2 }
 0x4d2   : > { %v2775_v28 = vadd.f32 %v2774_v46, %v2773_v45 }
 0x4d4   : > { %v2776_v47 = vrot.slane %v2775_v28, 1 }
 0x4d6   : > { %v2777_v3 = vadd.f32 %v2776_v47, %v2775_v28 }
 0x4d8   : > { %v2778_v8 = vmul.f32 0.0078125, %v2777_v3 }
 0x4da   : > { %6107 = vmatmul.mubr.msk.f32.vlgmr.msra.gmra.mrb[76].mxu1 %vm817_vm1, %v2778_v8 }
 0x4db   : > { %6464 = vmatpush3.bf16.msra.mxu1 %v7766_v4  ;;  %6117 = vmatprep.mubr.msk.f32.mxu1 %vm6959_vm2, %v6958_v9 }
 0x4dc   : > { %6465 = vmatprep.subr.bf16.mxu1 %v6960_v49 }
 0x4df   : > { %6467 = vmatpush3.bf16.msra.mxu1 %v6466_v13 }
 0x4e0   : > { %6468 = vmatprep.subr.bf16.mxu1 %v6960_v49 }
 0x5ad   : > { %v2860_v20 = vpop.f32.mrb[76].mxu1 }
 0x5ae   : > { %v6108_v1 = vpop.f32.mrb[77].mxu1  ;;  %6118 = vmatmul.mubr.msk.f32.vlgmr.msra.gmra.mrb[78].mxu1 %vm630_vm0, %v2860_v20 }
 0x5af   : > { %6470 = vmatpush3.bf16.msra.mxu1 %v7685_v48  ;;  %6136 = vmatprep.mubr.msk.f32.mxu1 %vm6959_vm2, %v6958_v9 }
 0x5b0   : > { %6471 = vmatprep.subr.bf16.mxu1 %v6960_v49 }
 0x5b3   : > { %6473 = vmatpush3.bf16.msra.mxu1 %v7696_v2 }
 0x5b4   : > { %6474 = vmatprep.subr.bf16.mxu1 %v6960_v49 }
 0x5b7   : > { %6476 = vmatpush3.bf16.msra.mxu1 %v7706_v6 }
 0x5b8   : > { %6477 = vmatprep.subr.bf16.mxu1 %v6960_v49 }
 0x5bb   : > { %6479 = vmatpush3.bf16.msra.mxu1 %v7715_v11 }
 0x5bc   : > { %6480 = vmatprep.subr.bf16.mxu1 %v6960_v49 }
 0x681   : > { %v2933_v16 = vpop.f32.mrb[78].mxu1 }
 0x682   : > { %v2940_v48 = vrot.slane %v2933_v16, %v7726_v53  ;;  %v6119_v19 = vpop.f32.mrb[79].mxu1 }
 0x684   : > { %v7793_v54 = vsub.f32 %v7734_v60, %v2940_v48  ;;  %v7796_v55 = vsub.f32 %v7739_v61, %v2940_v48  ;;  %v7799_v2 = vsub.f32 %v7731_v5, %v2940_v48  ;;  %v7802_v6 = vsub.f32 %v7737_v0, %v2940_v48 }
 0x685   : > { %v7804_v56 = vsub.f32 %v2751_v35, %v2940_v48  ;;  %v7812_v57 = vsub.f32 %v2752_v39, %v2940_v48  ;;  %v2947_v63 = vsub.f32 %v7749_v30, %v2940_v48  ;;  %v2948_v22 = vsub.f32 %v2754_v37, %v2940_v48 }
 0x686   : > { %v2949_v11 = vmul.f32 %v7793_v54, %v7793_v54  ;;  %v2950_v59 = vmul.f32 %v7796_v55, %v7796_v55  ;;  %v2951_v17 = vmul.f32 %v7799_v2, %v7799_v2  ;;  %v2952_v5 = vmul.f32 %v7802_v6, %v7802_v6 }
 0x687   : > { %v2953_v0 = vmul.f32 %v7804_v56, %v7804_v56  ;;  %v2954_v18 = vmul.f32 %v7812_v57, %v7812_v57  ;;  %v2955_v23 = vmul.f32 %v2947_v63, %v2947_v63  ;;  %v2956_v14 = vmul.f32 %v2948_v22, %v2948_v22 }
 0x688   : > { %v2957_v15 = vsel %vm817_vm1, %v2949_v11, 0.0  ;;  %v2958_v7 = vsel %vm817_vm1, %v2950_v59, 0.0  ;;  %v2960_v61 = vsel %vm817_vm1, %v2951_v17, 0.0  ;;  %v2962_v62 = vsel %vm817_vm1, %v2952_v5, 0.0 }
 0x689   : > { %v2959_v60 = vadd.f32 %v2958_v7, %v2957_v15  ;;  %v2964_v58 = vsel %vm817_vm1, %v2953_v0, 0.0  ;;  %v2966_v31 = vsel %vm817_vm1, %v2954_v18, 0.0  ;;  %v2968_v32 = vsel %vm817_vm1, %v2955_v23, 0.0 }
 0x68a   : > { %v2970_v34 = vsel %vm817_vm1, %v2956_v14, 0.0 }
 0x68b   : > { %v2961_v21 = vadd.f32 %v2960_v61, %v2959_v60 }
 0x68d   : > { %v2963_v50 = vadd.f32 %v2962_v62, %v2961_v21 }
 0x68f   : > { %v2965_v24 = vadd.f32 %v2964_v58, %v2963_v50 }
 0x691   : > { %v2967_v30 = vadd.f32 %v2966_v31, %v2965_v24 }
 0x693   : > { %v2969_v33 = vadd.f32 %v2968_v32, %v2967_v30 }
 0x695   : > { %v2971_v35 = vadd.f32 %v2970_v34, %v2969_v33 }
 0x697   : > { %v2972_v36 = vrot.slane %v2971_v35, 4 }
 0x699   : > { %v2973_v25 = vadd.f32 %v2972_v36, %v2971_v35 }
 0x69b   : > { %v2974_v37 = vrot.slane %v2973_v25, 2 }
 0x69d   : > { %v2975_v38 = vadd.f32 %v2974_v37, %v2973_v25 }
 0x69f   : > { %v2976_v39 = vrot.slane %v2975_v38, 1 }
 0x6a1   : > { %v2977_v40 = vadd.f32 %v2976_v39, %v2975_v38 }
 0x6a3   : > { %v2978_v26 = vmul.f32 0.0078125, %v2977_v40 }
 0x6a5   : > { %6137 = vmatmul.mubr.msk.f32.vlgmr.msra.gmra.mrb[80].mxu1 %vm817_vm1, %v2978_v26 }
 0x6a6   : > { %6482 = vmatpush3.bf16.msra.mxu1 %v7766_v4  ;;  %6147 = vmatprep.mubr.msk.f32.mxu1 %vm6959_vm2, %v6958_v9  ;;  %v6741_v9 = vld [vmem:[%s8473_s11 + $0x28] sm:$0xff]  }
 0x6a7   : > { %6483 = vmatprep.subr.bf16.mxu1 %v6960_v49  ;;  %6184 = vmatprep.subr.bf16.mxu0 %v6741_v9  ;;  %v6742_v49 = vld [vmem:[%s8473_s11 + $0x30] sm:$0xff]  }
 0x6a8   : > { %6185 = vmatpush3.bf16.msra.mxu0 %v6741_v9 }
 0x6a9   : > { %6186 = vmatprep.subr.bf16.mxu0 %v6742_v49 }
 0x6aa   : > { %6485 = vmatpush3.bf16.msra.mxu1 %v6466_v13 }
 0x6ac   : > { %6187 = vmatpush3.bf16.msra.mxu0 %v6742_v49 }
 0x6ad   : > { %6188 = vmatprep.subr.bf16.mxu0 %v6743_v43 }
 0x6b0   : > { %6189 = vmatpush3.bf16.msra.mxu0 %v6743_v43 }
 0x778   : > { %v3048_v41 = vpop.f32.mrb[80].mxu1 }
 0x779   : > { %v6138_v29 = vpop.f32.mrb[81].mxu1  ;;  %6148 = vmatmul.mubr.msk.f32.vlgmr.msra.gmra.mrb[82].mxu1 %vm630_vm0, %v3048_v41 }
 0x77a   : > { %6158 = vmatprep.mubr.msk.bf16.mxu1 %vm817_vm1, %v6850_v27 }
 0x84c   : > { %v3121_v44 = vpop.f32.mrb[82].mxu1 }
 0x84d   : > { %v3122_v45 = vadd.f32 1e-05, %v3121_v44  ;;  %v6149_v46 = vpop.f32.mrb[83].mxu1 }
 0x84f   : > { %6816 = vrsqrt.f32 %v3122_v45 }
 0x859   : > { %v6817_v28 = vpop.eup %6816 }
 0x85a   : > { %v3129_v47 = vrot.slane %v6817_v28, %v7726_v53 }
 0x85c   : > { %v3130_v52 = vmul.f32 %v3129_v47, %v7793_v54  ;;  %v3131_v3 = vmul.f32 %v3129_v47, %v7796_v55  ;;  %v3132_v4 = vmul.f32 %v3129_v47, %v7799_v2  ;;  %v3133_v8 = vmul.f32 %v3129_v47, %v7802_v6 }
 0x85d   : > { %v3134_v12 = vmul.f32 %v3129_v47, %v7804_v56  ;;  %v3135_v53 = vmul.f32 %v3129_v47, %v7812_v57  ;;  %v3136_v13 = vmul.f32 %v3129_v47, %v2947_v63  ;;  %v3137_v20 = vmul.f32 %v3129_v47, %v2948_v22 }
 0x85e   : > { %v3144_v1 = vmul.f32 %v5328_v51, %v3130_v52  ;;  %v3145_v16 = vmul.f32 %v5328_v51, %v3131_v3  ;;  %v3146_v48 = vmul.f32 %v5328_v51, %v3132_v4  ;;  %v3147_v19 = vmul.f32 %v5328_v51, %v3133_v8 }
 0x85f   : > { %v3148_v54 = vmul.f32 %v5328_v51, %v3134_v12  ;;  %v3149_v55 = vmul.f32 %v5328_v51, %v3135_v53  ;;  %v3150_v11 = vmul.f32 %v5328_v51, %v3136_v13  ;;  %v3151_v2 = vmul.f32 %v5328_v51, %v3137_v20 }
 0x860   : > { %v3158_v59 = vadd.f32 %v5329_v10, %v3144_v1  ;;  %v3159_v6 = vadd.f32 %v5329_v10, %v3145_v16  ;;  %v3160_v17 = vadd.f32 %v5329_v10, %v3146_v48  ;;  %v3161_v5 = vadd.f32 %v5329_v10, %v3147_v19 }
 0x861   : > { %v7864_v15 = vadd.f32 %v5329_v10, %v3148_v54  ;;  %v7866_v7 = vadd.f32 %v5329_v10, %v3149_v55  ;;  %v7868_v56 = vadd.f32 %v5329_v10, %v3150_v11  ;;  %v7870_v57 = vadd.f32 %v5329_v10, %v3151_v2  ;;  %v6851_v54 = vld [vmem:[%s8497_s26 + $0x8] sm:$0xff]   ;;  %v6852_v55 = vld [vmem:[%s8497_s26 + $0x10] sm:$0xff]   ;;  %v6853_v11 = vld [vmem:[%s8497_s26 + $0x18] sm:$0xff]  }
 0x862   : > { %v3166_v60 = vsub.f32 0.0, %v3158_v59  ;;  %v3167_v63 = vsub.f32 0.0, %v3159_v6  ;;  %v3168_v0 = vsub.f32 0.0, %v3160_v17  ;;  %v3169_v61 = vsub.f32 0.0, %v3161_v5  ;;  %v6854_v2 = vld [vmem:[%s8497_s26 + $0x20] sm:$0xff]  }
 0x863   : > { %v3170_v21 = vsub.f32 0.0, %v7864_v15  ;;  %v3171_v22 = vsub.f32 0.0, %v7866_v7  ;;  %v3172_v18 = vsub.f32 0.0, %v7868_v56  ;;  %v3173_v58 = vsub.f32 0.0, %v7870_v57 }
 0x864   : > { %v3174_v62 = vmul.f32 1.442695, %v3166_v60  ;;  %v3176_v50 = vmul.f32 1.442695, %v3167_v63  ;;  %v3178_v23 = vmul.f32 1.442695, %v3168_v0 }
 0x865   : > { %v3180_v24 = vmul.f32 1.442695, %v3169_v61  ;;  %v3182_v14 = vmul.f32 1.442695, %v3170_v21  ;;  %v3184_v31 = vmul.f32 1.442695, %v3171_v22 }
 0x866   : > { %6818 = vpow2.f32 %v3174_v62  ;;  %v3186_v30 = vmul.f32 1.442695, %v3172_v18  ;;  %v3188_v32 = vmul.f32 1.442695, %v3173_v58  ;;  %v6863_v60 = vld [vmem:[%s8497_s26 + $0x88] sm:$0xff]   ;;  %v6864_v63 = vld [vmem:[%s8497_s26 + $0x90] sm:$0xff]  }
 0x867   : > { %6820 = vpow2.f32 %v3176_v50  ;;  %v6865_v0 = vld [vmem:[%s8497_s26 + $0x98] sm:$0xff]   ;;  %v6866_v61 = vld [vmem:[%s8497_s26 + $0xa0] sm:$0xff]   ;;  %v6867_v21 = vld [vmem:[%s8497_s26 + $0xa8] sm:$0xff]  }
 0x868   : > { %6822 = vpow2.f32 %v3178_v23  ;;  %v6868_v22 = vld [vmem:[%s8497_s26 + $0xb0] sm:$0xff]   ;;  %v6869_v18 = vld [vmem:[%s8497_s26 + $0xb8] sm:$0xff]   ;;  %v6870_v62 = vld [vmem:[%s8497_s26 + $0xc0] sm:$0xff]  }
 0x869   : > { %6824 = vpow2.f32 %v3180_v24  ;;  %v6871_v50 = vld [vmem:[%s8497_s26 + $0xc8] sm:$0xff]   ;;  %v6872_v23 = vld [vmem:[%s8497_s26 + $0xd0] sm:$0xff]   ;;  %v6873_v58 = vld [vmem:[%s8497_s26 + $0xd8] sm:$0xff]  }
 0x86a   : > { %6826 = vpow2.f32 %v3182_v14  ;;  %v6874_v24 = vld [vmem:[%s8497_s26 + $0x100] sm:$0xff]   ;;  %v6875_v14 = vld [vmem:[%s8497_s26 + $0x108] sm:$0xff]  }
 0x86b   : > { %6828 = vpow2.f32 %v3184_v31  ;;  %v6876_v31 = vld [vmem:[%s8497_s26 + $0x110] sm:$0xff]  }
 0x86c   : > { %6830 = vpow2.f32 %v3186_v30  ;;  %v6877_v30 = vld [vmem:[%s8497_s26 + $0x118] sm:$0xff]  }
 0x86d   : > { %6832 = vpow2.f32 %v3188_v32 }
 0x870   : > { %v6819_v33 = vpop.eup %6818 }
 0x871   : > { %v6821_v34 = vpop.eup %6820  ;;  %v3190_v35 = vadd.f32 1.0, %v6819_v33 }
 0x872   : > { %v6823_v36 = vpop.eup %6822  ;;  %v3191_v25 = vadd.f32 1.0, %v6821_v34 }
 0x873   : > { %v6825_v37 = vpop.eup %6824  ;;  %v3192_v38 = vadd.f32 1.0, %v6823_v36  ;;  %6834 = vrcp.f32 %v3190_v35 }
 0x874   : > { %v6827_v39 = vpop.eup %6826  ;;  %v3193_v40 = vadd.f32 1.0, %v6825_v37  ;;  %6836 = vrcp.f32 %v3191_v25 }
 0x875   : > { %v6829_v26 = vpop.eup %6828  ;;  %v3194_v41 = vadd.f32 1.0, %v6827_v39  ;;  %6838 = vrcp.f32 %v3192_v38 }
 0x876   : > { %v6831_v29 = vpop.eup %6830  ;;  %v3195_v27 = vadd.f32 1.0, %v6829_v26  ;;  %6840 = vrcp.f32 %v3193_v40 }
 0x877   : > { %v6833_v42 = vpop.eup %6832  ;;  %v3196_v9 = vadd.f32 1.0, %v6831_v29  ;;  %6842 = vrcp.f32 %v3194_v41 }
 0x878   : > { %v3197_v49 = vadd.f32 1.0, %v6833_v42  ;;  %6844 = vrcp.f32 %v3195_v27 }
 0x879   : > { %6846 = vrcp.f32 %v3196_v9 }
 0x87a   : > { %6848 = vrcp.f32 %v3197_v49 }
 0x87d   : > { %v6835_v43 = vpop.eup %6834 }
 0x87e   : > { %v6837_v44 = vpop.eup %6836  ;;  %v3214_v45 = vmul.f32 %v6835_v43, %v3158_v59  ;;  %v6855_v59 = vld [vmem:[%s8497_s26 + $0x28] sm:$0xff]  }
 0x87f   : > { %v6839_v46 = vpop.eup %6838  ;;  %v3215_v28 = vmul.f32 %v6837_v44, %v3159_v6  ;;  %v6856_v6 = vld [vmem:[%s8497_s26 + $0x30] sm:$0xff]  }
 0x880   : > { %v6841_v47 = vpop.eup %6840  ;;  %v3216_v51 = vmul.f32 %v6839_v46, %v3160_v17  ;;  %v6857_v17 = vld [vmem:[%s8497_s26 + $0x38] sm:$0xff]  }
 0x881   : > { %v6843_v52 = vpop.eup %6842  ;;  %v3217_v3 = vmul.f32 %v6841_v47, %v3161_v5  ;;  %v7876_v4 = vpack.c.bf16 %v3215_v28, %v3214_v45  ;;  %v6858_v5 = vld [vmem:[%s8497_s26 + $0x40] sm:$0xff]  }
 0x882   : > { %v6845_v8 = vpop.eup %6844  ;;  %v3218_v12 = vmul.f32 %v6843_v52, %v7864_v15  ;;  %v6859_v15 = vld [vmem:[%s8497_s26 + $0x48] sm:$0xff]   ;;  %v6878_v52 = vld [vmem:[%s8497_s26 + $0x60] sm:$0xff]  }
 0x883   : > { %v6847_v10 = vpop.eup %6846  ;;  %v3219_v53 = vmul.f32 %v6845_v8, %v7866_v7  ;;  %v7880_v13 = vpack.c.bf16 %v3217_v3, %v3216_v51  ;;  %6150 = vmatprep.subr.bf16.mxu1 %v7876_v4  ;;  %6214 = vmatprep.subr.bf16.mxu0 %v7876_v4  ;;  %v6860_v7 = vld [vmem:[%s8497_s26 + $0x50] sm:$0xff]  }
 0x884   : > { %v6849_v20 = vpop.eup %6848  ;;  %6151 = vmatpush3.bf16.msra.mxu1 %v7876_v4  ;;  %v3220_v1 = vmul.f32 %v6847_v10, %v7868_v56  ;;  %v6861_v56 = vld [vmem:[%s8497_s26 + $0x58] sm:$0xff]   ;;  %v6744_v10 = vld [vmem:[%s8473_s11 + $0x60] sm:$0xff]  }
 0x885   : > { %6152 = vmatprep.subr.bf16.mxu1 %v7880_v13  ;;  %v3221_v16 = vmul.f32 %v6849_v20, %v7870_v57  ;;  %v7888_v48 = vpack.c.bf16 %v3219_v53, %v3218_v12  ;;  %v6862_v57 = vld [vmem:[%s8497_s26 + $0x80] sm:$0xff]  }
 0x887   : > { %v7892_v19 = vpack.c.bf16 %v3221_v16, %v3220_v1  ;;  %v6745_v16 = vld [vmem:[%s8473_s11 + $0x68] sm:$0xff]  }
 0x888   : > { %6153 = vmatpush3.bf16.msra.mxu1 %v7880_v13 }
 0x889   : > { %6154 = vmatprep.subr.bf16.mxu1 %v7888_v48 }
 0x88c   : > { %6155 = vmatpush3.bf16.msra.mxu1 %v7888_v48 }
 0x88d   : > { %6156 = vmatprep.subr.bf16.mxu1 %v7892_v19 }
 0x890   : > { %6157 = vmatpush3.bf16.msra.mxu1 %v7892_v19 }
 0x891   : > { %6166 = vmatprep.subr.bf16.mxu1 %v7876_v4 }
 0x893   : > { %6159 = vmatmul.mubr.msk.bf16.vlgmr.msra.gmra.mrb[84].mxu1 %vm817_vm1, %v6851_v54  ;;  %v6879_v54 = vld [vmem:[%s8497_s26 + $0x68] sm:$0xff]  }
 0x894   : > { %6167 = vmatpush3.bf16.msra.mxu1 %v7876_v4  ;;  %6162 = vmatprep.mubr.msk.bf16.mxu1 %vm817_vm1, %v6852_v55  ;;  %v6880_v55 = vld [vmem:[%s8497_s26 + $0x70] sm:$0xff]  }
 0x895   : > { %6168 = vmatprep.subr.bf16.mxu1 %v7880_v13 }
 0x898   : > { %6169 = vmatpush3.bf16.msra.mxu1 %v7880_v13 }
 0x899   : > { %6170 = vmatprep.subr.bf16.mxu1 %v7888_v48 }
 0x89b   : > { %6163 = vmatmul.mubr.msk.bf16.gmra.mrb[88].mxu1 %vm817_vm1, %v6853_v11 }
 0x89c   : > { %6171 = vmatpush3.bf16.msra.mxu1 %v7888_v48  ;;  %6174 = vmatprep.mubr.msk.bf16.mxu1 %vm817_vm1, %v6854_v2 }
 0x89d   : > { %6172 = vmatprep.subr.bf16.mxu1 %v7892_v19 }
 0x8a0   : > { %6173 = vmatpush3.bf16.msra.mxu1 %v7892_v19 }
 0x8a1   : > { %6198 = vmatprep.subr.bf16.mxu1 %v7876_v4 }
 0x8a3   : > { %6175 = vmatmul.mubr.msk.bf16.vlgmr.msra.gmra.mrb[92].mxu1 %vm817_vm1, %v6855_v59  ;;  %v6746_v59 = vld [vmem:[%s8473_s11 + $0x70] sm:$0xff]  }
 0x8a4   : > { %6199 = vmatpush3.bf16.msra.mxu1 %v7876_v4  ;;  %6178 = vmatprep.mubr.msk.bf16.mxu1 %vm817_vm1, %v6856_v6 }
 0x8a5   : > { %6200 = vmatprep.subr.bf16.mxu1 %v7880_v13 }
 0x8a8   : > { %6201 = vmatpush3.bf16.msra.mxu1 %v7880_v13 }
 0x8a9   : > { %6202 = vmatprep.subr.bf16.mxu1 %v7888_v48 }
 0x8ab   : > { %6179 = vmatmul.mubr.msk.bf16.gmra.mrb[96].mxu1 %vm817_vm1, %v6857_v17 }
 0x8ac   : > { %6203 = vmatpush3.bf16.msra.mxu1 %v7888_v48  ;;  %6206 = vmatprep.mubr.msk.bf16.mxu1 %vm817_vm1, %v6858_v5 }
 0x8ad   : > { %6204 = vmatprep.subr.bf16.mxu1 %v7892_v19 }
 0x8b0   : > { %6205 = vmatpush3.bf16.msra.mxu1 %v7892_v19 }
 0x8b1   : > { %6246 = vmatprep.subr.bf16.mxu1 %v7876_v4 }
 0x8b3   : > { %6207 = vmatmul.mubr.msk.bf16.vlgmr.msra.gmra.mrb[100].mxu1 %vm817_vm1, %v6859_v15 }
 0x8b4   : > { %6247 = vmatpush3.bf16.msra.mxu1 %v7876_v4  ;;  %6210 = vmatprep.mubr.msk.bf16.mxu1 %vm817_vm1, %v6860_v7  ;;  %v6881_v7 = vld [vmem:[%s8497_s26 + $0x78] sm:$0xff]  }
 0x8b5   : > { %6248 = vmatprep.subr.bf16.mxu1 %v7880_v13 }
 0x8b8   : > { %6249 = vmatpush3.bf16.msra.mxu1 %v7880_v13 }
 0x8b9   : > { %6250 = vmatprep.subr.bf16.mxu1 %v7888_v48 }
 0x8bb   : > { %6211 = vmatmul.mubr.msk.bf16.gmra.mrb[104].mxu1 %vm817_vm1, %v6861_v56 }
 0x8bc   : > { %6251 = vmatpush3.bf16.msra.mxu1 %v7888_v48  ;;  %6254 = vmatprep.mubr.msk.bf16.mxu1 %vm817_vm1, %v6862_v57 }
 0x8bd   : > { %6252 = vmatprep.subr.bf16.mxu1 %v7892_v19 }
 0x8c0   : > { %6253 = vmatpush3.bf16.msra.mxu1 %v7892_v19 }
 0x8c1   : > { %6262 = vmatprep.subr.bf16.mxu1 %v7876_v4 }
 0x8c3   : > { %6255 = vmatmul.mubr.msk.bf16.vlgmr.msra.gmra.mrb[108].mxu1 %vm817_vm1, %v6863_v60 }
 0x8c4   : > { %6263 = vmatpush3.bf16.msra.mxu1 %v7876_v4  ;;  %6258 = vmatprep.mubr.msk.bf16.mxu1 %vm817_vm1, %v6864_v63 }
 0x8c5   : > { %6264 = vmatprep.subr.bf16.mxu1 %v7880_v13 }
 0x8c8   : > { %6265 = vmatpush3.bf16.msra.mxu1 %v7880_v13 }
 0x8c9   : > { %6266 = vmatprep.subr.bf16.mxu1 %v7888_v48 }
 0x8cb   : > { %6259 = vmatmul.mubr.msk.bf16.gmra.mrb[112].mxu1 %vm817_vm1, %v6865_v0 }
 0x8cc   : > { %6267 = vmatpush3.bf16.msra.mxu1 %v7888_v48  ;;  %6270 = vmatprep.mubr.msk.bf16.mxu1 %vm817_vm1, %v6866_v61 }
 0x8cd   : > { %6268 = vmatprep.subr.bf16.mxu1 %v7892_v19 }
 0x8d0   : > { %6269 = vmatpush3.bf16.msra.mxu1 %v7892_v19 }
 0x8d1   : > { %6294 = vmatprep.subr.bf16.mxu1 %v7876_v4 }
 0x8d3   : > { %6271 = vmatmul.mubr.msk.bf16.vlgmr.msra.gmra.mrb[116].mxu1 %vm817_vm1, %v6867_v21  ;;  %v6747_v21 = vld [vmem:[%s8473_s11 + $0x78] sm:$0xff]  }
 0x8d4   : > { %6295 = vmatpush3.bf16.msra.mxu1 %v7876_v4  ;;  %6274 = vmatprep.mubr.msk.bf16.mxu1 %vm817_vm1, %v6868_v22 }
 0x8d5   : > { %6296 = vmatprep.subr.bf16.mxu1 %v7880_v13 }
 0x8d8   : > { %6297 = vmatpush3.bf16.msra.mxu1 %v7880_v13 }
 0x8d9   : > { %6298 = vmatprep.subr.bf16.mxu1 %v7888_v48 }
 0x8db   : > { %6275 = vmatmul.mubr.msk.bf16.gmra.mrb[120].mxu1 %vm817_vm1, %v6869_v18  ;;  %v6748_v18 = vld [vmem:[%s8473_s11 + $0xa0] sm:$0xff]  }
 0x8dc   : > { %6299 = vmatpush3.bf16.msra.mxu1 %v7888_v48  ;;  %6302 = vmatprep.mubr.msk.bf16.mxu1 %vm817_vm1, %v6870_v62 }
 0x8dd   : > { %6300 = vmatprep.subr.bf16.mxu1 %v7892_v19 }
 0x8e0   : > { %6301 = vmatpush3.bf16.msra.mxu1 %v7892_v19 }
 0x8e1   : > { %6342 = vmatprep.subr.bf16.mxu1 %v7876_v4 }
 0x8e3   : > { %6303 = vmatmul.mubr.msk.bf16.vlgmr.msra.gmra.mrb[124].mxu1 %vm817_vm1, %v6871_v50 }
 0x8e4   : > { %6343 = vmatpush3.bf16.msra.mxu1 %v7876_v4  ;;  %6306 = vmatprep.mubr.msk.bf16.mxu1 %vm817_vm1, %v6872_v23 }
 0x8e5   : > { %6344 = vmatprep.subr.bf16.mxu1 %v7880_v13 }
 0x8e8   : > { %6345 = vmatpush3.bf16.msra.mxu1 %v7880_v13 }
 0x8e9   : > { %6346 = vmatprep.subr.bf16.mxu1 %v7888_v48 }
 0x8eb   : > { %6307 = vmatmul.mubr.msk.bf16.gmra.mrb[128].mxu1 %vm817_vm1, %v6873_v58 }
 0x8ec   : > { %6347 = vmatpush3.bf16.msra.mxu1 %v7888_v48  ;;  %6350 = vmatprep.mubr.msk.bf16.mxu1 %vm817_vm1, %v6874_v24 }
 0x8ed   : > { %6348 = vmatprep.subr.bf16.mxu1 %v7892_v19 }
 0x8f0   : > { %6349 = vmatpush3.bf16.msra.mxu1 %v7892_v19 }
 0x8f3   : > { %6351 = vmatmul.mubr.msk.bf16.vlgmr.msra.gmra.mrb[132].mxu1 %vm817_vm1, %v6875_v14 }
 0x8f4   : > { %6354 = vmatprep.mubr.msk.bf16.mxu1 %vm817_vm1, %v6876_v31 }
 0x8fb   : > { %6355 = vmatmul.mubr.msk.bf16.gmra.mrb[136].mxu1 %vm817_vm1, %v6877_v30 }
 0x966   : > { %v8053_v32 = vpop.f32.mrb[84].mxu1 }
 0x967   : > { %v8055_v33 = vpop.f32.mrb[85].mxu1 }
 0x968   : > { %v8057_v34 = vpop.f32.mrb[86].mxu1 }
 0x969   : > { %v3292_v35 = vpack.c.bf16 %v8057_v34, %v8053_v32  ;;  %v8061_v36 = vpop.f32.mrb[87].mxu1  ;;  %v6768_v32 = vld [vmem:[%s8473_s11 + $0x80] sm:$0xff]   ;;  %v6769_v34 = vld [vmem:[%s8473_s11 + $0x88] sm:$0xff]  }
 0x96a   : > { %v3291_v25 = vpack.c.bf16 %v8061_v36, %v8055_v33  ;;  %v6766_v33 = vld [vmem:[%s8473_s11 + $0x50] sm:$0xff]   ;;  %v6767_v36 = vld [vmem:[%s8473_s11 + $0x58] sm:$0xff]  }
 0x96e   : > { %v8065_v37 = vpop.f32.mrb[88].mxu1 }
 0x96f   : > { %v8067_v38 = vpop.f32.mrb[89].mxu1 }
 0x970   : > { %v8069_v39 = vpop.f32.mrb[90].mxu1 }
 0x971   : > { %v3294_v40 = vpack.c.bf16 %v8069_v39, %v8065_v37  ;;  %v8073_v26 = vpop.f32.mrb[91].mxu1  ;;  %v6772_v37 = vld [vmem:[%s8473_s11 + $0xc0] sm:$0xff]   ;;  %v6774_v39 = vld [vmem:[%s8473_s11 + $0xd0] sm:$0xff]  }
 0x972   : > { %v3293_v41 = vpack.c.bf16 %v8073_v26, %v8067_v38  ;;  %v6773_v38 = vld [vmem:[%s8473_s11 + $0xc8] sm:$0xff]  }
 0x976   : > { %v6176_v29 = vpop.f32.mrb[92].mxu1 }
 0x977   : > { %v3337_v27 = vpop.f32.mrb[93].mxu1 }
 0x978   : > { %v6177_v42 = vpop.f32.mrb[94].mxu1 }
 0x979   : > { %v3369_v9 = vpack.c.bf16 %v6177_v42, %v6176_v29  ;;  %v3340_v49 = vpop.f32.mrb[95].mxu1 }
 0x97a   : > { %v3368_v43 = vpack.c.bf16 %v3340_v49, %v3337_v27 }
 0x97c   : > { %6190 = vmatprep.mubr.msk.bf16.mxu0 %vm817_vm1, %v3368_v43 }
 0x97d   : > { %6191 = vmatmul.mubr.msk.bf16.vlgmr.msra.gmra.mrb[16].mxu0 %vm817_vm1, %v3369_v9 }
 0x97e   : > { %6215 = vmatpush3.bf16.msra.mxu0 %v7876_v4  ;;  %v6180_v44 = vpop.f32.mrb[96].mxu1 }
 0x97f   : > { %6216 = vmatprep.subr.bf16.mxu0 %v7880_v13  ;;  %v3353_v45 = vpop.f32.mrb[97].mxu1 }
 0x980   : > { %v6181_v46 = vpop.f32.mrb[98].mxu1 }
 0x981   : > { %v3371_v28 = vpack.c.bf16 %v6181_v46, %v6180_v44  ;;  %v3356_v47 = vpop.f32.mrb[99].mxu1 }
 0x982   : > { %v3370_v51 = vpack.c.bf16 %v3356_v47, %v3353_v45  ;;  %6217 = vmatpush3.bf16.msra.mxu0 %v7880_v13 }
 0x983   : > { %6218 = vmatprep.subr.bf16.mxu0 %v7888_v48 }
 0x984   : > { %6194 = vmatprep.mubr.msk.bf16.mxu0 %vm817_vm1, %v3370_v51 }
 0x985   : > { %6195 = vmatmul.mubr.msk.bf16.gmra.mrb[20].mxu0 %vm817_vm1, %v3371_v28 }
 0x986   : > { %6219 = vmatpush3.bf16.msra.mxu0 %v7888_v48  ;;  %6222 = vmatprep.mubr.msk.bf16.mxu0 %vm817_vm1, %v6878_v52  ;;  %v8090_v3 = vpop.f32.mrb[100].mxu1 }
 0x987   : > { %6220 = vmatprep.subr.bf16.mxu0 %v7892_v19  ;;  %v8093_v8 = vpop.f32.mrb[101].mxu1 }
 0x988   : > { %v8098_v12 = vpop.f32.mrb[102].mxu1 }
 0x989   : > { %v3548_v53 = vpack.c.bf16 %v8098_v12, %v8090_v3  ;;  %v8102_v20 = vpop.f32.mrb[103].mxu1  ;;  %v6777_v3 = vld [vmem:[%s8475_s13 + $0x8] sm:$0xff]  }
 0x98a   : > { %6221 = vmatpush3.bf16.msra.mxu0 %v7892_v19  ;;  %v3547_v1 = vpack.c.bf16 %v8102_v20, %v8093_v8  ;;  %v6887_v20 = vld [vmem:[%s7120_s21 + $0x8] sm:$0xff] }
 0x98b   : > { %6230 = vmatprep.subr.bf16.mxu0 %v6744_v10 }
 0x98d   : > { %6223 = vmatmul.mubr.msk.bf16.vlgmr.msra.gmra.mrb[24].mxu0 %vm817_vm1, %v6879_v54 }
 0x98e   : > { %6226 = vmatprep.mubr.msk.bf16.mxu0 %vm817_vm1, %v6880_v55  ;;  %v8118_v11 = vpop.f32.mrb[104].mxu1  ;;  %6231 = vmatpush3.bf16.msra.mxu0 %v6744_v10 }
 0x98f   : > { %v8120_v2 = vpop.f32.mrb[105].mxu1  ;;  %6232 = vmatprep.subr.bf16.mxu0 %v6745_v16 }
 0x990   : > { %v8125_v6 = vpop.f32.mrb[106].mxu1 }
 0x991   : > { %v3550_v17 = vpack.c.bf16 %v8125_v6, %v8118_v11  ;;  %v8129_v5 = vpop.f32.mrb[107].mxu1  ;;  %v6889_v6 = vld [vmem:[%s7120_s21 + $0x18] sm:$0xff] }
 0x992   : > { %v3549_v15 = vpack.c.bf16 %v8129_v5, %v8120_v2  ;;  %6233 = vmatpush3.bf16.msra.mxu0 %v6745_v16  ;;  %v6888_v2 = vld [vmem:[%s7120_s21 + $0x10] sm:$0xff]  ;;  %v6890_v5 = vld [vmem:[%s7120_s21 + $0x20] sm:$0xff] }
 0x993   : > { %6234 = vmatprep.subr.bf16.mxu0 %v6746_v59 }
 0x995   : > { %6227 = vmatmul.mubr.msk.bf16.gmra.mrb[28].mxu0 %vm817_vm1, %v6881_v7 }
 0x996   : > { %v8137_v56 = vpop.f32.mrb[108].mxu1  ;;  %6235 = vmatpush3.bf16.msra.mxu0 %v6746_v59 }
 0x997   : > { %v8139_v57 = vpop.f32.mrb[109].mxu1  ;;  %6236 = vmatprep.subr.bf16.mxu0 %v6747_v21 }
 0x998   : > { %v8141_v60 = vpop.f32.mrb[110].mxu1 }
 0x999   : > { %v3805_v63 = vpack.c.bf16 %v8141_v60, %v8137_v56  ;;  %v8145_v0 = vpop.f32.mrb[111].mxu1  ;;  %v6893_v60 = vld [vmem:[%s7120_s21 + $0x38] sm:$0xff] }
 0x99a   : > { %v3804_v61 = vpack.c.bf16 %v8145_v0, %v8139_v57  ;;  %6237 = vmatpush3.bf16.msra.mxu0 %v6747_v21  ;;  %v6749_v21 = vld [vmem:[%s8473_s11 + $0xa8] sm:$0xff]   ;;  %v6892_v57 = vld [vmem:[%s7120_s21 + $0x30] sm:$0xff]  ;;  %v5502_v0 = vld [vmem:[%s8476_s14] ss:$0 sm:$0xff] }
 0x99b   : > { %6278 = vmatprep.subr.bf16.mxu0 %v6748_v18 }
 0x99e   : > { %v8152_v22 = vpop.f32.mrb[112].mxu1 }
 0x99f   : > { %v8157_v62 = vpop.f32.mrb[113].mxu1 }
 0x9a0   : > { %v8159_v50 = vpop.f32.mrb[114].mxu1 }
 0x9a1   : > { %v3807_v23 = vpack.c.bf16 %v8159_v50, %v8152_v22  ;;  %v8163_v58 = vpop.f32.mrb[115].mxu1  ;;  %v5509_v22 = vld [vmem:[%s8474_s12] ss:$0 sm:$0xff] }
 0x9a2   : > { %v3806_v24 = vpack.c.bf16 %v8163_v58, %v8157_v62 }
 0x9a6   : > { %v6272_v14 = vpop.f32.mrb[116].mxu1 }
 0x9a7   : > { %v3851_v31 = vpop.f32.mrb[117].mxu1 }
 0x9a8   : > { %v6273_v30 = vpop.f32.mrb[118].mxu1 }
 0x9a9   : > { %v3883_v29 = vpack.c.bf16 %v6273_v30, %v6272_v14  ;;  %v3854_v27 = vpop.f32.mrb[119].mxu1  ;;  %v6750_v30 = vld [vmem:[%s8473_s11 + $0xb0] sm:$0xff]  }
 0x9aa   : > { %v3882_v42 = vpack.c.bf16 %v3854_v27, %v3851_v31 }
 0x9ae   : > { %v6276_v9 = vpop.f32.mrb[120].mxu1 }
 0x9af   : > { %v3867_v49 = vpop.f32.mrb[121].mxu1 }
 0x9b0   : > { %v6277_v43 = vpop.f32.mrb[122].mxu1 }
 0x9b1   : > { %v3885_v44 = vpack.c.bf16 %v6277_v43, %v6276_v9  ;;  %v3870_v45 = vpop.f32.mrb[123].mxu1 }
 0x9b2   : > { %v3884_v46 = vpack.c.bf16 %v3870_v45, %v3867_v49  ;;  %v6751_v45 = vld [vmem:[%s8473_s11 + $0xb8] sm:$0xff]  }
 0x9b6   : > { %v8167_v28 = vpop.f32.mrb[124].mxu1 }
 0x9b7   : > { %v8169_v47 = vpop.f32.mrb[125].mxu1 }
 0x9b8   : > { %v8171_v51 = vpop.f32.mrb[126].mxu1 }
 0x9b9   : > { %v8511_v8 = vpack.c.bf16 %v8171_v51, %v8167_v28 }
 0xa60   : > { %v6224_v10 = vpop.f32.mrb[24].mxu0 }
 0xa61   : > { %v3594_v16 = vpop.f32.mrb[25].mxu0 }
 0xa62   : > { %v6225_v54 = vpop.f32.mrb[26].mxu0 }
 0xa63   : > { %v3626_v55 = vpack.c.bf16 %v6225_v54, %v6224_v10  ;;  %v3597_v59 = vpop.f32.mrb[27].mxu0  ;;  %v6755_v10 = vld [vmem:[%s8473_s11 + $0xf8] sm:$0xff]  }
 0xa64   : > { %v3625_v7 = vpack.c.bf16 %v3597_v59, %v3594_v16 }
 0xa66   : > { %6238 = vmatprep.mubr.msk.bf16.mxu0 %vm817_vm1, %v3625_v7 }
 0xa67   : > { %6239 = vmatmul.mubr.msk.bf16.vlgmr.msra.gmra.mrb[16].mxu0 %vm817_vm1, %v3626_v55  ;;  %v6756_v55 = vld [vmem:[%s8473_s11 + $0x100] sm:$0xff]  }
 0xa68   : > { %6279 = vmatpush3.bf16.msra.mxu0 %v6748_v18  ;;  %v6228_v14 = vpop.f32.mrb[28].mxu0  ;;  %v6882_v18 = vld [vmem:[%s8497_s26 + $0xe0] sm:$0xff]  }
 0xa69   : > { %v3610_v31 = vpop.f32.mrb[29].mxu0  ;;  %6280 = vmatprep.subr.bf16.mxu0 %v6749_v21 }
 0xa6a   : > { %v6229_v27 = vpop.f32.mrb[30].mxu0 }
 0xa6b   : > { %v3628_v9 = vpack.c.bf16 %v6229_v27, %v6228_v14  ;;  %v3613_v49 = vpop.f32.mrb[31].mxu0  ;;  %v6757_v14 = vld [vmem:[%s8473_s11 + $0x108] sm:$0xff]  }
 0xa6c   : > { %v3627_v43 = vpack.c.bf16 %v3613_v49, %v3610_v31  ;;  %6281 = vmatpush3.bf16.msra.mxu0 %v6749_v21 }
 0xa6d   : > { %6282 = vmatprep.subr.bf16.mxu0 %v6750_v30 }
 0xa6e   : > { %6242 = vmatprep.mubr.msk.bf16.mxu0 %vm817_vm1, %v3627_v43 }
 0xa6f   : > { %6243 = vmatmul.mubr.msk.bf16.gmra.mrb[20].mxu0 %vm817_vm1, %v3628_v9 }
 0xa70   : > { %6283 = vmatpush3.bf16.msra.mxu0 %v6750_v30  ;;  %6286 = vmatprep.mubr.msk.bf16.mxu0 %vm817_vm1, %v3882_v42  ;;  %v6885_v42 = vld [vmem:[%s8497_s26 + $0xf8] sm:$0xff]  }
 0xa71   : > { %6284 = vmatprep.subr.bf16.mxu0 %v6751_v45 }
 0xa74   : > { %6285 = vmatpush3.bf16.msra.mxu0 %v6751_v45 }
 0xa75   : > { %6310 = vmatprep.subr.bf16.mxu0 %v7876_v4 }
 0xa77   : > { %6287 = vmatmul.mubr.msk.bf16.vlgmr.msra.gmra.mrb[16].mxu0 %vm817_vm1, %v3883_v29  ;;  %v6884_v29 = vld [vmem:[%s8497_s26 + $0xf0] sm:$0xff]  }
 0xa78   : > { %6311 = vmatpush3.bf16.msra.mxu0 %v7876_v4  ;;  %6290 = vmatprep.mubr.msk.bf16.mxu0 %vm817_vm1, %v3884_v46  ;;  %v6752_v4 = vld [vmem:[%s8473_s11 + $0xe0] sm:$0xff]  }
 0xa79   : > { %6312 = vmatprep.subr.bf16.mxu0 %v7880_v13 }
 0xa7c   : > { %6313 = vmatpush3.bf16.msra.mxu0 %v7880_v13  ;;  %v6753_v13 = vld [vmem:[%s8473_s11 + $0xe8] sm:$0xff]  }
 0xa7d   : > { %6314 = vmatprep.subr.bf16.mxu0 %v7888_v48 }
 0xa7f   : > { %6291 = vmatmul.mubr.msk.bf16.gmra.mrb[20].mxu0 %vm817_vm1, %v3885_v44  ;;  %v8225_v44 = vpop.f32.mrb[127].mxu1 }
 0xa80   : > { %6315 = vmatpush3.bf16.msra.mxu0 %v7888_v48  ;;  %6318 = vmatprep.mubr.msk.bf16.mxu0 %vm817_vm1, %v6882_v18  ;;  %v6883_v48 = vld [vmem:[%s8497_s26 + $0xe8] sm:$0xff]   ;;  %v8232_v16 = vpop.f32.mrb[128].mxu1  ;;  %v8510_v26 = vpack.c.bf16 %v8225_v44, %v8169_v47 }
 0xa81   : > { %6316 = vmatprep.subr.bf16.mxu0 %v7892_v19  ;;  %v8234_v54 = vpop.f32.mrb[129].mxu1 }
 0xa82   : > { %v8239_v59 = vpop.f32.mrb[130].mxu1 }
 0xa83   : > { %v8243_v21 = vpop.f32.mrb[131].mxu1  ;;  %v8513_v11 = vpack.c.bf16 %v8239_v59, %v8232_v16 }
 0xa84   : > { %6317 = vmatpush3.bf16.msra.mxu0 %v7892_v19  ;;  %v6754_v19 = vld [vmem:[%s8473_s11 + $0xf0] sm:$0xff]   ;;  %v6352_v31 = vpop.f32.mrb[132].mxu1  ;;  %v8512_v12 = vpack.c.bf16 %v8243_v21, %v8234_v54 }
 0xa85   : > { %6326 = vmatprep.subr.bf16.mxu0 %v6752_v4  ;;  %v4287_v30 = vpop.f32.mrb[133].mxu1 }
 0xa86   : > { %v6353_v27 = vpop.f32.mrb[134].mxu1 }
 0xa87   : > { %6319 = vmatmul.mubr.msk.bf16.vlgmr.msra.gmra.mrb[32].mxu0 %vm817_vm1, %v6883_v48  ;;  %v4319_v9 = vpack.c.bf16 %v6353_v27, %v6352_v31  ;;  %v4290_v49 = vpop.f32.mrb[135].mxu1  ;;  %v6758_v27 = vld [vmem:[%s8473_s11 + $0x110] sm:$0xff]  }
 0xa88   : > { %6322 = vmatprep.mubr.msk.bf16.mxu0 %vm817_vm1, %v6884_v29  ;;  %6327 = vmatpush3.bf16.msra.mxu0 %v6752_v4  ;;  %v4318_v43 = vpack.c.bf16 %v4290_v49, %v4287_v30  ;;  %v6356_v45 = vpop.f32.mrb[136].mxu1 }
 0xa89   : > { %6328 = vmatprep.subr.bf16.mxu0 %v6753_v13  ;;  %v4303_v18 = vpop.f32.mrb[137].mxu1 }
 0xa8a   : > { %v6357_v4 = vpop.f32.mrb[138].mxu1 }
 0xa8b   : > { %v4306_v48 = vpop.f32.mrb[139].mxu1 }
 0xa8c   : > { %6329 = vmatpush3.bf16.msra.mxu0 %v6753_v13  ;;  %v4321_v13 = vpack.c.bf16 %v6357_v4, %v6356_v45  ;;  %v4320_v29 = vpack.c.bf16 %v4306_v48, %v4303_v18  ;;  %v6765_v4 = vld [vmem:[%s8473_s11 + $0x48] sm:$0xff]  }
 0xa8d   : > { %6330 = vmatprep.subr.bf16.mxu0 %v6754_v19 }
 0xa8f   : > { %6323 = vmatmul.mubr.msk.bf16.gmra.mrb[36].mxu0 %vm817_vm1, %v6885_v42 }
 0xa90   : > { %6331 = vmatpush3.bf16.msra.mxu0 %v6754_v19 }
 0xa91   : > { %6332 = vmatprep.subr.bf16.mxu0 %v6755_v10 }
 0xa94   : > { %6333 = vmatpush3.bf16.msra.mxu0 %v6755_v10 }
 0xa95   : > { %6358 = vmatprep.subr.bf16.mxu0 %v6756_v55 }
 0xb5a   : > { %v6320_v19 = vpop.f32.mrb[32].mxu0 }
 0xb5b   : > { %v4108_v42 = vpop.f32.mrb[33].mxu0 }
 0xb5c   : > { %v6321_v10 = vpop.f32.mrb[34].mxu0 }
 0xb5d   : > { %v4140_v7 = vpack.c.bf16 %v6321_v10, %v6320_v19  ;;  %v4111_v52 = vpop.f32.mrb[35].mxu0 }
 0xb5e   : > { %v4139_v46 = vpack.c.bf16 %v4111_v52, %v4108_v42 }
 0xb60   : > { %6334 = vmatprep.mubr.msk.bf16.mxu0 %vm817_vm1, %v4139_v46  ;;  %v6759_v46 = vld [vmem:[%s8473_s11 + $0x118] sm:$0xff]  }
 0xb61   : > { %6335 = vmatmul.mubr.msk.bf16.vlgmr.msra.gmra.mrb[16].mxu0 %vm817_vm1, %v4140_v7  ;;  %v6761_v7 = vld [vmem:[%s8473_s11 + $0x8] sm:$0xff]  }
 0xb62   : > { %v6324_v31 = vpop.f32.mrb[36].mxu0  ;;  %6359 = vmatpush3.bf16.msra.mxu0 %v6756_v55  ;;  %v6760_v55 = vld [vmem:[%s8473_s11] sm:$0xff]  }
 0xb63   : > { %v4124_v30 = vpop.f32.mrb[37].mxu0  ;;  %6360 = vmatprep.subr.bf16.mxu0 %v6757_v14 }
 0xb64   : > { %v6325_v49 = vpop.f32.mrb[38].mxu0 }
 0xb65   : > { %v4142_v45 = vpack.c.bf16 %v6325_v49, %v6324_v31  ;;  %v4127_v18 = vpop.f32.mrb[39].mxu0 }
 0xb66   : > { %v4141_v52 = vpack.c.bf16 %v4127_v18, %v4124_v30  ;;  %6361 = vmatpush3.bf16.msra.mxu0 %v6757_v14  ;;  %v6762_v14 = vld [vmem:[%s8473_s11 + $0x10] sm:$0xff]  }
 0xb67   : > { %6362 = vmatprep.subr.bf16.mxu0 %v6758_v27 }
 0xb68   : > { %6338 = vmatprep.mubr.msk.bf16.mxu0 %vm817_vm1, %v4141_v52 }
 0xb69   : > { %6339 = vmatmul.mubr.msk.bf16.gmra.mrb[20].mxu0 %vm817_vm1, %v4142_v45 }
 0xb6a   : > { %6363 = vmatpush3.bf16.msra.mxu0 %v6758_v27  ;;  %6366 = vmatprep.mubr.msk.bf16.mxu0 %vm817_vm1, %v4318_v43  ;;  %v6763_v43 = vld [vmem:[%s8473_s11 + $0x18] sm:$0xff]  }
 0xb6b   : > { %6364 = vmatprep.subr.bf16.mxu0 %v6759_v46 }
 0xb6e   : > { %6365 = vmatpush3.bf16.msra.mxu0 %v6759_v46 }
 0xb6f   : > { %6374 = vmatprep.subr.bf16.mxu0 %v6760_v55 }
 0xb71   : > { %6367 = vmatmul.mubr.msk.bf16.vlgmr.msra.gmra.mrb[16].mxu0 %vm817_vm1, %v4319_v9  ;;  %v6764_v9 = vld [vmem:[%s8473_s11 + $0x40] sm:$0xff]  }
 0xb72   : > { %6375 = vmatpush3.bf16.msra.mxu0 %v6760_v55  ;;  %6370 = vmatprep.mubr.msk.bf16.mxu0 %vm817_vm1, %v4320_v29 }
 0xb73   : > { %6376 = vmatprep.subr.bf16.mxu0 %v6761_v7 }
 0xb76   : > { %6377 = vmatpush3.bf16.msra.mxu0 %v6761_v7 }
 0xb77   : > { %6378 = vmatprep.subr.bf16.mxu0 %v6762_v14 }
 0xb79   : > { %6371 = vmatmul.mubr.msk.bf16.gmra.mrb[20].mxu0 %vm817_vm1, %v4321_v13 }
 0xb7a   : > { %6379 = vmatpush3.bf16.msra.mxu0 %v6762_v14  ;;  %6382 = vmatprep.mubr.msk.bf16.mxu0 %vm817_vm1, %v3291_v25  ;;  %v6771_v25 = vld [vmem:[%s8473_s11 + $0x98] sm:$0xff]  }
 0xb7b   : > { %6380 = vmatprep.subr.bf16.mxu0 %v6763_v43 }
 0xb7e   : > { %6381 = vmatpush3.bf16.msra.mxu0 %v6763_v43 }
 0xb7f   : > { %6390 = vmatprep.subr.bf16.mxu0 %v6764_v9 }
 0xb81   : > { %6383 = vmatmul.mubr.msk.bf16.vlgmr.msra.gmra.mrb[16].mxu0 %vm817_vm1, %v3292_v35  ;;  %v6770_v35 = vld [vmem:[%s8473_s11 + $0x90] sm:$0xff]  }
 0xb82   : > { %6386 = vmatprep.mubr.msk.bf16.mxu0 %vm817_vm1, %v3293_v41  ;;  %6391 = vmatpush3.bf16.msra.mxu0 %v6764_v9  ;;  %v6776_v41 = vld [vmem:[%s8475_s13] sm:$0xff]  }
 0xb83   : > { %6392 = vmatprep.subr.bf16.mxu0 %v6765_v4 }
 0xb86   : > { %6393 = vmatpush3.bf16.msra.mxu0 %v6765_v4 }
 0xb87   : > { %6394 = vmatprep.subr.bf16.mxu0 %v6766_v33 }
 0xb89   : > { %6387 = vmatmul.mubr.msk.bf16.gmra.mrb[20].mxu0 %vm817_vm1, %v3294_v40  ;;  %v6775_v40 = vld [vmem:[%s8473_s11 + $0xd8] sm:$0xff]  }
 0xb8a   : > { %6395 = vmatpush3.bf16.msra.mxu0 %v6766_v33  ;;  %6398 = vmatprep.mubr.msk.bf16.mxu0 %vm817_vm1, %v3547_v1 }
 0xb8b   : > { %6396 = vmatprep.subr.bf16.mxu0 %v6767_v36 }
 0xb8e   : > { %6397 = vmatpush3.bf16.msra.mxu0 %v6767_v36 }
 0xb8f   : > { %6406 = vmatprep.subr.bf16.mxu0 %v6768_v32 }
 0xb91   : > { %6399 = vmatmul.mubr.msk.bf16.vlgmr.msra.gmra.mrb[16].mxu0 %vm817_vm1, %v3548_v53  ;;  %v6886_v53 = vld [vmem:[%s7120_s21] sm:$0xff] }
 0xb92   : > { %6402 = vmatprep.mubr.msk.bf16.mxu0 %vm817_vm1, %v3549_v15  ;;  %6407 = vmatpush3.bf16.msra.mxu0 %v6768_v32  ;;  %v4868_v1 = vpack.c.bf16 %v6887_v20, %v6886_v53  ;;  %v6891_v15 = vld [vmem:[%s7120_s21 + $0x28] sm:$0xff]  ;;  %s610_s21 = scalar_lea.vmem [#allocation4], %s5092_s1  ;;  %s6961_s1 = smov [#allocation4]  }
 0xb93   : > { %6408 = vmatprep.subr.bf16.mxu0 %v6769_v34  ;;  %v4870_v56 = vpack.c.bf16 %v6891_v15, %v6890_v5  ;;  %s5017_s20 = sshll.u32 %s610_s21, 4  ;;  %s6898_s28 = sshll.u32 %s6961_s1, 4  ;;  %s8414_s20 = int_to_ptr.vmem [resolvable:$true] %s5017_s20  ;;  %s6899_s28 = int_to_ptr.vmem [resolvable:$false] %s6898_s28 }
 0xb94   : > { %s6894_s27 = scalar_lea.vmem %s8414_s20, 1024  ;;  %s6900_s29 = scalar_lea.vmem %s6899_s28, 2048 }
 0xb95   : > { %p6895_p11 = scmp.ne.s32.totalorder %s8414_s20, %s6894_s27  ;;  %p6901_p0 = scmp.lt.s32.totalorder %s8414_s20, %s6899_s28 }
 0xb96   : > { %6409 = vmatpush3.bf16.msra.mxu0 %v6769_v34  ;;  %p6902_p1 = scmp.lt.s32.totalorder %s6900_s29, %s6894_s27 }
 0xb97   : > { %6410 = vmatprep.subr.bf16.mxu0 %v6770_v35  ;;  %p6896_p12 = pnand %p6895_p11, %p7102_p5 }
 0xb98   : > { %p6903_p2 = por %p6902_p1, %p6901_p0 }
 0xb99   : > { %6403 = vmatmul.mubr.msk.bf16.gmra.mrb[20].mxu0 %vm817_vm1, %v3550_v17  ;;  %v4869_v17 = vpack.c.bf16 %v6889_v6, %v6888_v2  ;;  %p6897_p13 = pneg %p6896_p12 }
 0xb9a   : > { %6411 = vmatpush3.bf16.msra.mxu0 %v6770_v35  ;;  %6414 = vmatprep.mubr.msk.bf16.mxu0 %vm817_vm1, %v3804_v61 }
 0xb9b   : > { %6412 = vmatprep.subr.bf16.mxu0 %v6771_v25  ;;  %p6904_p3 = pnand %p6903_p2, %p6897_p13 }
 0xb9e   : > { %6413 = vmatpush3.bf16.msra.mxu0 %v6771_v25 }
 0xb9f   : > { %6422 = vmatprep.subr.bf16.mxu0 %v6772_v37 }
 0xba1   : > { %6415 = vmatmul.mubr.msk.bf16.vlgmr.msra.gmra.mrb[16].mxu0 %vm817_vm1, %v3805_v63  ;;  %v4871_v63 = vpack.c.bf16 %v6893_v60, %v6892_v57 }
 0xba2   : > { %6418 = vmatprep.mubr.msk.bf16.mxu0 %vm817_vm1, %v3806_v24  ;;  %6423 = vmatpush3.bf16.msra.mxu0 %v6772_v37 }
 0xba3   : > { %6424 = vmatprep.subr.bf16.mxu0 %v6773_v38 }
 0xba6   : > { %6425 = vmatpush3.bf16.msra.mxu0 %v6773_v38 }
 0xba7   : > { %6426 = vmatprep.subr.bf16.mxu0 %v6774_v39 }
 0xba9   : > { %6419 = vmatmul.mubr.msk.bf16.gmra.mrb[20].mxu0 %vm817_vm1, %v3807_v23 }
 0xbaa   : > { %6427 = vmatpush3.bf16.msra.mxu0 %v6774_v39  ;;  %6430 = vmatprep.mubr.msk.bf16.mxu0 %vm817_vm1, %v8510_v26 }
 0xbab   : > { %6428 = vmatprep.subr.bf16.mxu0 %v6775_v40 }
 0xbae   : > { %6429 = vmatpush3.bf16.msra.mxu0 %v6775_v40 }
 0xbaf   : > { %6438 = vmatprep.subr.bf16.mxu0 %v6776_v41 }
 0xbb1   : > { %6431 = vmatmul.mubr.msk.bf16.vlgmr.msra.gmra.mrb[16].mxu0 %vm817_vm1, %v8511_v8 }
 0xbb2   : > { %6434 = vmatprep.mubr.msk.bf16.mxu0 %vm817_vm1, %v8512_v12  ;;  %6439 = vmatpush3.bf16.msra.mxu0 %v6776_v41 }
 0xbb3   : > { %6440 = vmatprep.subr.bf16.mxu0 %v6777_v3 }
 0xbb6   : > { %6441 = vmatpush3.bf16.msra.mxu0 %v6777_v3 }
 0xbb9   : > { %6435 = vmatmul.mubr.msk.bf16.gmra.mrb[20].mxu0 %vm817_vm1, %v8513_v11 }
 0xbba   : > { %6442 = vmatprep.mubr.msk.bf16.mxu0 %vm630_vm0, %v4868_v1 }
 0xbc1   : > { %6443 = vmatmul.mubr.msk.bf16.vlgmr.msra.gmra.mrb[16].mxu0 %vm630_vm0, %v4869_v17 }
 0xbc2   : > { %6446 = vmatprep.mubr.msk.bf16.mxu0 %vm630_vm0, %v4870_v56 }
 0xbc9   : > { %6447 = vmatmul.mubr.msk.bf16.gmra.mrb[20].mxu0 %vm630_vm0, %v4871_v63 }
 0xc94   : > { %v6444_v61 = vpop.f32.mrb[16].mxu0 }
 0xc95   : > { %v4950_v62 = vadd.f32 %v6444_v61, %v5502_v0  ;;  %v4941_v50 = vpop.f32.mrb[17].mxu0 }
 0xc96   : > { %v4942_v23 = vadd.f32 %v5502_v0, %v4941_v50  ;;  %v6445_v58 = vpop.f32.mrb[18].mxu0 }
 0xc97   : > { %v6495_v24 = vadd.f32 %v5509_v22, %v4950_v62  ;;  %v4953_v28 = vadd.f32 %v6445_v58, %v5502_v0  ;;  %v4944_v47 = vpop.f32.mrb[19].mxu0 }
 0xc98   : > { %v6497_v51 = vadd.f32 %v5509_v22, %v4942_v23  ;;  %v4945_v44 = vadd.f32 %v5502_v0, %v4944_v47 }
 0xc99   : > { %4997 = vst.msk [vmem:[%s610_s21 + $0x10] sm:$0xff] %vm817_vm1, %v6495_v24  ;;  %v6499_v16 = vadd.f32 %v5509_v22, %v4953_v28 }
 0xc9a   : > { %4995 = vst.msk [vmem:[%s610_s21] sm:$0xff] %vm817_vm1, %v6497_v51  ;;  %v6501_v54 = vadd.f32 %v5509_v22, %v4945_v44 }
 0xc9b   : > { %4998 = vst.msk [vmem:[%s610_s21 + $0x18] sm:$0xff] %vm817_vm1, %v6499_v16 }
 0xc9c   : > { %4996 = vst.msk [vmem:[%s610_s21 + $0x8] sm:$0xff] %vm817_vm1, %v6501_v54  ;;  %v6448_v59 = vpop.f32.mrb[20].mxu0 }
 0xc9d   : > { %v4966_v21 = vadd.f32 %v6448_v59, %v5502_v0  ;;  %v4957_v13 = vpop.f32.mrb[21].mxu0 }
 0xc9e   : > { %v4958_v48 = vadd.f32 %v5502_v0, %v4957_v13  ;;  %v6449_v29 = vpop.f32.mrb[22].mxu0 }
 0xc9f   : > { %v6503_v19 = vadd.f32 %v5509_v22, %v4966_v21  ;;  %v4969_v42 = vadd.f32 %v6449_v29, %v5502_v0  ;;  %v4960_v10 = vpop.f32.mrb[23].mxu0 }
 0xca0   : > { %v6505_v31 = vadd.f32 %v5509_v22, %v4958_v48  ;;  %v4961_v30 = vadd.f32 %v5502_v0, %v4960_v10 }
 0xca1   : > { %5001 = vst.msk [vmem:[%s610_s21 + $0x30] sm:$0xff] %vm817_vm1, %v6503_v19  ;;  %v6507_v27 = vadd.f32 %v5509_v22, %v4969_v42 }
 0xca2   : > { %4999 = vst.msk [vmem:[%s610_s21 + $0x20] sm:$0xff] %vm817_vm1, %v6505_v31  ;;  %v6509_v49 = vadd.f32 %v5509_v22, %v4961_v30 }
 0xca3   : > { %5002 = vst.msk [vmem:[%s610_s21 + $0x38] sm:$0xff] %vm817_vm1, %v6507_v27 }
 0xca4   : > { %5000 = vst.msk [vmem:[%s610_s21 + $0x28] sm:$0xff] %vm817_vm1, %v6509_v49 }
 0xca5   : > { %6907 = shalt.err (!%p6904_p3)
}
 0xca6   : > { %s6908_s4 = scalar_lea.hbm %s8412_s2, 1024  ;;  %s6912_s3 = scalar_lea.hbm %s8480_s19, 2048 }
 0xca7   : > { %p6909_p4 = scmp.ne.s32.totalorder %s8412_s2, %s6908_s4  ;;  %p6913_p9 = scmp.lt.u32.totalorder %s8412_s2, %s8480_s19 }
 0xca8   : > { %p6914_p10 = scmp.lt.u32.totalorder %s6912_s3, %s6908_s4  ;;  %p6916_p12 = scmp.lt.u32.totalorder %s6908_s4, %s8412_s2 }
 0xca9   : > { %p6910_p7 = pnand %p6909_p4, %p7102_p5 }
 0xcaa   : > { %p6915_p11 = por %p6914_p10, %p6913_p9 }
 0xcab   : > { %p6911_p8 = pneg %p6910_p7 }
 0xcac   : > { %p6917_p13 = por %p6916_p12, %p6915_p11 }
 0xcae   : > { %p6918_p0 = pnand %p6917_p13, %p6911_p8 }
 0xcb0   : > { %6921 = shalt.err (!%p6918_p0)
}
 0xcb1   : > { %s6962_s27 = smov 128   ;;  %s6963_s28 = smov 8  }
 0xcb2   : > { %6638 = dma.vmem_to_hbm [thread:$0]  (%p7102_p5), %s8414_s20, 1024, %s8412_s2, %s8421_s16, %s6962_s27, %s6962_s27, %s6963_s28  }
 0xcb3 PF: > { %p6644_p1 = scmp.ge.s32.totalorder %s6956_s15, 2  ;;  %s5032_s29 = sand.u32 1, %s6944_s0  }
 0xcb4   : > { %s5033_s4 = scalar_lea.sflag [#allocation5], %s5032_s29 }
 0xcb5   : > { %p6641_p2 = pnand %p6644_p1, %p7106_p6 }
 0xcb7   : > { %6939 = dma.done.wait (!%p6641_p2), %s5033_s4, 1024  }
 0xcb8   : > { %6941 = vsyncadd (!%p6641_p2), %s5033_s4, 4294966272  ;;  %s8514_s15 = sld [smem:[#allocation8_spill]]  ;;  %s8515_s21 = sld [smem:[#allocation7_spill]] }
 0xcb9   : > { %s8516_s20 = sld [smem:[#allocation9_spill]]  ;;  %s8517_s0 = smov %s6948_s30 }
 0xcbe   : > { %p33_p3 = scmp.ge.s32.totalorder %s8514_s15, 4   ;;  %s8518_s30 = smov %s8515_s21 }
 0xcc0   :  { %35 = sbr.rel (!%p33_p3) target bundleno = 9 (0x9), region = 158 }
 0xcc7   :  { %5038 = vsyncpa [#allocation5], 1 }
 0xcc8   :  { %5040 = vsyncpa [#allocation5 + $0x1], 1 }

</bundles_post_ra>
